<compile_context>
chip_gen: v7x
topology: tpu7x:2x2x1
jax: 0.10.0
libtpu: 0.0.40
codegen_flags: <defaults>
</compile_context>

<pallas_src>
import functools

import jax
import jax.numpy as jnp
from jax.experimental import pallas as pl
from jax.experimental.pallas import tpu as pltpu

NEG_SLOPE = 0.01   # torch LeakyReLU default
BN_EPS = 1e-5      # torch BatchNorm1d default


# ----------------------------------------------------------------------------
# Fused attention-head kernel (per tile of tn query points, k neighbors each).
# ----------------------------------------------------------------------------
def _lpt_kernel(tn, k, compute_dtype,
                fq_ref, fkv_ref, pe4_ref,
                wq_ref, bq_ref, wkv_ref, bkv_ref,
                wp1_ref, bp1_ref, wp2_ref, bp2_ref,
                s1_ref, t1_ref, ww_ref, bw_ref,
                o_ref):
    cd = compute_dtype

    def leaky(x):
        return jnp.where(x >= 0, x, NEG_SLOPE * x)

    def mm(a, w_ref, b_ref):
        # MXU matmul: operands in compute_dtype (bf16 fast path), f32 accumulate,
        # bias add in f32.
        return jnp.dot(a.astype(cd), w_ref[...].astype(cd),
                       preferred_element_type=jnp.float32) + b_ref[...]

    fq = fq_ref[...]            # (tn, Cin)      query features (one row / point)
    fkv = fkv_ref[...]          # (tn*k, Cin)    gathered neighbor features
    pe4 = pe4_ref[...]          # (tn*k, 4)      [dx, dy, dz, dt]

    C = wq_ref.shape[-1]

    # positional branch: Linear(4,64) (BN folded) -> LeakyReLU -> Linear(64,C)
    h = leaky(mm(pe4, wp1_ref, bp1_ref))            # (tn*k, 64)
    pe = mm(h, wp2_ref, bp2_ref)                    # (tn*k, C)

    # lin_q computed once per query point (row repetition exploited)
    q = mm(fq, wq_ref, bq_ref)                      # (tn, C)

    # lin_k and lin_v fused into one wide matmul; split at the 128-lane tile
    # boundary (layout-aligned slices, no copy).
    kv = mm(fkv, wkv_ref, bkv_ref)                  # (tn*k, 2C)
    kk = kv[:, :C]                                  # (tn*k, C)
    v = kv[:, C:]                                   # (tn*k, C)

    kk3 = kk.reshape(tn, k, C)
    pe3 = pe.reshape(tn, k, C)
    v3 = v.reshape(tn, k, C)

    w = (q[:, None, :] - kk3 + pe3).reshape(tn * k, C)

    # lin_w: BN(eval affine) -> LeakyReLU -> Linear(+folded BN) -> LeakyReLU
    w = leaky(w * s1_ref[...] + t1_ref[...])        # (tn*k, C) * (1, C)
    w = leaky(mm(w, ww_ref, bw_ref))
    w3 = w.reshape(tn, k, C)

    # softmax over the neighbor axis (dim=1)
    w3 = w3 - jnp.max(w3, axis=1, keepdims=True)
    e = jnp.exp(w3)
    attn = e / jnp.sum(e, axis=1, keepdims=True)

    o_ref[...] = jnp.sum(attn * (v3 + pe3), axis=1).astype(o_ref.dtype)


# ----------------------------------------------------------------------------
# Plain-JAX glue: batched KNN (matmul-form distances) + gathers.
# ----------------------------------------------------------------------------
def knn_jax(x, y, k, batch_x, batch_y):
    """For each row of y, indices of its k nearest rows of x within the same batch."""
    x2 = jnp.sum(x * x, axis=-1)
    y2 = jnp.sum(y * y, axis=-1)
    d2 = y2[:, None] + x2[None, :] - 2.0 * (y @ x.T)       # MXU-friendly form
    d2 = jnp.where(batch_y[:, None] != batch_x[None, :], jnp.inf, d2)
    _, idx = jax.lax.top_k(-d2, k)                          # (Ny, k)
    return idx


def gat_btw_fr_pallas(fp, fea_kv, fea_q, xyz_kv, xyz_q, batch, t_kv, t_q,
                      *, k, tn=32, compute_dtype=jnp.float32):
    n, cin = fea_q.shape
    ch_out = fp["w_q"].shape[1]

    idx = knn_jax(xyz_kv, xyz_q, k, batch, batch)           # (n, k)
    # TODO(synk): for large N, move this gather into the kernel via scalar-
    # prefetched indices + manual DMA instead of materializing (N*k, Cin) in HBM.
    fkv_g = fea_kv[idx].reshape(n * k, cin)
    pe4 = jnp.concatenate(
        [xyz_kv[idx] - xyz_q[:, None, :],
         jnp.full((n, k, 1), float(t_kv) - float(t_q), jnp.float32)],
        axis=-1).reshape(n * k, 4)

    n_pad = int(pl.cdiv(n, tn)) * tn
    if n_pad != n:
        fq_in = jnp.zeros((n_pad, cin), fea_q.dtype).at[:n].set(fea_q)
        fkv_in = jnp.zeros((n_pad * k, cin), fkv_g.dtype).at[:n * k].set(fkv_g)
        pe4_in = jnp.zeros((n_pad * k, 4), jnp.float32).at[:n * k].set(pe4)
    else:
        fq_in, fkv_in, pe4_in = fea_q, fkv_g, pe4

    grid = n_pad // tn
    kernel = functools.partial(_lpt_kernel, tn, k, compute_dtype)

    def full(shape):
        return pl.BlockSpec(shape, lambda i: (0, 0))

    out = pl.pallas_call(
        kernel,
        out_shape=jax.ShapeDtypeStruct((n_pad, ch_out), jnp.float32),
        grid_spec=pltpu.PrefetchScalarGridSpec(
            num_scalar_prefetch=0,
            grid=(grid,),
            in_specs=[
                pl.BlockSpec((tn, cin), lambda i: (i, 0)),        # f_q (per point)
                pl.BlockSpec((tn * k, cin), lambda i: (i, 0)),    # f_kv (per edge)
                pl.BlockSpec((tn * k, 4), lambda i: (i, 0)),      # [dxyz, dt]
                full((cin, ch_out)), full((1, ch_out)),           # Wq, bq
                full((cin, 2 * ch_out)), full((1, 2 * ch_out)),   # [Wk|Wv], [bk|bv]
                full((4, 64)), full((1, 64)),                     # Wp1 (BN folded)
                full((64, ch_out)), full((1, ch_out)),            # Wp2
                full((1, ch_out)), full((1, ch_out)),             # BN_w1 scale/shift
                full((ch_out, ch_out)), full((1, ch_out)),        # Ww (BN_w2 folded)
            ],
            out_specs=pl.BlockSpec((tn, ch_out), lambda i: (i, 0)),
        ),
        compiler_params=pltpu.CompilerParams(
            dimension_semantics=("parallel",)),
    )(fq_in, fkv_in, pe4_in,
      fp["w_q"], fp["b_q"], fp["w_kvf"], fp["b_kvf"],
      fp["w_p1f"], fp["b_p1f"], fp["w_p2"], fp["b_p2"],
      fp["s_w1"], fp["t_w1"], fp["w_wf"], fp["b_wf"])
    return out[:n]


def lpt_bd_forward(fp, fea_prev, fea_cur, fea_next, xyz_prev, xyz_cur, xyz_next,
                   batch, t_prev, t_cur, t_next, *, k, tn=32,
                   compute_dtype=jnp.float32):
    f01 = gat_btw_fr_pallas(fp, fea_prev, fea_cur, xyz_prev, xyz_cur, batch,
                            t_prev, t_cur, k=k, tn=tn, compute_dtype=compute_dtype)
    f10 = gat_btw_fr_pallas(fp, fea_next, fea_cur, xyz_next, xyz_cur, batch,
                            t_next, t_cur, k=k, tn=tn, compute_dtype=compute_dtype)
    return f01, f10


# ----------------------------------------------------------------------------
# Parameters: kaiming_normal_(fan_out, leaky_relu) weights, zero bias,
# eval-mode BatchNorm stats folded into the adjacent Linears in the wrapper.
# ----------------------------------------------------------------------------
def kaiming_linear(key, fan_in, fan_out):
    gain = (2.0 / (1.0 + NEG_SLOPE ** 2)) ** 0.5
    std = gain / (fan_out ** 0.5)
    w = std * jax.random.normal(key, (fan_in, fan_out), jnp.float32)  # stored (in, out)
    b = jnp.zeros((1, fan_out), jnp.float32)
    return w, b


def random_bn(key, c):
    k1, k2, k3, k4 = jax.random.split(key, 4)
    return dict(
        gamma=1.0 + 0.2 * jax.random.normal(k1, (c,), jnp.float32),
        beta=0.1 * jax.random.normal(k2, (c,), jnp.float32),
        mean=0.1 * jax.random.normal(k3, (c,), jnp.float32),
        var=jnp.abs(1.0 + 0.2 * jax.random.normal(k4, (c,), jnp.float32)),
    )


def init_params(key, cin, ch_out):
    ks = jax.random.split(key, 9)
    p = {}
    p["w_q"], p["b_q"] = kaiming_linear(ks[0], cin, ch_out)
    p["w_k"], p["b_k"] = kaiming_linear(ks[1], cin, ch_out)
    p["w_v"], p["b_v"] = kaiming_linear(ks[2], cin, ch_out)
    p["w_p1"], p["b_p1"] = kaiming_linear(ks[3], 4, 64)
    p["w_p2"], p["b_p2"] = kaiming_linear(ks[4], 64, ch_out)
    p["w_w"], p["b_w"] = kaiming_linear(ks[5], ch_out, ch_out)
    p["bn_p"] = random_bn(ks[6], 64)
    p["bn_w1"] = random_bn(ks[7], ch_out)
    p["bn_w2"] = random_bn(ks[8], ch_out)
    return p


def fold_params(p):
    """Pre-fold eval-mode BatchNorms into adjacent Linears and fuse K/V weights
    into one wide matrix (all wrapper-side, free)."""
    fp = {n: p[n] for n in ("w_q", "b_q", "w_p2", "b_p2")}

    # lin_k / lin_v share the same LHS in the kernel -> one wide MXU matmul.
    fp["w_kvf"] = jnp.concatenate([p["w_k"], p["w_v"]], axis=1)   # (cin, 2C)
    fp["b_kvf"] = jnp.concatenate([p["b_k"], p["b_v"]], axis=1)   # (1, 2C)

    bn = p["bn_p"]                                   # BN right after Linear(4,64)
    s = bn["gamma"] / jnp.sqrt(bn["var"] + BN_EPS)
    fp["w_p1f"] = p["w_p1"] * s[None, :]
    fp["b_p1f"] = ((p["b_p1"][0] - bn["mean"]) * s + bn["beta"])[None, :]

    bn = p["bn_w1"]                                  # BN after a 3-way sum: keep affine
    s1 = bn["gamma"] / jnp.sqrt(bn["var"] + BN_EPS)
    fp["s_w1"] = s1[None, :]
    fp["t_w1"] = (bn["beta"] - bn["mean"] * s1)[None, :]

    bn = p["bn_w2"]                                  # BN right after Linear(C,C)
    s2 = bn["gamma"] / jnp.sqrt(bn["var"] + BN_EPS)
    fp["w_wf"] = p["w_w"] * s2[None, :]
    fp["b_wf"] = (p["b_w"][0] * s2 - bn["mean"] * s2 + bn["beta"])[None, :]
    return fp


# ----------------------------------------------------------------------------
# Pure-JAX reference (torch op order, unfolded params, eval-mode BN).
# ----------------------------------------------------------------------------
def _bn_eval(x, bn):
    return (x - bn["mean"]) / jnp.sqrt(bn["var"] + BN_EPS) * bn["gamma"] + bn["beta"]


def _leaky(x):
    return jnp.where(x >= 0, x, NEG_SLOPE * x)


def gat_btw_fr_ref(p, fea_kv, fea_q, xyz_kv, xyz_q, batch, t_kv, t_q, k):
    n, cin = fea_q.shape
    idx = knn_jax(xyz_kv, xyz_q, k, batch, batch)
    fq = jnp.broadcast_to(fea_q[:, None, :], (n, k, cin))
    fkv = fea_kv[idx]
    xyzt_last = jnp.concatenate([jnp.broadcast_to(xyz_q[:, None, :], (n, k, 3)),
                                 jnp.full((n, k, 1), float(t_q), jnp.float32)], -1)
    xyzt_i = jnp.concatenate([xyz_kv[idx],
                              jnp.full((n, k, 1), float(t_kv), jnp.float32)], -1)
    pe = xyzt_i - xyzt_last
    pe = pe @ p["w_p1"] + p["b_p1"]
    pe = _leaky(_bn_eval(pe, p["bn_p"]))
    pe = pe @ p["w_p2"] + p["b_p2"]
    w = (fq @ p["w_q"] + p["b_q"]) - (fkv @ p["w_k"] + p["b_k"]) + pe
    w = _leaky(_bn_eval(w, p["bn_w1"]))
    w = w @ p["w_w"] + p["b_w"]
    w = _leaky(_bn_eval(w, p["bn_w2"]))
    w = jax.nn.softmax(w, axis=1)
    v = (fkv @ p["w_v"] + p["b_v"]) + pe
    return jnp.sum(w * v, axis=1)


if __name__ == "__main__":
    N, CIN, CH_OUT, K = 64, 64, 128, 16        # ch_out=128 -> lane-dense stores
    TN = 32                                    # tile: M = TN*K = 512 (MXU-sized), grid=2
    T_PREV, T_CUR, T_NEXT = 0.0, 1.0, 2.0

    root = jax.random.PRNGKey(0)
    kp, kd = jax.random.split(root)
    params = init_params(kp, CIN, CH_OUT)
    folded = fold_params(params)

    dks = jax.random.split(kd, 6)
    fea_prev = jax.random.normal(dks[0], (N, CIN), jnp.float32)
    fea_cur = jax.random.normal(dks[1], (N, CIN), jnp.float32)
    fea_next = jax.random.normal(dks[2], (N, CIN), jnp.float32)
    xyz_prev = jax.random.normal(dks[3], (N, 3), jnp.float32)
    xyz_cur = jax.random.normal(dks[4], (N, 3), jnp.float32)
    xyz_next = jax.random.normal(dks[5], (N, 3), jnp.float32)
    batch = jnp.concatenate([jnp.zeros(N // 2, jnp.int32),
                             jnp.ones(N // 2, jnp.int32)])

    # f32 run (tight correctness check vs unfolded reference)
    f01, f10 = lpt_bd_forward(folded, fea_prev, fea_cur, fea_next,
                              xyz_prev, xyz_cur, xyz_next, batch,
                              T_PREV, T_CUR, T_NEXT, k=K, tn=TN,
                              compute_dtype=jnp.float32)
    jax.block_until_ready((f01, f10))
    assert f01.shape == (N, CH_OUT) and f10.shape == (N, CH_OUT)

    r01 = gat_btw_fr_ref(params, fea_prev, fea_cur, xyz_prev, xyz_cur, batch,
                         T_PREV, T_CUR, K)
    r10 = gat_btw_fr_ref(params, fea_next, fea_cur, xyz_next, xyz_cur, batch,
                         T_NEXT, T_CUR, K)
    assert jnp.allclose(f01, r01, atol=2e-4, rtol=2e-4), "f01 mismatch vs reference"
    assert jnp.allclose(f10, r10, atol=2e-4, rtol=2e-4), "f10 mismatch vs reference"

    # bf16 MXU-operand fast path (v6e/v7x); f32 accumulation + f32 VPU math.
    f01b, f10b = lpt_bd_forward(folded, fea_prev, fea_cur, fea_next,
                                xyz_prev, xyz_cur, xyz_next, batch,
                                T_PREV, T_CUR, T_NEXT, k=K, tn=TN,
                                compute_dtype=jnp.bfloat16)
    jax.block_until_ready((f01b, f10b))
    assert bool(jnp.all(jnp.isfinite(f01b))) and bool(jnp.all(jnp.isfinite(f10b)))
    assert jnp.allclose(f01b, r01, atol=0.2, rtol=0.2), "bf16 f01 grossly off"
    assert jnp.allclose(f10b, r10, atol=0.2, rtol=0.2), "bf16 f10 grossly off"

    print("KERNEL_OK")
</pallas_src>

<mosaic_0001>
module attributes {stable_mosaic.version = 11 : i64} {
  func.func @_lpt_kernel(%arg0: i32, %arg1: memref<32x64xf32, #tpu.memory_space<vmem>>, %arg2: memref<512x64xf32, #tpu.memory_space<vmem>>, %arg3: memref<512x4xf32, #tpu.memory_space<vmem>>, %arg4: memref<64x128xf32, #tpu.memory_space<vmem>>, %arg5: memref<1x128xf32, #tpu.memory_space<vmem>>, %arg6: memref<64x256xf32, #tpu.memory_space<vmem>>, %arg7: memref<1x256xf32, #tpu.memory_space<vmem>>, %arg8: memref<4x64xf32, #tpu.memory_space<vmem>>, %arg9: memref<1x64xf32, #tpu.memory_space<vmem>>, %arg10: memref<64x128xf32, #tpu.memory_space<vmem>>, %arg11: memref<1x128xf32, #tpu.memory_space<vmem>>, %arg12: memref<1x128xf32, #tpu.memory_space<vmem>>, %arg13: memref<1x128xf32, #tpu.memory_space<vmem>>, %arg14: memref<128x128xf32, #tpu.memory_space<vmem>>, %arg15: memref<1x128xf32, #tpu.memory_space<vmem>>, %arg16: memref<32x128xf32, #tpu.memory_space<vmem>>) attributes {dimension_semantics = [#tpu.dimension_semantics<parallel>], iteration_bounds = array<i64: 2>, scalar_prefetch = 0 : i64, scratch_operands = 0 : i64, tpu.core_type = #tpu.core_type<tc>, window_params = [{transform_indices = @transform_0, window_bounds = array<i64: 32, 64>}, {transform_indices = @transform_1, window_bounds = array<i64: 512, 64>}, {transform_indices = @transform_2, window_bounds = array<i64: 512, 4>}, {pipeline_mode = #tpu.pipeline_mode<synchronous>, transform_indices = @transform_3, window_bounds = array<i64: 64, 128>}, {pipeline_mode = #tpu.pipeline_mode<synchronous>, transform_indices = @transform_4, window_bounds = array<i64: 1, 128>}, {pipeline_mode = #tpu.pipeline_mode<synchronous>, transform_indices = @transform_5, window_bounds = array<i64: 64, 256>}, {pipeline_mode = #tpu.pipeline_mode<synchronous>, transform_indices = @transform_6, window_bounds = array<i64: 1, 256>}, {pipeline_mode = #tpu.pipeline_mode<synchronous>, transform_indices = @transform_7, window_bounds = array<i64: 4, 64>}, {pipeline_mode = #tpu.pipeline_mode<synchronous>, transform_indices = @transform_8, window_bounds = array<i64: 1, 64>}, {pipeline_mode = #tpu.pipeline_mode<synchronous>, transform_indices = @transform_9, window_bounds = array<i64: 64, 128>}, {pipeline_mode = #tpu.pipeline_mode<synchronous>, transform_indices = @transform_10, window_bounds = array<i64: 1, 128>}, {pipeline_mode = #tpu.pipeline_mode<synchronous>, transform_indices = @transform_11, window_bounds = array<i64: 1, 128>}, {pipeline_mode = #tpu.pipeline_mode<synchronous>, transform_indices = @transform_12, window_bounds = array<i64: 1, 128>}, {pipeline_mode = #tpu.pipeline_mode<synchronous>, transform_indices = @transform_13, window_bounds = array<i64: 128, 128>}, {pipeline_mode = #tpu.pipeline_mode<synchronous>, transform_indices = @transform_14, window_bounds = array<i64: 1, 128>}, {transform_indices = @transform_15, window_bounds = array<i64: 32, 128>}]} {
    %c0 = arith.constant 0 : index
    %c0_0 = arith.constant 0 : index
    %0 = vector.load %arg1[%c0, %c0_0] : memref<32x64xf32, #tpu.memory_space<vmem>>, vector<32x64xf32>
    %c0_1 = arith.constant 0 : index
    %c0_2 = arith.constant 0 : index
    %1 = vector.load %arg2[%c0_1, %c0_2] : memref<512x64xf32, #tpu.memory_space<vmem>>, vector<512x64xf32>
    %c0_3 = arith.constant 0 : index
    %c0_4 = arith.constant 0 : index
    %2 = vector.load %arg3[%c0_3, %c0_4] : memref<512x4xf32, #tpu.memory_space<vmem>>, vector<512x4xf32>
    %c0_5 = arith.constant 0 : index
    %c0_6 = arith.constant 0 : index
    %3 = vector.load %arg8[%c0_5, %c0_6] : memref<4x64xf32, #tpu.memory_space<vmem>>, vector<4x64xf32>
    %cst = arith.constant dense<0.000000e+00> : vector<512x64xf32>
    %4 = tpu.matmul %2, %3, %cst {dimension_numbers = #tpu.dot_dimension_numbers<[1], [0], [0], [1], [0, 0, 1, 1], [], []>} : vector<512x4xf32>, vector<4x64xf32>, vector<512x64xf32> -> vector<512x64xf32>
    %c0_7 = arith.constant 0 : index
    %c0_8 = arith.constant 0 : index
    %5 = vector.load %arg9[%c0_7, %c0_8] : memref<1x64xf32, #tpu.memory_space<vmem>>, vector<1x64xf32>
    %6 = vector.broadcast %5 : vector<1x64xf32> to vector<512x64xf32>
    %7 = arith.addf %4, %6 : vector<512x64xf32>
    %cst_9 = arith.constant 0.000000e+00 : f32
    %8 = vector.broadcast %cst_9 : f32 to vector<512x64xf32>
    %9 = arith.cmpf oge, %7, %8 : vector<512x64xf32>
    %cst_10 = arith.constant 0.00999999977 : f32
    %10 = vector.broadcast %cst_10 : f32 to vector<512x64xf32>
    %11 = arith.mulf %10, %7 : vector<512x64xf32>
    %12 = arith.select %9, %7, %11 : vector<512x64xi1>, vector<512x64xf32>
    %c0_11 = arith.constant 0 : index
    %c0_12 = arith.constant 0 : index
    %13 = vector.load %arg10[%c0_11, %c0_12] : memref<64x128xf32, #tpu.memory_space<vmem>>, vector<64x128xf32>
    %cst_13 = arith.constant dense<0.000000e+00> : vector<512x128xf32>
    %14 = tpu.matmul %12, %13, %cst_13 {dimension_numbers = #tpu.dot_dimension_numbers<[1], [0], [0], [1], [0, 0, 1, 1], [], []>} : vector<512x64xf32>, vector<64x128xf32>, vector<512x128xf32> -> vector<512x128xf32>
    %c0_14 = arith.constant 0 : index
    %c0_15 = arith.constant 0 : index
    %15 = vector.load %arg11[%c0_14, %c0_15] : memref<1x128xf32, #tpu.memory_space<vmem>>, vector<1x128xf32>
    %16 = vector.broadcast %15 : vector<1x128xf32> to vector<512x128xf32>
    %17 = arith.addf %14, %16 : vector<512x128xf32>
    %c0_16 = arith.constant 0 : index
    %c0_17 = arith.constant 0 : index
    %18 = vector.load %arg4[%c0_16, %c0_17] : memref<64x128xf32, #tpu.memory_space<vmem>>, vector<64x128xf32>
    %cst_18 = arith.constant dense<0.000000e+00> : vector<32x128xf32>
    %19 = tpu.matmul %0, %18, %cst_18 {dimension_numbers = #tpu.dot_dimension_numbers<[1], [0], [0], [1], [0, 0, 1, 1], [], []>} : vector<32x64xf32>, vector<64x128xf32>, vector<32x128xf32> -> vector<32x128xf32>
    %c0_19 = arith.constant 0 : index
    %c0_20 = arith.constant 0 : index
    %20 = vector.load %arg5[%c0_19, %c0_20] : memref<1x128xf32, #tpu.memory_space<vmem>>, vector<1x128xf32>
    %21 = vector.broadcast %20 : vector<1x128xf32> to vector<32x128xf32>
    %22 = arith.addf %19, %21 : vector<32x128xf32>
    %c0_21 = arith.constant 0 : index
    %c0_22 = arith.constant 0 : index
    %23 = vector.load %arg6[%c0_21, %c0_22] : memref<64x256xf32, #tpu.memory_space<vmem>>, vector<64x256xf32>
    %cst_23 = arith.constant dense<0.000000e+00> : vector<512x256xf32>
    %24 = tpu.matmul %1, %23, %cst_23 {dimension_numbers = #tpu.dot_dimension_numbers<[1], [0], [0], [1], [0, 0, 1, 1], [], []>} : vector<512x64xf32>, vector<64x256xf32>, vector<512x256xf32> -> vector<512x256xf32>
    %c0_24 = arith.constant 0 : index
    %c0_25 = arith.constant 0 : index
    %25 = vector.load %arg7[%c0_24, %c0_25] : memref<1x256xf32, #tpu.memory_space<vmem>>, vector<1x256xf32>
    %26 = vector.broadcast %25 : vector<1x256xf32> to vector<512x256xf32>
    %27 = arith.addf %24, %26 : vector<512x256xf32>
    %28 = vector.extract_strided_slice %27 {offsets = [0, 0], sizes = [512, 128], strides = [1, 1]} : vector<512x256xf32> to vector<512x128xf32>
    %29 = vector.extract_strided_slice %27 {offsets = [0, 128], sizes = [512, 128], strides = [1, 1]} : vector<512x256xf32> to vector<512x128xf32>
    %30 = vector.shape_cast %28 : vector<512x128xf32> to vector<32x16x128xf32>
    %31 = vector.shape_cast %17 : vector<512x128xf32> to vector<32x16x128xf32>
    %32 = vector.shape_cast %29 : vector<512x128xf32> to vector<32x16x128xf32>
    %33 = vector.shape_cast %22 : vector<32x128xf32> to vector<32x1x128xf32>
    %34 = vector.broadcast %33 : vector<32x1x128xf32> to vector<32x16x128xf32>
    %35 = arith.subf %34, %30 : vector<32x16x128xf32>
    %36 = arith.addf %35, %31 : vector<32x16x128xf32>
    %37 = vector.shape_cast %36 : vector<32x16x128xf32> to vector<512x128xf32>
    %c0_26 = arith.constant 0 : index
    %c0_27 = arith.constant 0 : index
    %38 = vector.load %arg12[%c0_26, %c0_27] : memref<1x128xf32, #tpu.memory_space<vmem>>, vector<1x128xf32>
    %39 = vector.broadcast %38 : vector<1x128xf32> to vector<512x128xf32>
    %40 = arith.mulf %37, %39 : vector<512x128xf32>
    %c0_28 = arith.constant 0 : index
    %c0_29 = arith.constant 0 : index
    %41 = vector.load %arg13[%c0_28, %c0_29] : memref<1x128xf32, #tpu.memory_space<vmem>>, vector<1x128xf32>
    %42 = vector.broadcast %41 : vector<1x128xf32> to vector<512x128xf32>
    %43 = arith.addf %40, %42 : vector<512x128xf32>
    %cst_30 = arith.constant 0.000000e+00 : f32
    %44 = vector.broadcast %cst_30 : f32 to vector<512x128xf32>
    %45 = arith.cmpf oge, %43, %44 : vector<512x128xf32>
    %cst_31 = arith.constant 0.00999999977 : f32
    %46 = vector.broadcast %cst_31 : f32 to vector<512x128xf32>
    %47 = arith.mulf %46, %43 : vector<512x128xf32>
    %48 = arith.select %45, %43, %47 : vector<512x128xi1>, vector<512x128xf32>
    %c0_32 = arith.constant 0 : index
    %c0_33 = arith.constant 0 : index
    %49 = vector.load %arg14[%c0_32, %c0_33] : memref<128x128xf32, #tpu.memory_space<vmem>>, vector<128x128xf32>
    %cst_34 = arith.constant dense<0.000000e+00> : vector<512x128xf32>
    %50 = tpu.matmul %48, %49, %cst_34 {dimension_numbers = #tpu.dot_dimension_numbers<[1], [0], [0], [1], [0, 0, 1, 1], [], []>} : vector<512x128xf32>, vector<128x128xf32>, vector<512x128xf32> -> vector<512x128xf32>
    %c0_35 = arith.constant 0 : index
    %c0_36 = arith.constant 0 : index
    %51 = vector.load %arg15[%c0_35, %c0_36] : memref<1x128xf32, #tpu.memory_space<vmem>>, vector<1x128xf32>
    %52 = vector.broadcast %51 : vector<1x128xf32> to vector<512x128xf32>
    %53 = arith.addf %50, %52 : vector<512x128xf32>
    %cst_37 = arith.constant 0.000000e+00 : f32
    %54 = vector.broadcast %cst_37 : f32 to vector<512x128xf32>
    %55 = arith.cmpf oge, %53, %54 : vector<512x128xf32>
    %cst_38 = arith.constant 0.00999999977 : f32
    %56 = vector.broadcast %cst_38 : f32 to vector<512x128xf32>
    %57 = arith.mulf %56, %53 : vector<512x128xf32>
    %58 = arith.select %55, %53, %57 : vector<512x128xi1>, vector<512x128xf32>
    %59 = vector.shape_cast %58 : vector<512x128xf32> to vector<32x16x128xf32>
    %cst_39 = arith.constant dense<0xFF800000> : vector<32x128xf32>
    %60 = vector.multi_reduction <maximumf>, %59, %cst_39 [1] : vector<32x16x128xf32> to vector<32x128xf32>
    %61 = vector.shape_cast %60 : vector<32x128xf32> to vector<32x1x128xf32>
    %62 = vector.broadcast %61 : vector<32x1x128xf32> to vector<32x16x128xf32>
    %63 = arith.subf %59, %62 : vector<32x16x128xf32>
    %64 = math.exp %63 : vector<32x16x128xf32>
    %cst_40 = arith.constant dense<0.000000e+00> : vector<32x128xf32>
    %65 = vector.multi_reduction <add>, %64, %cst_40 [1] : vector<32x16x128xf32> to vector<32x128xf32>
    %66 = vector.shape_cast %65 : vector<32x128xf32> to vector<32x1x128xf32>
    %67 = vector.broadcast %66 : vector<32x1x128xf32> to vector<32x16x128xf32>
    %68 = arith.divf %64, %67 : vector<32x16x128xf32>
    %69 = arith.addf %32, %31 : vector<32x16x128xf32>
    %70 = arith.mulf %68, %69 : vector<32x16x128xf32>
    %cst_41 = arith.constant dense<0.000000e+00> : vector<32x128xf32>
    %71 = vector.multi_reduction <add>, %70, %cst_41 [1] : vector<32x16x128xf32> to vector<32x128xf32>
    %c0_42 = arith.constant 0 : index
    %c0_43 = arith.constant 0 : index
    %72 = vector.load %arg16[%c0_42, %c0_43] : memref<32x128xf32, #tpu.memory_space<vmem>>, vector<32x128xf32>
    tpu.vector_store %arg16[%c0_42, %c0_43], %71 {strides = array<i32>} : memref<32x128xf32, #tpu.memory_space<vmem>>, vector<32x128xf32>,
    return
  }
  func.func @transform_0(%arg0: i32) -> (i32, i32) {
    %c0_i32 = arith.constant 0 : i32
    %c0_i32_0 = arith.constant 0 : i32
    return %arg0, %c0_i32 : i32, i32
  }
  func.func @transform_1(%arg0: i32) -> (i32, i32) {
    %c0_i32 = arith.constant 0 : i32
    %c0_i32_0 = arith.constant 0 : i32
    return %arg0, %c0_i32 : i32, i32
  }
  func.func @transform_2(%arg0: i32) -> (i32, i32) {
    %c0_i32 = arith.constant 0 : i32
    %c0_i32_0 = arith.constant 0 : i32
    return %arg0, %c0_i32 : i32, i32
  }
  func.func @transform_3(%arg0: i32) -> (i32, i32) {
    %c0_i32 = arith.constant 0 : i32
    %c0_i32_0 = arith.constant 0 : i32
    %c0_i32_1 = arith.constant 0 : i32
    return %c0_i32, %c0_i32_0 : i32, i32
  }
  func.func @transform_4(%arg0: i32) -> (i32, i32) {
    %c0_i32 = arith.constant 0 : i32
    %c0_i32_0 = arith.constant 0 : i32
    %c0_i32_1 = arith.constant 0 : i32
    return %c0_i32, %c0_i32_0 : i32, i32
  }
  func.func @transform_5(%arg0: i32) -> (i32, i32) {
    %c0_i32 = arith.constant 0 : i32
    %c0_i32_0 = arith.constant 0 : i32
    %c0_i32_1 = arith.constant 0 : i32
    return %c0_i32, %c0_i32_0 : i32, i32
  }
  func.func @transform_6(%arg0: i32) -> (i32, i32) {
    %c0_i32 = arith.constant 0 : i32
    %c0_i32_0 = arith.constant 0 : i32
    %c0_i32_1 = arith.constant 0 : i32
    return %c0_i32, %c0_i32_0 : i32, i32
  }
  func.func @transform_7(%arg0: i32) -> (i32, i32) {
    %c0_i32 = arith.constant 0 : i32
    %c0_i32_0 = arith.constant 0 : i32
    %c0_i32_1 = arith.constant 0 : i32
    return %c0_i32, %c0_i32_0 : i32, i32
  }
  func.func @transform_8(%arg0: i32) -> (i32, i32) {
    %c0_i32 = arith.constant 0 : i32
    %c0_i32_0 = arith.constant 0 : i32
    %c0_i32_1 = arith.constant 0 : i32
    return %c0_i32, %c0_i32_0 : i32, i32
  }
  func.func @transform_9(%arg0: i32) -> (i32, i32) {
    %c0_i32 = arith.constant 0 : i32
    %c0_i32_0 = arith.constant 0 : i32
    %c0_i32_1 = arith.constant 0 : i32
    return %c0_i32, %c0_i32_0 : i32, i32
  }
  func.func @transform_10(%arg0: i32) -> (i32, i32) {
    %c0_i32 = arith.constant 0 : i32
    %c0_i32_0 = arith.constant 0 : i32
    %c0_i32_1 = arith.constant 0 : i32
    return %c0_i32, %c0_i32_0 : i32, i32
  }
  func.func @transform_11(%arg0: i32) -> (i32, i32) {
    %c0_i32 = arith.constant 0 : i32
    %c0_i32_0 = arith.constant 0 : i32
    %c0_i32_1 = arith.constant 0 : i32
    return %c0_i32, %c0_i32_0 : i32, i32
  }
  func.func @transform_12(%arg0: i32) -> (i32, i32) {
    %c0_i32 = arith.constant 0 : i32
    %c0_i32_0 = arith.constant 0 : i32
    %c0_i32_1 = arith.constant 0 : i32
    return %c0_i32, %c0_i32_0 : i32, i32
  }
  func.func @transform_13(%arg0: i32) -> (i32, i32) {
    %c0_i32 = arith.constant 0 : i32
    %c0_i32_0 = arith.constant 0 : i32
    %c0_i32_1 = arith.constant 0 : i32
    return %c0_i32, %c0_i32_0 : i32, i32
  }
  func.func @transform_14(%arg0: i32) -> (i32, i32) {
    %c0_i32 = arith.constant 0 : i32
    %c0_i32_0 = arith.constant 0 : i32
    %c0_i32_1 = arith.constant 0 : i32
    return %c0_i32, %c0_i32_0 : i32, i32
  }
  func.func @transform_15(%arg0: i32) -> (i32, i32) {
    %c0_i32 = arith.constant 0 : i32
    %c0_i32_0 = arith.constant 0 : i32
    return %arg0, %c0_i32 : i32, i32
  }
}

</mosaic_0001>

<bundles_post_ra>
// kernel: tpu_custom_call.1
= control target key start
LH: loop header
LB: loop body
LE: loop exit
PB: predicated region body
PF: predicated region fallthrough
CT: control target
= control target key end

     0   :  { %s9579_s0 = inlined_call_operand.vmem [shape: f32[64,64], index: 0, kind: input, shape index: {}]   ;;  %s9580_s1 = inlined_call_operand.vmem [shape: f32[1024,64], index: 1, kind: input, shape index: {}]   ;;  %s9581_s2 = inlined_call_operand.vmem [shape: f32[1024,4], index: 2, kind: input, shape index: {}]   ;;  %s9582_s3 = inlined_call_operand.vmem [shape: f32[64,128], index: 3, kind: input, shape index: {}]   ;;  %s9583_s4 = inlined_call_operand.vmem [shape: f32[1,128], index: 4, kind: input, shape index: {}]   ;;  %s9584_s5 = inlined_call_operand.vmem [shape: f32[64,256], index: 5, kind: input, shape index: {}]   ;;  %s9585_s6 = inlined_call_operand.vmem [shape: f32[1,256], index: 6, kind: input, shape index: {}]   ;;  %s9586_s7 = inlined_call_operand.vmem [shape: f32[4,64], index: 7, kind: input, shape index: {}]   ;;  %s9587_s8 = inlined_call_operand.vmem [shape: f32[1,64], index: 8, kind: input, shape index: {}]   ;;  %s9588_s9 = inlined_call_operand.vmem [shape: f32[64,128], index: 9, kind: input, shape index: {}]   ;;  %s9589_s10 = inlined_call_operand.vmem [shape: f32[1,128], index: 10, kind: input, shape index: {}]   ;;  %s9590_s11 = inlined_call_operand.vmem [shape: f32[1,128], index: 11, kind: input, shape index: {}]   ;;  %s9591_s12 = inlined_call_operand.vmem [shape: f32[1,128], index: 12, kind: input, shape index: {}]   ;;  %s9592_s13 = inlined_call_operand.vmem [shape: f32[128,128], index: 13, kind: input, shape index: {}]   ;;  %s9593_s14 = inlined_call_operand.vmem [shape: f32[1,128], index: 14, kind: input, shape index: {}]   ;;  %s9594_s15 = inlined_call_operand.hbm [shape: f32[64,128], index: 15, kind: output, shape index: {}]  }
   0x1   :  { %9617 = sst [smem:[#allocation74_spill]] %s9581_s2 }
   0x2   :  { %9618 = sst [smem:[#allocation75_spill]] %s9586_s7 }
   0x3   :  { %20 = vsyncpa [#allocation3], 0 }
   0x4   :  { %22 = vsyncpa [#allocation3 + $0x1], 0  ;;  %s6801_s18 = smov 0   ;;  %s6803_s19 = smov 0  }
   0x5   :  { %s6805_s20 = smov 0   ;;  %s6807_s21 = smov 0  }
   0x6 LB: > { %9619 = sst [smem:[#allocation5_spill]] %s6710_s20  ;;  %s6822_s22 = sadd.s32 4294967295, %s6714_s21   ;;  %s6714_s21 = sphi %s6807_s21, %s9795_s21   ;;  %s6710_s20 = sphi %s6805_s20, %s9797_s20   ;;  %s6706_s19 = sphi %s6803_s19, %s9799_s19   ;;  %s6702_s18 = sphi %s6801_s18, %s9798_s18  }
   0x7   : > { %s5513_s23 = sadd.s32 4294967294, %s6714_s21   ;;  %s6826_s24 = sadd.s32 1, %s6714_s21  }
   0x8   : > { %9620 = sst [smem:[#allocation6_spill]] %s6826_s24  ;;  %s365_s25 = sadd.s32 1, %s6710_s20 }
   0x9   : > { %s362_s26 = ssub.s32 %s6714_s21, %s6826_s24  ;;  %p375_p0 = scmp.ne.s32.totalorder %s6710_s20, %s6706_s19 }
   0xa   : > { %p363_p1 = scmp.eq.s32.totalorder %s362_s26, 0  ;;  %p376_p2 = scmp.eq.s32.totalorder %s6822_s22, 1 }
   0xb   : > { %p381_p3 = scmp.ne.s32.totalorder %s6706_s19, %s6702_s18  ;;  %p382_p4 = scmp.eq.s32.totalorder %s5513_s23, 1 }
   0xc   : > { %s6837_s27 = scalar_select %p363_p1, %s6710_s20, %s365_s25  }
   0xd   : > { %p6839_p5 = por %p376_p2, %p375_p0  ;;  %p6843_p6 = por %p382_p4, %p381_p3 }
   0xe   : > { %9621 = sst [smem:[#allocation7_spill]] %s6837_s27  ;;  %p5516_p7 = scmp.ge.s32.totalorder %s6714_s21, 1 }
   0xf   : > { %s9623_s29 = scalar_select %p6843_p6, 1, 0 }
  0x10   : > { %p463_p8 = scmp.lt.s32.totalorder %s6714_s21, 3 }
  0x11   : > { %9624 = sst [smem:[#allocation8_spill]] %s9623_s29 }
  0x12   : > { %p464_p9 = pnand %p5516_p7, %p463_p8 }
  0x14   : > { %467 = sbr.rel (%p464_p9) target bundleno = 1168 (0x490), region = 80 }
  0x1b   : > { %s9625_s7 = sld [smem:[#allocation75_spill]]  ;;  %vm873_vm0 = vcmask 1043456   ;;  %s5520_s17 = sshll.u32 %s6822_s22, 6  ;;  %vm680_vm1 = vcmask 31744   ;;  %v2047_v1 = vld [vmem:[%s9582_s3] sm:$0xff]  ;;  %v2048_v2 = vld [vmem:[%s9582_s3 + $0x8] sm:$0xff] }
  0x1c   : > { %p528_p10 = scmp.lt.s32.totalorder %s5520_s17, 127  ;;  %v2049_v3 = vld [vmem:[%s9582_s3 + $0x10] sm:$0xff]  ;;  %s9626_s2 = sld [smem:[#allocation74_spill]]  ;;  %v6338_v4 = vpack.c.bf16 %v2048_v2, %v2047_v1  ;;  %v2050_v5 = vld [vmem:[%s9582_s3 + $0x18] sm:$0xff]  ;;  %v2051_v10 = vld [vmem:[%s9582_s3 + $0x20] sm:$0xff]  ;;  %vm1469_vm2 = vcmask 523264  }
  0x1d   : > { %v6342_v9 = vpack.c.bf16 %v2050_v5, %v2049_v3  ;;  %v2052_v11 = vld [vmem:[%s9582_s3 + $0x28] sm:$0xff]  ;;  %v2053_v23 = vld [vmem:[%s9582_s3 + $0x30] sm:$0xff]  ;;  %v2054_v24 = vld [vmem:[%s9582_s3 + $0x38] sm:$0xff]  ;;  %s5518_s30 = sshll.u32 %s6822_s22, 2 }
  0x1e   : > { %s9801_s17 = smov (!%p528_p10, %s5520_s17), 127  ;;  %v6346_v14 = vpack.c.bf16 %v2052_v11, %v2051_v10  ;;  %v6350_v25 = vpack.c.bf16 %v2054_v24, %v2053_v23  ;;  %v2160_v26 = vld [vmem:[%s9584_s5 + $0x8] sm:$0xff]  ;;  %v2162_v27 = vld [vmem:[%s9584_s5 + $0x18] sm:$0xff]  ;;  %v1454_v33 = vld [vmem:[%s9588_s9] sm:$0xff]  ;;  %p522_p11 = scmp.lt.s32.totalorder %s5518_s30, 7 }
  0x1f   : > { %s9599_s23 = sshll.u32 %s9801_s17, 3  ;;  %v6920_v29 = vpack.c.bf16 %v2162_v27, %v2160_v26  ;;  %v1455_v34 = vld [vmem:[%s9588_s9 + $0x8] sm:$0xff]  ;;  %v1456_v38 = vld [vmem:[%s9588_s9 + $0x10] sm:$0xff]  ;;  %v1457_v39 = vld [vmem:[%s9588_s9 + $0x18] sm:$0xff]  ;;  %s9627_s25 = sshll.u32 %s9801_s17, 3 }
  0x20   : > { %v6322_v36 = vpack.c.bf16 %v1455_v34, %v1454_v33  ;;  %v6326_v41 = vpack.c.bf16 %v1457_v39, %v1456_v38  ;;  %v1458_v43 = vld [vmem:[%s9588_s9 + $0x20] sm:$0xff]  ;;  %v1459_v44 = vld [vmem:[%s9588_s9 + $0x28] sm:$0xff]  ;;  %s9803_s30 = smov (!%p522_p11, %s5518_s30), 7  ;;  %s7124_s20 = scalar_lea.vmem %s9580_s1, %s9627_s25 }
  0x21   : > { %v672_v0 = vld [vmem:[%s9625_s7] sm:$0xf]  ;;  %v6330_v46 = vpack.c.bf16 %v1459_v44, %v1458_v43  ;;  %s5519_s16 = sshll.u32 %s9803_s30, 3  ;;  %v2168_v39 = vld [vmem:[%s9584_s5 + $0x48] sm:$0xff]  ;;  %s5732_s30 = sshll.u32 %s6822_s22, 9 }
  0x22   : > { %5962 = vmatprep.subr.msk.mxu0 %vm873_vm0, %v672_v0  ;;  %s6870_s29 = scalar_lea.vmem %s9626_s2, %s9599_s23  ;;  %6323 = vmatprep.subr.bf16.mxu1 %v6322_v36  ;;  %s525_s7 = scalar_lea.vmem %s9579_s0, %s5519_s16  ;;  %v2167_v44 = vld [vmem:[%s9584_s5 + $0x40] sm:$0xff] }
  0x23   : > { %5963 = vmatpush3.msk.msra.mxu0 %vm873_vm0, %v672_v0  ;;  %v608_v6 = vld [vmem:[%s6870_s29] sm:$0xff]  ;;  %v609_v7 = vld [vmem:[%s6870_s29 + $0x8] sm:$0xff]  ;;  %v610_v8 = vld [vmem:[%s6870_s29 + $0x10] sm:$0xff]  ;;  %6325 = vmatpush3.bf16.msra.mxu1 %v6322_v36  ;;  %s518_s2 = sand.u32 1, %s6706_s19   ;;  %s9530_s26 = scalar_lea.hbm %s9594_s15, %s5732_s30 }
  0x24   : > { %5964 = vmatprep.mubr.msk.f32.mxu0 %vm680_vm1, %v608_v6  ;;  %6339 = vmatprep.subr.bf16.mxu0 %v6338_v4  ;;  %v611_v12 = vld [vmem:[%s6870_s29 + $0x18] sm:$0xff]  ;;  %v612_v13 = vld [vmem:[%s6870_s29 + $0x20] sm:$0xff]  ;;  %v613_v15 = vld [vmem:[%s6870_s29 + $0x28] sm:$0xff]  ;;  %s5517_s23 = sshll.u32 %s518_s2, 5  ;;  %s6718_s17 = smov [#allocation2]  }
  0x25   : > { %5965 = vmatmul.mubr.msk.f32.vlgmr.msra.gmra.mrb[0].mxu0 %vm680_vm1, %v609_v7  ;;  %v614_v16 = vld [vmem:[%s6870_s29 + $0x30] sm:$0xff]  ;;  %v615_v17 = vld [vmem:[%s6870_s29 + $0x38] sm:$0xff]  ;;  %v616_v18 = vld [vmem:[%s6870_s29 + $0x40] sm:$0xff]  ;;  %6327 = vmatprep.subr.bf16.mxu1 %v6326_v41  ;;  %s9211_s24 = scalar_lea.vmem [#allocation2], %s5517_s23  ;;  %s6656_s23 = sshll.u32 %s6718_s17, 4  ;;  %s6657_s23 = int_to_ptr.vmem [resolvable:$false] %s6656_s23 }
  0x26   : > { %5967 = vmatprep.mubr.msk.f32.mxu0 %vm680_vm1, %v610_v8  ;;  %6341 = vmatpush3.bf16.msra.mxu0 %v6338_v4  ;;  %v617_v19 = vld [vmem:[%s6870_s29 + $0x48] sm:$0xff]  ;;  %v618_v20 = vld [vmem:[%s6870_s29 + $0x50] sm:$0xff]  ;;  %v619_v21 = vld [vmem:[%s6870_s29 + $0x58] sm:$0xff]  ;;  %s5427_s16 = sshll.u32 %s9211_s24, 4  ;;  %s9532_s16 = int_to_ptr.vmem [resolvable:$true] %s5427_s16 }
  0x27   : > { %6343 = vmatprep.subr.bf16.mxu0 %v6342_v9  ;;  %v620_v22 = vld [vmem:[%s6870_s29 + $0x60] sm:$0xff]  ;;  %v621_v28 = vld [vmem:[%s6870_s29 + $0x68] sm:$0xff]  ;;  %v622_v30 = vld [vmem:[%s6870_s29 + $0x70] sm:$0xff]  ;;  %6329 = vmatpush3.bf16.msra.mxu1 %v6326_v41  ;;  %s6652_s22 = scalar_lea.vmem %s9532_s16, 512  ;;  %p6659_p1 = scmp.lt.s32.totalorder %s9532_s16, %s6657_s23 }
  0x28   : > { %v623_v31 = vld [vmem:[%s6870_s29 + $0x78] sm:$0xff]  ;;  %v624_v32 = vld [vmem:[%s6870_s29 + $0x80] sm:$0xff]  ;;  %v625_v35 = vld [vmem:[%s6870_s29 + $0x88] sm:$0xff]  ;;  %6331 = vmatprep.subr.bf16.mxu1 %v6330_v46  ;;  %p6653_p12 = scmp.ne.s32.totalorder %s9532_s16, %s6652_s22 }
  0x29   : > { %5968 = vmatmul.mubr.msk.f32.gmra.mrb[2].mxu0 %vm680_vm1, %v611_v12  ;;  %v626_v37 = vld [vmem:[%s6870_s29 + $0x90] sm:$0xff]  ;;  %v627_v40 = vld [vmem:[%s6870_s29 + $0x98] sm:$0xff]  ;;  %v628_v42 = vld [vmem:[%s6870_s29 + $0xa0] sm:$0xff] }
  0x2a   : > { %5970 = vmatprep.mubr.msk.f32.mxu0 %vm680_vm1, %v612_v13  ;;  %6345 = vmatpush3.bf16.msra.mxu0 %v6342_v9  ;;  %v629_v45 = vld [vmem:[%s6870_s29 + $0xa8] sm:$0xff]  ;;  %v630_v47 = vld [vmem:[%s6870_s29 + $0xb0] sm:$0xff]  ;;  %v631_v48 = vld [vmem:[%s6870_s29 + $0xb8] sm:$0xff]  ;;  %p6654_p13 = pnand %p6653_p12, %p6839_p5 }
  0x2b   : > { %6347 = vmatprep.subr.bf16.mxu0 %v6346_v14  ;;  %6333 = vmatpush3.bf16.msra.mxu1 %v6330_v46  ;;  %v632_v49 = vld [vmem:[%s6870_s29 + $0xc0] sm:$0xff]  ;;  %v633_v50 = vld [vmem:[%s6870_s29 + $0xc8] sm:$0xff]  ;;  %v634_v51 = vld [vmem:[%s6870_s29 + $0xd0] sm:$0xff] }
  0x2c   : > { %v635_v52 = vld [vmem:[%s6870_s29 + $0xd8] sm:$0xff]  ;;  %v636_v53 = vld [vmem:[%s6870_s29 + $0xe0] sm:$0xff]  ;;  %v637_v54 = vld [vmem:[%s6870_s29 + $0xe8] sm:$0xff]  ;;  %p6655_p0 = pneg %p6654_p13 }
  0x2d   : > { %5971 = vmatmul.mubr.msk.f32.gmra.mrb[4].mxu0 %vm680_vm1, %v613_v15  ;;  %v638_v55 = vld [vmem:[%s6870_s29 + $0xf0] sm:$0xff]  ;;  %v639_v56 = vld [vmem:[%s6870_s29 + $0xf8] sm:$0xff]  ;;  %v640_v57 = vld [vmem:[%s6870_s29 + $0x100] sm:$0xff] }
  0x2e   : > { %5973 = vmatprep.mubr.msk.f32.mxu0 %vm680_vm1, %v614_v16  ;;  %6349 = vmatpush3.bf16.msra.mxu0 %v6346_v14  ;;  %v641_v58 = vld [vmem:[%s6870_s29 + $0x108] sm:$0xff]  ;;  %v642_v59 = vld [vmem:[%s6870_s29 + $0x110] sm:$0xff]  ;;  %v643_v60 = vld [vmem:[%s6870_s29 + $0x118] sm:$0xff] }
  0x2f   : > { %6351 = vmatprep.subr.bf16.mxu0 %v6350_v25  ;;  %v644_v61 = vld [vmem:[%s6870_s29 + $0x120] sm:$0xff]  ;;  %v645_v62 = vld [vmem:[%s6870_s29 + $0x128] sm:$0xff]  ;;  %v646_v63 = vld [vmem:[%s6870_s29 + $0x130] sm:$0xff] }
  0x30   : > { %v647_v0 = vld [vmem:[%s6870_s29 + $0x138] sm:$0xff]  ;;  %v648_v1 = vld [vmem:[%s6870_s29 + $0x140] sm:$0xff]  ;;  %v649_v2 = vld [vmem:[%s6870_s29 + $0x148] sm:$0xff] }
  0x31   : > { %5974 = vmatmul.mubr.msk.f32.gmra.mrb[6].mxu0 %vm680_vm1, %v615_v17  ;;  %v650_v3 = vld [vmem:[%s6870_s29 + $0x150] sm:$0xff]  ;;  %v651_v4 = vld [vmem:[%s6870_s29 + $0x158] sm:$0xff]  ;;  %v652_v5 = vld [vmem:[%s6870_s29 + $0x160] sm:$0xff] }
  0x32   : > { %5976 = vmatprep.mubr.msk.f32.mxu0 %vm680_vm1, %v616_v18  ;;  %6353 = vmatpush3.bf16.msra.mxu0 %v6350_v25  ;;  %v1460_v6 = vld [vmem:[%s9588_s9 + $0x30] sm:$0xff]  ;;  %v1461_v7 = vld [vmem:[%s9588_s9 + $0x38] sm:$0xff]  ;;  %v653_v8 = vld [vmem:[%s6870_s29 + $0x168] sm:$0xff] }
  0x33   : > { %6355 = vmatprep.subr.bf16.mxu0 %v6920_v29  ;;  %v6334_v9 = vpack.c.bf16 %v1461_v7, %v1460_v6  ;;  %v654_v10 = vld [vmem:[%s6870_s29 + $0x170] sm:$0xff]  ;;  %v655_v11 = vld [vmem:[%s6870_s29 + $0x178] sm:$0xff]  ;;  %v656_v12 = vld [vmem:[%s6870_s29 + $0x180] sm:$0xff] }
  0x34   : > { %v657_v13 = vld [vmem:[%s6870_s29 + $0x188] sm:$0xff]  ;;  %v658_v14 = vld [vmem:[%s6870_s29 + $0x190] sm:$0xff]  ;;  %v659_v15 = vld [vmem:[%s6870_s29 + $0x198] sm:$0xff] }
  0x35   : > { %5977 = vmatmul.mubr.msk.f32.gmra.mrb[8].mxu0 %vm680_vm1, %v617_v19  ;;  %6335 = vmatprep.subr.bf16.mxu1 %v6334_v9  ;;  %v660_v16 = vld [vmem:[%s6870_s29 + $0x1a0] sm:$0xff]  ;;  %v661_v17 = vld [vmem:[%s6870_s29 + $0x1a8] sm:$0xff]  ;;  %v662_v18 = vld [vmem:[%s6870_s29 + $0x1b0] sm:$0xff] }
  0x36   : > { %5979 = vmatprep.mubr.msk.f32.mxu0 %vm680_vm1, %v618_v20  ;;  %6337 = vmatpush3.bf16.msra.mxu1 %v6334_v9  ;;  %v663_v19 = vld [vmem:[%s6870_s29 + $0x1b8] sm:$0xff]  ;;  %v664_v20 = vld [vmem:[%s6870_s29 + $0x1c0] sm:$0xff]  ;;  %v669_v25 = vld [vmem:[%s6870_s29 + $0x1e8] sm:$0xff] }
  0x37   : > { %6402 = vmatprep.subr.bf16.mxu1 %v6920_v29  ;;  %v667_v23 = vld [vmem:[%s6870_s29 + $0x1d8] sm:$0xff]  ;;  %v668_v24 = vld [vmem:[%s6870_s29 + $0x1e0] sm:$0xff]  ;;  %v670_v26 = vld [vmem:[%s6870_s29 + $0x1f0] sm:$0xff] }
  0x38   : > { %v671_v27 = vld [vmem:[%s6870_s29 + $0x1f8] sm:$0xff]  ;;  %v2159_v29 = vld [vmem:[%s9584_s5] sm:$0xff]  ;;  %v541_v33 = vld [vmem:[%s525_s7 + $0x8] sm:$0xff] }
  0x39   : > { %5980 = vmatmul.mubr.msk.f32.gmra.mrb[10].mxu0 %vm680_vm1, %v619_v21  ;;  %v665_v21 = vld [vmem:[%s6870_s29 + $0x1c8] sm:$0xff]  ;;  %v2163_v36 = vld [vmem:[%s9584_s5 + $0x20] sm:$0xff]  ;;  %v542_v38 = vld [vmem:[%s525_s7 + $0x10] sm:$0xff] }
  0x3a   : > { %5982 = vmatprep.mubr.msk.f32.mxu0 %vm680_vm1, %v620_v22  ;;  %v666_v22 = vld [vmem:[%s6870_s29 + $0x1d0] sm:$0xff]  ;;  %v2172_v46 = vld [vmem:[%s9584_s5 + $0x68] sm:$0xff] }
  0x3d   : > { %5983 = vmatmul.mubr.msk.f32.gmra.mrb[12].mxu0 %vm680_vm1, %v621_v28  ;;  %v540_v28 = vld [vmem:[%s525_s7] sm:$0xff] }
  0x3e   : > { %5985 = vmatprep.mubr.msk.f32.mxu0 %vm680_vm1, %v622_v30  ;;  %v2161_v30 = vld [vmem:[%s9584_s5 + $0x10] sm:$0xff] }
  0x3f   : > { %v7066_v34 = vpack.c.bf16 %v2161_v30, %v2159_v29 }
  0x41   : > { %5986 = vmatmul.mubr.msk.f32.gmra.mrb[14].mxu0 %vm680_vm1, %v623_v31  ;;  %v2164_v31 = vld [vmem:[%s9584_s5 + $0x28] sm:$0xff] }
  0x42   : > { %5988 = vmatprep.mubr.msk.f32.mxu0 %vm680_vm1, %v624_v32  ;;  %v2166_v32 = vld [vmem:[%s9584_s5 + $0x38] sm:$0xff] }
  0x45   : > { %5989 = vmatmul.mubr.msk.f32.gmra.mrb[16].mxu0 %vm680_vm1, %v625_v35  ;;  %v7068_v35 = vpack.c.bf16 %v2166_v32, %v2164_v31 }
  0x46   : > { %5991 = vmatprep.mubr.msk.f32.mxu0 %vm680_vm1, %v626_v37  ;;  %v2165_v37 = vld [vmem:[%s9584_s5 + $0x30] sm:$0xff] }
  0x47   : > { %v7084_v41 = vpack.c.bf16 %v2165_v37, %v2163_v36 }
  0x49   : > { %5992 = vmatmul.mubr.msk.f32.gmra.mrb[18].mxu0 %vm680_vm1, %v627_v40  ;;  %v2170_v40 = vld [vmem:[%s9584_s5 + $0x58] sm:$0xff] }
  0x4a   : > { %5994 = vmatprep.mubr.msk.f32.mxu0 %vm680_vm1, %v628_v42  ;;  %v543_v42 = vld [vmem:[%s525_s7 + $0x18] sm:$0xff]  ;;  %v7088_v43 = vpack.c.bf16 %v2170_v40, %v2168_v39  ;;  %s6658_s7 = scalar_lea.vmem %s6657_s23, 1024 }
  0x4b   : > { %p6660_p2 = scmp.lt.s32.totalorder %s6658_s7, %s6652_s22 }
  0x4d   : > { %5995 = vmatmul.mubr.msk.f32.gmra.mrb[20].mxu0 %vm680_vm1, %v629_v45  ;;  %v2169_v45 = vld [vmem:[%s9584_s5 + $0x50] sm:$0xff]  ;;  %p6661_p3 = por %p6660_p2, %p6659_p1 }
  0x4e   : > { %5997 = vmatprep.mubr.msk.f32.mxu0 %vm680_vm1, %v630_v47  ;;  %v2174_v47 = vld [vmem:[%s9584_s5 + $0x78] sm:$0xff] }
  0x4f   : > { %p6662_p4 = pnand %p6661_p3, %p6655_p0 }
  0x51   : > { %5998 = vmatmul.mubr.msk.f32.gmra.mrb[22].mxu0 %vm680_vm1, %v631_v48  ;;  %v7104_v48 = vpack.c.bf16 %v2169_v45, %v2167_v44 }
  0x52   : > { %6000 = vmatprep.mubr.msk.f32.mxu0 %vm680_vm1, %v632_v49  ;;  %v6716_v49 = vmov 0.0  }
  0x55   : > { %6001 = vmatmul.mubr.msk.f32.gmra.mrb[24].mxu0 %vm680_vm1, %v633_v50  ;;  %v7108_v50 = vpack.c.bf16 %v2174_v47, %v2172_v46 }
  0x56   : > { %6003 = vmatprep.mubr.msk.f32.mxu0 %vm680_vm1, %v634_v51  ;;  %v2171_v51 = vld [vmem:[%s9584_s5 + $0x60] sm:$0xff] }
  0x59   : > { %6004 = vmatmul.mubr.msk.f32.gmra.mrb[26].mxu0 %vm680_vm1, %v635_v52  ;;  %v2173_v52 = vld [vmem:[%s9584_s5 + $0x70] sm:$0xff] }
  0x5a   : > { %6006 = vmatprep.mubr.msk.f32.mxu0 %vm680_vm1, %v636_v53  ;;  %v7117_v53 = vpack.c.bf16 %v2173_v52, %v2171_v51 }
  0x5d   : > { %6007 = vmatmul.mubr.msk.f32.gmra.mrb[28].mxu0 %vm680_vm1, %v637_v54  ;;  %v544_v54 = vld [vmem:[%s7124_s20] sm:$0xff] }
  0x5e   : > { %6009 = vmatprep.mubr.msk.f32.mxu0 %vm680_vm1, %v638_v55  ;;  %v545_v55 = vld [vmem:[%s7124_s20 + $0x8] sm:$0xff] }
  0x61   : > { %6010 = vmatmul.mubr.msk.f32.gmra.mrb[30].mxu0 %vm680_vm1, %v639_v56  ;;  %v546_v56 = vld [vmem:[%s7124_s20 + $0x10] sm:$0xff] }
  0x62   : > { %6012 = vmatprep.mubr.msk.f32.mxu0 %vm680_vm1, %v640_v57  ;;  %v547_v57 = vld [vmem:[%s7124_s20 + $0x18] sm:$0xff] }
  0x65   : > { %6013 = vmatmul.mubr.msk.f32.gmra.mrb[32].mxu0 %vm680_vm1, %v641_v58  ;;  %v548_v58 = vld [vmem:[%s7124_s20 + $0x20] sm:$0xff] }
  0x66   : > { %6015 = vmatprep.mubr.msk.f32.mxu0 %vm680_vm1, %v642_v59  ;;  %v549_v59 = vld [vmem:[%s7124_s20 + $0x28] sm:$0xff] }
  0x69   : > { %6016 = vmatmul.mubr.msk.f32.gmra.mrb[34].mxu0 %vm680_vm1, %v643_v60  ;;  %v550_v60 = vld [vmem:[%s7124_s20 + $0x30] sm:$0xff] }
  0x6a   : > { %6018 = vmatprep.mubr.msk.f32.mxu0 %vm680_vm1, %v644_v61  ;;  %v551_v61 = vld [vmem:[%s7124_s20 + $0x38] sm:$0xff] }
  0x6d   : > { %6019 = vmatmul.mubr.msk.f32.gmra.mrb[36].mxu0 %vm680_vm1, %v645_v62  ;;  %v552_v62 = vld [vmem:[%s7124_s20 + $0x40] sm:$0xff] }
  0x6e   : > { %6021 = vmatprep.mubr.msk.f32.mxu0 %vm680_vm1, %v646_v63  ;;  %v553_v63 = vld [vmem:[%s7124_s20 + $0x48] sm:$0xff] }
  0x71   : > { %6022 = vmatmul.mubr.msk.f32.gmra.mrb[38].mxu0 %vm680_vm1, %v647_v0  ;;  %v554_v0 = vld [vmem:[%s7124_s20 + $0x50] sm:$0xff] }
  0x72   : > { %6024 = vmatprep.mubr.msk.f32.mxu0 %vm680_vm1, %v648_v1  ;;  %v555_v1 = vld [vmem:[%s7124_s20 + $0x58] sm:$0xff] }
  0x75   : > { %6025 = vmatmul.mubr.msk.f32.gmra.mrb[40].mxu0 %vm680_vm1, %v649_v2  ;;  %v556_v2 = vld [vmem:[%s7124_s20 + $0x60] sm:$0xff] }
  0x76   : > { %6027 = vmatprep.mubr.msk.f32.mxu0 %vm680_vm1, %v650_v3  ;;  %v557_v3 = vld [vmem:[%s7124_s20 + $0x68] sm:$0xff] }
  0x79   : > { %6028 = vmatmul.mubr.msk.f32.gmra.mrb[42].mxu0 %vm680_vm1, %v651_v4  ;;  %v558_v4 = vld [vmem:[%s7124_s20 + $0x70] sm:$0xff] }
  0x7a   : > { %6030 = vmatprep.mubr.msk.f32.mxu0 %vm680_vm1, %v652_v5  ;;  %v7175_v5 = vld [vmem:[%s9587_s8] ss:$0 sm:$0xff] }
  0x7d   : > { %6031 = vmatmul.mubr.msk.f32.gmra.mrb[44].mxu0 %vm680_vm1, %v653_v8 }
  0x7e   : > { %6033 = vmatprep.mubr.msk.f32.mxu0 %vm680_vm1, %v654_v10 }
  0x81   : > { %6034 = vmatmul.mubr.msk.f32.gmra.mrb[46].mxu0 %vm680_vm1, %v655_v11 }
  0x82   : > { %6036 = vmatprep.mubr.msk.f32.mxu0 %vm680_vm1, %v656_v12 }
  0x85   : > { %6037 = vmatmul.mubr.msk.f32.gmra.mrb[48].mxu0 %vm680_vm1, %v657_v13 }
  0x86   : > { %6039 = vmatprep.mubr.msk.f32.mxu0 %vm680_vm1, %v658_v14 }
  0x89   : > { %6040 = vmatmul.mubr.msk.f32.gmra.mrb[50].mxu0 %vm680_vm1, %v659_v15 }
  0x8a   : > { %6042 = vmatprep.mubr.msk.f32.mxu0 %vm680_vm1, %v660_v16 }
  0x8d   : > { %6043 = vmatmul.mubr.msk.f32.gmra.mrb[52].mxu0 %vm680_vm1, %v661_v17 }
  0x8e   : > { %6045 = vmatprep.mubr.msk.f32.mxu0 %vm680_vm1, %v662_v18 }
  0x91   : > { %6046 = vmatmul.mubr.msk.f32.gmra.mrb[54].mxu0 %vm680_vm1, %v663_v19 }
  0x92   : > { %6048 = vmatprep.mubr.msk.f32.mxu0 %vm680_vm1, %v664_v20 }
  0x95   : > { %6049 = vmatmul.mubr.msk.f32.gmra.mrb[56].mxu0 %vm680_vm1, %v665_v21 }
  0x96   : > { %6051 = vmatprep.mubr.msk.f32.mxu0 %vm680_vm1, %v666_v22 }
  0x99   : > { %6052 = vmatmul.mubr.msk.f32.gmra.mrb[58].mxu0 %vm680_vm1, %v667_v23 }
  0x9a   : > { %6054 = vmatprep.mubr.msk.f32.mxu0 %vm680_vm1, %v668_v24 }
  0x9d   : > { %6055 = vmatmul.mubr.msk.f32.gmra.mrb[60].mxu0 %vm680_vm1, %v669_v25 }
  0x9e   : > { %6057 = vmatprep.mubr.msk.f32.mxu0 %vm680_vm1, %v670_v26 }
  0xa1   : > { %6058 = vmatmul.mubr.msk.f32.gmra.mrb[62].mxu0 %vm680_vm1, %v671_v27 }
  0xa2   : > { %6188 = vmatprep.mubr.msk.f32.mxu0 %vm1469_vm2, %v540_v28 }
  0xa5   : > { %6189 = vmatmul.mubr.msk.f32.vlgmr.msra.gmra.mrb[64].mxu0 %vm1469_vm2, %v541_v33 }
  0xa6   : > { %6357 = vmatpush1.bf16.msra.mxu0 %v7066_v34  ;;  %6191 = vmatprep.mubr.msk.f32.mxu0 %vm1469_vm2, %v542_v38 }
  0xa7   : > { %6359 = vmatprep.subr.bf16.mxu0 %v7068_v35 }
  0xa9   : > { %6192 = vmatmul.mubr.msk.f32.gmra.mrb[66].mxu0 %vm1469_vm2, %v543_v42 }
  0xaa   : > { %6361 = vmatpush1.bf16.msra.mxu0 %v7084_v41  ;;  %2443 = vmatprep.mubr.f32.mxu0 %v6716_v49 }
  0xab   : > { %6363 = vmatprep.subr.bf16.mxu0 %v7088_v43 }
  0xae   : > { %6365 = vmatpush1.bf16.msra.mxu0 %v7104_v48 }
  0xaf   : > { %6367 = vmatprep.subr.bf16.mxu0 %v7108_v50 }
  0xb2   : > { %6369 = vmatpush1.bf16.msra.mxu0 %v7117_v53 }
  0xb5   : > { %5660 = vmatmul.mubr.msk.f32.vlgmr.msra.gmra.mrb[68].mxu0 %vm1469_vm2, %v544_v54 }
  0xb6   : > { %2449 = vmatprep.mubr.f32.mxu0 %v6716_v49 }
  0xb9   : > { %5661 = vmatmul.mubr.msk.f32.gmra.mrb[70].mxu0 %vm1469_vm2, %v545_v55 }
  0xba   : > { %2455 = vmatprep.mubr.f32.mxu0 %v6716_v49 }
  0xbd   : > { %5662 = vmatmul.mubr.msk.f32.gmra.mrb[72].mxu0 %vm1469_vm2, %v546_v56 }
  0xbe   : > { %2461 = vmatprep.mubr.f32.mxu0 %v6716_v49 }
  0xc1   : > { %5663 = vmatmul.mubr.msk.f32.gmra.mrb[74].mxu0 %vm1469_vm2, %v547_v57 }
  0xc2   : > { %2467 = vmatprep.mubr.f32.mxu0 %v6716_v49 }
  0xc5   : > { %5664 = vmatmul.mubr.msk.f32.gmra.mrb[76].mxu0 %vm1469_vm2, %v548_v58 }
  0xc6   : > { %2473 = vmatprep.mubr.f32.mxu0 %v6716_v49 }
  0xc9   : > { %5665 = vmatmul.mubr.msk.f32.gmra.mrb[78].mxu0 %vm1469_vm2, %v549_v59 }
  0xca   : > { %2479 = vmatprep.mubr.f32.mxu0 %v6716_v49 }
  0xcd   : > { %5666 = vmatmul.mubr.msk.f32.gmra.mrb[80].mxu0 %vm1469_vm2, %v550_v60 }
  0xce   : > { %2485 = vmatprep.mubr.f32.mxu0 %v6716_v49 }
  0xd1   : > { %5667 = vmatmul.mubr.msk.f32.gmra.mrb[82].mxu0 %vm1469_vm2, %v551_v61 }
  0xd2   : > { %2491 = vmatprep.mubr.f32.mxu0 %v6716_v49 }
  0xd5   : > { %5668 = vmatmul.mubr.msk.f32.gmra.mrb[84].mxu0 %vm1469_vm2, %v552_v62 }
  0xd6   : > { %2497 = vmatprep.mubr.f32.mxu0 %v6716_v49 }
  0xd9   : > { %5669 = vmatmul.mubr.msk.f32.gmra.mrb[86].mxu0 %vm1469_vm2, %v553_v63 }
  0xda   : > { %2503 = vmatprep.mubr.f32.mxu0 %v6716_v49 }
  0xdd   : > { %5670 = vmatmul.mubr.msk.f32.gmra.mrb[88].mxu0 %vm1469_vm2, %v554_v0 }
  0xde   : > { %2509 = vmatprep.mubr.f32.mxu0 %v6716_v49 }
  0xe1   : > { %5671 = vmatmul.mubr.msk.f32.gmra.mrb[90].mxu0 %vm1469_vm2, %v555_v1 }
  0xe2   : > { %2515 = vmatprep.mubr.f32.mxu0 %v6716_v49 }
  0xe5   : > { %5672 = vmatmul.mubr.msk.f32.gmra.mrb[92].mxu0 %vm1469_vm2, %v556_v2 }
  0xe6   : > { %2521 = vmatprep.mubr.f32.mxu0 %v6716_v49 }
  0xe9   : > { %5673 = vmatmul.mubr.msk.f32.gmra.mrb[94].mxu0 %vm1469_vm2, %v557_v3 }
  0xea   : > { %2527 = vmatprep.mubr.f32.mxu0 %v6716_v49 }
  0xed   : > { %5674 = vmatmul.mubr.msk.f32.gmra.mrb[96].mxu0 %vm1469_vm2, %v558_v4 }
  0xf8   : > { %v5966_v6 = vpop.f32.mrb[0].mxu0 }
  0xf9   : > { %v949_v7 = vadd.f32 %v5966_v6, %v7175_v5  ;;  %v943_v8 = vpop.f32.mrb[1].mxu0 }
  0xfa   : > { %v944_v9 = vadd.f32 %v7175_v5, %v943_v8 }
  0xfb   : > { %v1327_v10 = vmul.f32 0.01, %v949_v7  ;;  %vm1263_vm3 = vcmp.ge.f32.partialorder %v949_v7, 0.0 }
  0xfc   : > { %v5969_v11 = vpop.f32.mrb[2].mxu0  ;;  %vm1262_vm4 = vcmp.ge.f32.partialorder %v944_v9, 0.0  ;;  %v1326_v12 = vmul.f32 0.01, %v944_v9 }
  0xfd   : > { %v959_v13 = vadd.f32 %v5969_v11, %v7175_v5  ;;  %v953_v14 = vpop.f32.mrb[3].mxu0  ;;  %v1391_v18 = vsel %vm1263_vm3, %v949_v7, %v1327_v10 }
  0xfe   : > { %v954_v15 = vadd.f32 %v7175_v5, %v953_v14  ;;  %v1390_v16 = vsel %vm1262_vm4, %v944_v9, %v1326_v12 }
  0xff   : > { %v1329_v17 = vmul.f32 0.01, %v959_v13  ;;  %6076 = vmatprep.mubr.msk.f32.mxu1 %vm1469_vm2, %v1390_v16  ;;  %vm1265_vm5 = vcmp.ge.f32.partialorder %v959_v13, 0.0 }
 0x100   : > { %vm1264_vm6 = vcmp.ge.f32.partialorder %v954_v15, 0.0  ;;  %v1328_v19 = vmul.f32 0.01, %v954_v15  ;;  %v5972_v20 = vpop.f32.mrb[4].mxu0  ;;  %6077 = vmatmul.mubr.msk.f32.vlgmr.msra.gmra.mrb[0].mxu1 %vm1469_vm2, %v1391_v18 }
 0x101   : > { %v969_v21 = vadd.f32 %v5972_v20, %v7175_v5  ;;  %6406 = vmatpush1.bf16.msra.mxu1 %v7066_v34  ;;  %v963_v22 = vpop.f32.mrb[5].mxu0  ;;  %v1393_v26 = vsel %vm1265_vm5, %v959_v13, %v1329_v17 }
 0x102   : > { %v964_v23 = vadd.f32 %v7175_v5, %v963_v22  ;;  %v1392_v24 = vsel %vm1264_vm6, %v954_v15, %v1328_v19  ;;  %6403 = vmatprep.subr.bf16.mxu1 %v7068_v35 }
 0x103   : > { %v1331_v25 = vmul.f32 0.01, %v969_v21  ;;  %6079 = vmatprep.mubr.msk.f32.mxu1 %vm1469_vm2, %v1392_v24  ;;  %vm1267_vm7 = vcmp.ge.f32.partialorder %v969_v21, 0.0 }
 0x104   : > { %vm1266_vm8 = vcmp.ge.f32.partialorder %v964_v23, 0.0  ;;  %v1330_v27 = vmul.f32 0.01, %v964_v23  ;;  %v5975_v28 = vpop.f32.mrb[6].mxu0  ;;  %6080 = vmatmul.mubr.msk.f32.gmra.mrb[2].mxu1 %vm1469_vm2, %v1393_v26 }
 0x105   : > { %v979_v29 = vadd.f32 %v5975_v28, %v7175_v5  ;;  %v973_v30 = vpop.f32.mrb[7].mxu0  ;;  %6407 = vmatpush1.bf16.msra.mxu1 %v7084_v41  ;;  %v1395_v34 = vsel %vm1267_vm7, %v969_v21, %v1331_v25 }
 0x106   : > { %v974_v31 = vadd.f32 %v7175_v5, %v973_v30  ;;  %v1394_v32 = vsel %vm1266_vm8, %v964_v23, %v1330_v27  ;;  %6404 = vmatprep.subr.bf16.mxu1 %v7088_v43 }
 0x107   : > { %v1333_v33 = vmul.f32 0.01, %v979_v29  ;;  %6082 = vmatprep.mubr.msk.f32.mxu1 %vm1469_vm2, %v1394_v32  ;;  %vm1269_vm9 = vcmp.ge.f32.partialorder %v979_v29, 0.0 }
 0x108   : > { %vm1268_vm10 = vcmp.ge.f32.partialorder %v974_v31, 0.0  ;;  %v1332_v35 = vmul.f32 0.01, %v974_v31  ;;  %v5978_v36 = vpop.f32.mrb[8].mxu0  ;;  %6083 = vmatmul.mubr.msk.f32.gmra.mrb[4].mxu1 %vm1469_vm2, %v1395_v34 }
 0x109   : > { %v989_v37 = vadd.f32 %v5978_v36, %v7175_v5  ;;  %v983_v38 = vpop.f32.mrb[9].mxu0  ;;  %6408 = vmatpush1.bf16.msra.mxu1 %v7104_v48  ;;  %v1397_v42 = vsel %vm1269_vm9, %v979_v29, %v1333_v33 }
 0x10a   : > { %v984_v39 = vadd.f32 %v7175_v5, %v983_v38  ;;  %v1396_v40 = vsel %vm1268_vm10, %v974_v31, %v1332_v35  ;;  %6405 = vmatprep.subr.bf16.mxu1 %v7108_v50 }
 0x10b   : > { %v1335_v41 = vmul.f32 0.01, %v989_v37  ;;  %6085 = vmatprep.mubr.msk.f32.mxu1 %vm1469_vm2, %v1396_v40  ;;  %vm1271_vm11 = vcmp.ge.f32.partialorder %v989_v37, 0.0 }
 0x10c   : > { %vm1270_vm12 = vcmp.ge.f32.partialorder %v984_v39, 0.0  ;;  %v1334_v43 = vmul.f32 0.01, %v984_v39  ;;  %v5981_v44 = vpop.f32.mrb[10].mxu0  ;;  %6086 = vmatmul.mubr.msk.f32.gmra.mrb[6].mxu1 %vm1469_vm2, %v1397_v42 }
 0x10d   : > { %v999_v45 = vadd.f32 %v5981_v44, %v7175_v5  ;;  %v993_v46 = vpop.f32.mrb[11].mxu0  ;;  %6409 = vmatpush1.bf16.msra.mxu1 %v7117_v53  ;;  %v1399_v50 = vsel %vm1271_vm11, %v989_v37, %v1335_v41 }
 0x10e   : > { %v994_v47 = vadd.f32 %v7175_v5, %v993_v46  ;;  %v1398_v48 = vsel %vm1270_vm12, %v984_v39, %v1334_v43 }
 0x10f   : > { %v1337_v51 = vmul.f32 0.01, %v999_v45  ;;  %6088 = vmatprep.mubr.msk.f32.mxu1 %vm1469_vm2, %v1398_v48  ;;  %vm1273_vm13 = vcmp.ge.f32.partialorder %v999_v45, 0.0 }
 0x110   : > { %vm1272_vm14 = vcmp.ge.f32.partialorder %v994_v47, 0.0  ;;  %v1336_v52 = vmul.f32 0.01, %v994_v47  ;;  %v5984_v54 = vpop.f32.mrb[12].mxu0  ;;  %6089 = vmatmul.mubr.msk.f32.gmra.mrb[8].mxu1 %vm1469_vm2, %v1399_v50 }
 0x111   : > { %v1009_v55 = vadd.f32 %v5984_v54, %v7175_v5  ;;  %v1003_v56 = vpop.f32.mrb[13].mxu0  ;;  %v1401_v59 = vsel %vm1273_vm13, %v999_v45, %v1337_v51 }
 0x112   : > { %v1004_v57 = vadd.f32 %v7175_v5, %v1003_v56  ;;  %v1400_v58 = vsel %vm1272_vm14, %v994_v47, %v1336_v52 }
 0x113   : > { %v1339_v53 = vmul.f32 0.01, %v1009_v55  ;;  %6091 = vmatprep.mubr.msk.f32.mxu1 %vm1469_vm2, %v1400_v58  ;;  %vm1275_vm15 = vcmp.ge.f32.partialorder %v1009_v55, 0.0 }
 0x114   : > { %vm1274_vm0 = vcmp.ge.f32.partialorder %v1004_v57, 0.0  ;;  %v1338_v60 = vmul.f32 0.01, %v1004_v57  ;;  %v5987_v61 = vpop.f32.mrb[14].mxu0  ;;  %6092 = vmatmul.mubr.msk.f32.gmra.mrb[10].mxu1 %vm1469_vm2, %v1401_v59 }
 0x115   : > { %v1019_v62 = vadd.f32 %v5987_v61, %v7175_v5  ;;  %v1013_v63 = vpop.f32.mrb[15].mxu0  ;;  %v1403_v3 = vsel %vm1275_vm15, %v1009_v55, %v1339_v53 }
 0x116   : > { %v1014_v0 = vadd.f32 %v7175_v5, %v1013_v63  ;;  %v1402_v1 = vsel %vm1274_vm0, %v1004_v57, %v1338_v60 }
 0x117   : > { %v1341_v2 = vmul.f32 0.01, %v1019_v62  ;;  %6094 = vmatprep.mubr.msk.f32.mxu1 %vm1469_vm2, %v1402_v1  ;;  %vm1277_vm1 = vcmp.ge.f32.partialorder %v1019_v62, 0.0 }
 0x118   : > { %vm1276_vm3 = vcmp.ge.f32.partialorder %v1014_v0, 0.0  ;;  %v1340_v4 = vmul.f32 0.01, %v1014_v0  ;;  %v5990_v6 = vpop.f32.mrb[16].mxu0  ;;  %6095 = vmatmul.mubr.msk.f32.gmra.mrb[12].mxu1 %vm1469_vm2, %v1403_v3 }
 0x119   : > { %v1029_v7 = vadd.f32 %v5990_v6, %v7175_v5  ;;  %v1023_v8 = vpop.f32.mrb[17].mxu0  ;;  %v1405_v12 = vsel %vm1277_vm1, %v1019_v62, %v1341_v2 }
 0x11a   : > { %v1024_v9 = vadd.f32 %v7175_v5, %v1023_v8  ;;  %v1404_v10 = vsel %vm1276_vm3, %v1014_v0, %v1340_v4 }
 0x11b   : > { %v1343_v11 = vmul.f32 0.01, %v1029_v7  ;;  %6097 = vmatprep.mubr.msk.f32.mxu1 %vm1469_vm2, %v1404_v10  ;;  %vm1279_vm4 = vcmp.ge.f32.partialorder %v1029_v7, 0.0 }
 0x11c   : > { %vm1278_vm5 = vcmp.ge.f32.partialorder %v1024_v9, 0.0  ;;  %v1342_v13 = vmul.f32 0.01, %v1024_v9  ;;  %v5993_v14 = vpop.f32.mrb[18].mxu0  ;;  %6098 = vmatmul.mubr.msk.f32.gmra.mrb[14].mxu1 %vm1469_vm2, %v1405_v12 }
 0x11d   : > { %v1039_v15 = vadd.f32 %v5993_v14, %v7175_v5  ;;  %v1033_v16 = vpop.f32.mrb[19].mxu0  ;;  %v1407_v20 = vsel %vm1279_vm4, %v1029_v7, %v1343_v11 }
 0x11e   : > { %v1034_v17 = vadd.f32 %v7175_v5, %v1033_v16  ;;  %v1406_v18 = vsel %vm1278_vm5, %v1024_v9, %v1342_v13 }
 0x11f   : > { %v1345_v19 = vmul.f32 0.01, %v1039_v15  ;;  %6100 = vmatprep.mubr.msk.f32.mxu1 %vm1469_vm2, %v1406_v18  ;;  %vm1281_vm6 = vcmp.ge.f32.partialorder %v1039_v15, 0.0 }
 0x120   : > { %vm1280_vm7 = vcmp.ge.f32.partialorder %v1034_v17, 0.0  ;;  %v1344_v21 = vmul.f32 0.01, %v1034_v17  ;;  %v5996_v22 = vpop.f32.mrb[20].mxu0  ;;  %6101 = vmatmul.mubr.msk.f32.gmra.mrb[16].mxu1 %vm1469_vm2, %v1407_v20 }
 0x121   : > { %v1049_v23 = vadd.f32 %v5996_v22, %v7175_v5  ;;  %v1043_v24 = vpop.f32.mrb[21].mxu0  ;;  %v1409_v28 = vsel %vm1281_vm6, %v1039_v15, %v1345_v19  ;;  %v3651_v22 = vld [vmem:[%s9592_s13 + $0x8] sm:$0xff] }
 0x122   : > { %v1044_v25 = vadd.f32 %v7175_v5, %v1043_v24  ;;  %v1408_v26 = vsel %vm1280_vm7, %v1034_v17, %v1344_v21  ;;  %v3650_v21 = vld [vmem:[%s9592_s13] sm:$0xff] }
 0x123   : > { %v1347_v27 = vmul.f32 0.01, %v1049_v23  ;;  %6103 = vmatprep.mubr.msk.f32.mxu1 %vm1469_vm2, %v1408_v26  ;;  %vm1283_vm8 = vcmp.ge.f32.partialorder %v1049_v23, 0.0 }
 0x124   : > { %vm1282_vm9 = vcmp.ge.f32.partialorder %v1044_v25, 0.0  ;;  %v1346_v29 = vmul.f32 0.01, %v1044_v25  ;;  %v5999_v30 = vpop.f32.mrb[22].mxu0  ;;  %6104 = vmatmul.mubr.msk.f32.gmra.mrb[18].mxu1 %vm1469_vm2, %v1409_v28 }
 0x125   : > { %v1059_v31 = vadd.f32 %v5999_v30, %v7175_v5  ;;  %v1053_v32 = vpop.f32.mrb[23].mxu0  ;;  %v1411_v36 = vsel %vm1283_vm8, %v1049_v23, %v1347_v27 }
 0x126   : > { %v1054_v33 = vadd.f32 %v7175_v5, %v1053_v32  ;;  %v1410_v34 = vsel %vm1282_vm9, %v1044_v25, %v1346_v29  ;;  %v6370_v25 = vpack.c.bf16 %v3651_v22, %v3650_v21  ;;  %v3652_v32 = vld [vmem:[%s9592_s13 + $0x10] sm:$0xff] }
 0x127   : > { %v1349_v35 = vmul.f32 0.01, %v1059_v31  ;;  %6106 = vmatprep.mubr.msk.f32.mxu1 %vm1469_vm2, %v1410_v34  ;;  %vm1285_vm10 = vcmp.ge.f32.partialorder %v1059_v31, 0.0 }
 0x128   : > { %vm1284_vm11 = vcmp.ge.f32.partialorder %v1054_v33, 0.0  ;;  %v1348_v37 = vmul.f32 0.01, %v1054_v33  ;;  %v6002_v38 = vpop.f32.mrb[24].mxu0  ;;  %6107 = vmatmul.mubr.msk.f32.gmra.mrb[20].mxu1 %vm1469_vm2, %v1411_v36  ;;  %6371 = vmatprep.subr.bf16.mxu0 %v6370_v25 }
 0x129   : > { %v1069_v39 = vadd.f32 %v6002_v38, %v7175_v5  ;;  %v1063_v40 = vpop.f32.mrb[25].mxu0  ;;  %v1413_v44 = vsel %vm1285_vm10, %v1059_v31, %v1349_v35  ;;  %6373 = vmatpush3.bf16.msra.mxu0 %v6370_v25 }
 0x12a   : > { %v1064_v41 = vadd.f32 %v7175_v5, %v1063_v40  ;;  %v1412_v42 = vsel %vm1284_vm11, %v1054_v33, %v1348_v37  ;;  %v3653_v33 = vld [vmem:[%s9592_s13 + $0x18] sm:$0xff] }
 0x12b   : > { %v1351_v43 = vmul.f32 0.01, %v1069_v39  ;;  %6109 = vmatprep.mubr.msk.f32.mxu1 %vm1469_vm2, %v1412_v42  ;;  %vm1287_vm12 = vcmp.ge.f32.partialorder %v1069_v39, 0.0  ;;  %v6374_v36 = vpack.c.bf16 %v3653_v33, %v3652_v32 }
 0x12c   : > { %vm1286_vm13 = vcmp.ge.f32.partialorder %v1064_v41, 0.0  ;;  %v1350_v45 = vmul.f32 0.01, %v1064_v41  ;;  %v6005_v46 = vpop.f32.mrb[26].mxu0  ;;  %6110 = vmatmul.mubr.msk.f32.gmra.mrb[22].mxu1 %vm1469_vm2, %v1413_v44  ;;  %v3655_v44 = vld [vmem:[%s9592_s13 + $0x28] sm:$0xff] }
 0x12d   : > { %v1079_v47 = vadd.f32 %v6005_v46, %v7175_v5  ;;  %v1073_v48 = vpop.f32.mrb[27].mxu0  ;;  %v1415_v54 = vsel %vm1287_vm12, %v1069_v39, %v1351_v43  ;;  %6375 = vmatprep.subr.bf16.mxu0 %v6374_v36  ;;  %v3654_v43 = vld [vmem:[%s9592_s13 + $0x20] sm:$0xff] }
 0x12e   : > { %v1074_v51 = vadd.f32 %v7175_v5, %v1073_v48  ;;  %v1414_v50 = vsel %vm1286_vm13, %v1064_v41, %v1350_v45  ;;  %6377 = vmatpush3.bf16.msra.mxu0 %v6374_v36 }
 0x12f   : > { %v1353_v52 = vmul.f32 0.01, %v1079_v47  ;;  %6112 = vmatprep.mubr.msk.f32.mxu1 %vm1469_vm2, %v1414_v50  ;;  %vm1289_vm14 = vcmp.ge.f32.partialorder %v1079_v47, 0.0  ;;  %v2177_v50 = vlaneseq }
 0x130   : > { %vm1288_vm15 = vcmp.ge.f32.partialorder %v1074_v51, 0.0  ;;  %v1352_v55 = vmul.f32 0.01, %v1074_v51  ;;  %v6008_v56 = vpop.f32.mrb[28].mxu0  ;;  %6113 = vmatmul.mubr.msk.f32.gmra.mrb[24].mxu1 %vm1469_vm2, %v1415_v54 }
 0x131   : > { %v1089_v57 = vadd.f32 %v6008_v56, %v7175_v5  ;;  %v1083_v58 = vpop.f32.mrb[29].mxu0  ;;  %v1417_v61 = vsel %vm1289_vm14, %v1079_v47, %v1353_v52  ;;  %v6378_v47 = vpack.c.bf16 %v3655_v44, %v3654_v43 }
 0x132   : > { %v1084_v53 = vadd.f32 %v7175_v5, %v1083_v58  ;;  %v1416_v59 = vsel %vm1288_vm15, %v1074_v51, %v1352_v55  ;;  %v3657_v58 = vld [vmem:[%s9592_s13 + $0x38] sm:$0xff] }
 0x133   : > { %v1355_v60 = vmul.f32 0.01, %v1089_v57  ;;  %6115 = vmatprep.mubr.msk.f32.mxu1 %vm1469_vm2, %v1416_v59  ;;  %vm1291_vm0 = vcmp.ge.f32.partialorder %v1089_v57, 0.0  ;;  %6379 = vmatprep.subr.bf16.mxu0 %v6378_v47 }
 0x134   : > { %vm1290_vm1 = vcmp.ge.f32.partialorder %v1084_v53, 0.0  ;;  %v1354_v62 = vmul.f32 0.01, %v1084_v53  ;;  %v6011_v63 = vpop.f32.mrb[30].mxu0  ;;  %6116 = vmatmul.mubr.msk.f32.gmra.mrb[26].mxu1 %vm1469_vm2, %v1417_v61  ;;  %6381 = vmatpush3.bf16.msra.mxu0 %v6378_v47 }
 0x135   : > { %v1099_v0 = vadd.f32 %v6011_v63, %v7175_v5  ;;  %v1093_v1 = vpop.f32.mrb[31].mxu0  ;;  %v1419_v6 = vsel %vm1291_vm0, %v1089_v57, %v1355_v60  ;;  %v3656_v57 = vld [vmem:[%s9592_s13 + $0x30] sm:$0xff]  ;;  %v7290_v60 = vshrl.u32 %v2177_v50, 7 }
 0x136   : > { %v1094_v2 = vadd.f32 %v7175_v5, %v1093_v1  ;;  %v1418_v3 = vsel %vm1290_vm1, %v1084_v53, %v1354_v62  ;;  %v6382_v61 = vpack.c.bf16 %v3657_v58, %v3656_v57 }
 0x137   : > { %v1357_v4 = vmul.f32 0.01, %v1099_v0  ;;  %6118 = vmatprep.mubr.msk.f32.mxu1 %vm1469_vm2, %v1418_v3  ;;  %vm1293_vm3 = vcmp.ge.f32.partialorder %v1099_v0, 0.0 }
 0x138   : > { %vm1292_vm4 = vcmp.ge.f32.partialorder %v1094_v2, 0.0  ;;  %v1356_v7 = vmul.f32 0.01, %v1094_v2  ;;  %v6014_v8 = vpop.f32.mrb[32].mxu0  ;;  %6119 = vmatmul.mubr.msk.f32.gmra.mrb[28].mxu1 %vm1469_vm2, %v1419_v6  ;;  %6383 = vmatprep.subr.bf16.mxu0 %v6382_v61  ;;  %v7299_v6 = vld [vmem:[%s9585_s6] sm:$0x3] }
 0x139   : > { %v1109_v9 = vadd.f32 %v6014_v8, %v7175_v5  ;;  %v1103_v10 = vpop.f32.mrb[33].mxu0  ;;  %v1421_v14 = vsel %vm1293_vm3, %v1099_v0, %v1357_v4  ;;  %6385 = vmatpush3.bf16.msra.mxu0 %v6382_v61  ;;  %v3659_v8 = vld [vmem:[%s9592_s13 + $0x48] sm:$0xff] }
 0x13a   : > { %v1104_v11 = vadd.f32 %v7175_v5, %v1103_v10  ;;  %v1420_v12 = vsel %vm1292_vm4, %v1094_v2, %v1356_v7  ;;  %v2183_v2 = vsub.s32 1, %v7290_v60  ;;  %v3658_v7 = vld [vmem:[%s9592_s13 + $0x40] sm:$0xff] }
 0x13b   : > { %v1359_v13 = vmul.f32 0.01, %v1109_v9  ;;  %6121 = vmatprep.mubr.msk.f32.mxu1 %vm1469_vm2, %v1420_v12  ;;  %vm1295_vm5 = vcmp.ge.f32.partialorder %v1109_v9, 0.0 }
 0x13c   : > { %vm1294_vm6 = vcmp.ge.f32.partialorder %v1104_v11, 0.0  ;;  %v1358_v15 = vmul.f32 0.01, %v1104_v11  ;;  %v6017_v16 = vpop.f32.mrb[34].mxu0  ;;  %6122 = vmatmul.mubr.msk.f32.gmra.mrb[30].mxu1 %vm1469_vm2, %v1421_v14  ;;  %v6386_v14 = vpack.c.bf16 %v3659_v8, %v3658_v7 }
 0x13d   : > { %v1119_v17 = vadd.f32 %v6017_v16, %v7175_v5  ;;  %v1113_v18 = vpop.f32.mrb[35].mxu0  ;;  %v1423_v24 = vsel %vm1295_vm5, %v1109_v9, %v1359_v13 }
 0x13e   : > { %v1114_v19 = vadd.f32 %v7175_v5, %v1113_v18  ;;  %v1422_v20 = vsel %vm1294_vm6, %v1104_v11, %v1358_v15  ;;  %v7310_v11 = vrot.slane %v7299_v6, %v2183_v2  ;;  %6387 = vmatprep.subr.bf16.mxu0 %v6386_v14 }
 0x13f   : > { %v1361_v23 = vmul.f32 0.01, %v1119_v17  ;;  %6124 = vmatprep.mubr.msk.f32.mxu1 %vm1469_vm2, %v1422_v20  ;;  %vm1297_vm7 = vcmp.ge.f32.partialorder %v1119_v17, 0.0  ;;  %v3661_v20 = vld [vmem:[%s9592_s13 + $0x58] sm:$0xff]  ;;  %6389 = vmatpush3.bf16.msra.mxu0 %v6386_v14 }
 0x140   : > { %vm1296_vm8 = vcmp.ge.f32.partialorder %v1114_v19, 0.0  ;;  %v1360_v26 = vmul.f32 0.01, %v1114_v19  ;;  %v6020_v27 = vpop.f32.mrb[36].mxu0  ;;  %6125 = vmatmul.mubr.msk.f32.gmra.mrb[32].mxu1 %vm1469_vm2, %v1423_v24 }
 0x141   : > { %v1129_v28 = vadd.f32 %v6020_v27, %v7175_v5  ;;  %v1123_v29 = vpop.f32.mrb[37].mxu0  ;;  %v1425_v35 = vsel %vm1297_vm7, %v1119_v17, %v1361_v23 }
 0x142   : > { %v1124_v30 = vadd.f32 %v7175_v5, %v1123_v29  ;;  %v1424_v31 = vsel %vm1296_vm8, %v1114_v19, %v1360_v26  ;;  %v3660_v19 = vld [vmem:[%s9592_s13 + $0x50] sm:$0xff] }
 0x143   : > { %v1363_v34 = vmul.f32 0.01, %v1129_v28  ;;  %6127 = vmatprep.mubr.msk.f32.mxu1 %vm1469_vm2, %v1424_v31  ;;  %vm1299_vm9 = vcmp.ge.f32.partialorder %v1129_v28, 0.0  ;;  %v6390_v23 = vpack.c.bf16 %v3661_v20, %v3660_v19  ;;  %v3663_v31 = vld [vmem:[%s9592_s13 + $0x68] sm:$0xff] }
 0x144   : > { %vm1298_vm10 = vcmp.ge.f32.partialorder %v1124_v30, 0.0  ;;  %v1362_v37 = vmul.f32 0.01, %v1124_v30  ;;  %v6023_v38 = vpop.f32.mrb[38].mxu0  ;;  %6128 = vmatmul.mubr.msk.f32.gmra.mrb[34].mxu1 %vm1469_vm2, %v1425_v35 }
 0x145   : > { %v1139_v39 = vadd.f32 %v6023_v38, %v7175_v5  ;;  %v1133_v40 = vpop.f32.mrb[39].mxu0  ;;  %v1427_v46 = vsel %vm1299_vm9, %v1129_v28, %v1363_v34  ;;  %6391 = vmatprep.subr.bf16.mxu0 %v6390_v23 }
 0x146   : > { %v1134_v41 = vadd.f32 %v7175_v5, %v1133_v40  ;;  %v1426_v42 = vsel %vm1298_vm10, %v1124_v30, %v1362_v37  ;;  %v3662_v30 = vld [vmem:[%s9592_s13 + $0x60] sm:$0xff]  ;;  %6393 = vmatpush3.bf16.msra.mxu0 %v6390_v23 }
 0x147   : > { %v1365_v45 = vmul.f32 0.01, %v1139_v39  ;;  %6130 = vmatprep.mubr.msk.f32.mxu1 %vm1469_vm2, %v1426_v42  ;;  %vm1301_vm11 = vcmp.ge.f32.partialorder %v1139_v39, 0.0  ;;  %v6394_v34 = vpack.c.bf16 %v3663_v31, %v3662_v30  ;;  %v3665_v42 = vld [vmem:[%s9592_s13 + $0x78] sm:$0xff] }
 0x148   : > { %vm1300_vm12 = vcmp.ge.f32.partialorder %v1134_v41, 0.0  ;;  %v1364_v48 = vmul.f32 0.01, %v1134_v41  ;;  %v6026_v51 = vpop.f32.mrb[40].mxu0  ;;  %6131 = vmatmul.mubr.msk.f32.gmra.mrb[36].mxu1 %vm1469_vm2, %v1427_v46 }
 0x149   : > { %v1149_v52 = vadd.f32 %v6026_v51, %v7175_v5  ;;  %v1143_v54 = vpop.f32.mrb[41].mxu0  ;;  %v1429_v59 = vsel %vm1301_vm11, %v1139_v39, %v1365_v45  ;;  %6395 = vmatprep.subr.bf16.mxu0 %v6394_v34 }
 0x14a   : > { %v1144_v55 = vadd.f32 %v7175_v5, %v1143_v54  ;;  %v1428_v56 = vsel %vm1300_vm12, %v1134_v41, %v1364_v48  ;;  %v3664_v41 = vld [vmem:[%s9592_s13 + $0x70] sm:$0xff]  ;;  %6397 = vmatpush3.bf16.msra.mxu0 %v6394_v34 }
 0x14b   : > { %v1367_v53 = vmul.f32 0.01, %v1149_v52  ;;  %6133 = vmatprep.mubr.msk.f32.mxu1 %vm1469_vm2, %v1428_v56  ;;  %vm1303_vm13 = vcmp.ge.f32.partialorder %v1149_v52, 0.0  ;;  %v6398_v45 = vpack.c.bf16 %v3665_v42, %v3664_v41 }
 0x14c   : > { %vm1302_vm14 = vcmp.ge.f32.partialorder %v1144_v55, 0.0  ;;  %v1366_v62 = vmul.f32 0.01, %v1144_v55  ;;  %v6029_v63 = vpop.f32.mrb[42].mxu0  ;;  %6134 = vmatmul.mubr.msk.f32.gmra.mrb[38].mxu1 %vm1469_vm2, %v1429_v59 }
 0x14d   : > { %v1159_v0 = vadd.f32 %v6029_v63, %v7175_v5  ;;  %v1153_v1 = vpop.f32.mrb[43].mxu0  ;;  %v1431_v10 = vsel %vm1303_vm13, %v1149_v52, %v1367_v53  ;;  %6399 = vmatprep.subr.bf16.mxu0 %v6398_v45 }
 0x14e   : > { %v1154_v3 = vadd.f32 %v7175_v5, %v1153_v1  ;;  %v1430_v4 = vsel %vm1302_vm14, %v1144_v55, %v1366_v62  ;;  %6401 = vmatpush3.bf16.msra.mxu0 %v6398_v45  ;;  %v5655_v45 = vld [vmem:[%s9583_s4] ss:$0 sm:$0xff] }
 0x14f   : > { %v1369_v9 = vmul.f32 0.01, %v1159_v0  ;;  %6136 = vmatprep.mubr.msk.f32.mxu1 %vm1469_vm2, %v1430_v4  ;;  %vm1305_vm15 = vcmp.ge.f32.partialorder %v1159_v0, 0.0 }
 0x150   : > { %vm1304_vm0 = vcmp.ge.f32.partialorder %v1154_v3, 0.0  ;;  %v1368_v12 = vmul.f32 0.01, %v1154_v3  ;;  %v6032_v13 = vpop.f32.mrb[44].mxu0  ;;  %6137 = vmatmul.mubr.msk.f32.gmra.mrb[40].mxu1 %vm1469_vm2, %v1431_v10 }
 0x151   : > { %v1169_v15 = vadd.f32 %v6032_v13, %v7175_v5  ;;  %v1163_v16 = vpop.f32.mrb[45].mxu0  ;;  %v1433_v22 = vsel %vm1305_vm15, %v1159_v0, %v1369_v9 }
 0x152   : > { %v1164_v17 = vadd.f32 %v7175_v5, %v1163_v16  ;;  %v1432_v18 = vsel %vm1304_vm0, %v1154_v3, %v1368_v12 }
 0x153   : > { %v1371_v21 = vmul.f32 0.01, %v1169_v15  ;;  %6139 = vmatprep.mubr.msk.f32.mxu1 %vm1469_vm2, %v1432_v18  ;;  %vm1307_vm1 = vcmp.ge.f32.partialorder %v1169_v15, 0.0 }
 0x154   : > { %vm1306_vm3 = vcmp.ge.f32.partialorder %v1164_v17, 0.0  ;;  %v1370_v24 = vmul.f32 0.01, %v1164_v17  ;;  %v6035_v25 = vpop.f32.mrb[46].mxu0  ;;  %6140 = vmatmul.mubr.msk.f32.gmra.mrb[42].mxu1 %vm1469_vm2, %v1433_v22 }
 0x155   : > { %v1179_v26 = vadd.f32 %v6035_v25, %v7175_v5  ;;  %v1173_v27 = vpop.f32.mrb[47].mxu0  ;;  %v1435_v33 = vsel %vm1307_vm1, %v1169_v15, %v1371_v21 }
 0x156   : > { %v1174_v28 = vadd.f32 %v7175_v5, %v1173_v27  ;;  %v1434_v29 = vsel %vm1306_vm3, %v1164_v17, %v1370_v24 }
 0x157   : > { %v1373_v32 = vmul.f32 0.01, %v1179_v26  ;;  %6142 = vmatprep.mubr.msk.f32.mxu1 %vm1469_vm2, %v1434_v29  ;;  %vm1309_vm4 = vcmp.ge.f32.partialorder %v1179_v26, 0.0 }
 0x158   : > { %vm1308_vm5 = vcmp.ge.f32.partialorder %v1174_v28, 0.0  ;;  %v1372_v35 = vmul.f32 0.01, %v1174_v28  ;;  %v6038_v36 = vpop.f32.mrb[48].mxu0  ;;  %6143 = vmatmul.mubr.msk.f32.gmra.mrb[44].mxu1 %vm1469_vm2, %v1435_v33 }
 0x159   : > { %v1189_v37 = vadd.f32 %v6038_v36, %v7175_v5  ;;  %v1183_v38 = vpop.f32.mrb[49].mxu0  ;;  %v1437_v44 = vsel %vm1309_vm4, %v1179_v26, %v1373_v32 }
 0x15a   : > { %v1184_v39 = vadd.f32 %v7175_v5, %v1183_v38  ;;  %v1436_v40 = vsel %vm1308_vm5, %v1174_v28, %v1372_v35  ;;  %v6717_v35 = vmov 1966171168  }
 0x15b   : > { %v1375_v43 = vmul.f32 0.01, %v1189_v37  ;;  %6145 = vmatprep.mubr.msk.f32.mxu1 %vm1469_vm2, %v1436_v40  ;;  %vm1311_vm6 = vcmp.ge.f32.partialorder %v1189_v37, 0.0  ;;  %v2834_v36 = vunpack.c.l.s4 %v6717_v35 }
 0x15c   : > { %vm1310_vm7 = vcmp.ge.f32.partialorder %v1184_v39, 0.0  ;;  %v1374_v46 = vmul.f32 0.01, %v1184_v39  ;;  %v6041_v47 = vpop.f32.mrb[50].mxu0  ;;  %6146 = vmatmul.mubr.msk.f32.gmra.mrb[46].mxu1 %vm1469_vm2, %v1437_v44 }
 0x15d   : > { %v1199_v48 = vadd.f32 %v6041_v47, %v7175_v5  ;;  %v1193_v51 = vpop.f32.mrb[51].mxu0  ;;  %v1439_v55 = vsel %vm1311_vm6, %v1189_v37, %v1375_v43 }
 0x15e   : > { %v1194_v50 = vadd.f32 %v7175_v5, %v1193_v51  ;;  %v1438_v52 = vsel %vm1310_vm7, %v1184_v39, %v1374_v46  ;;  %v2835_v46 = vunpack.c.0.s8 %v2834_v36 }
 0x15f   : > { %v1377_v54 = vmul.f32 0.01, %v1199_v48  ;;  %6148 = vmatprep.mubr.msk.f32.mxu1 %vm1469_vm2, %v1438_v52  ;;  %vm1313_vm8 = vcmp.ge.f32.partialorder %v1199_v48, 0.0 }
 0x160   : > { %vm1312_vm9 = vcmp.ge.f32.partialorder %v1194_v50, 0.0  ;;  %v1376_v56 = vmul.f32 0.01, %v1194_v50  ;;  %v6044_v57 = vpop.f32.mrb[52].mxu0  ;;  %6149 = vmatmul.mubr.msk.f32.gmra.mrb[48].mxu1 %vm1469_vm2, %v1439_v55 }
 0x161   : > { %v1209_v58 = vadd.f32 %v6044_v57, %v7175_v5  ;;  %v1203_v53 = vpop.f32.mrb[53].mxu0  ;;  %v1441_v63 = vsel %vm1313_vm8, %v1199_v48, %v1377_v54  ;;  %v7378_v54 = vsub.s32 %v2835_v46, %v7290_v60  ;;  %v559_v57 = vld [vmem:[%s7124_s20 + $0x78] sm:$0xff] }
 0x162   : > { %v1204_v59 = vadd.f32 %v7175_v5, %v1203_v53  ;;  %v1440_v61 = vsel %vm1312_vm9, %v1194_v50, %v1376_v56 }
 0x163   : > { %v1379_v62 = vmul.f32 0.01, %v1209_v58  ;;  %6151 = vmatprep.mubr.msk.f32.mxu1 %vm1469_vm2, %v1440_v61  ;;  %vm1315_vm10 = vcmp.ge.f32.partialorder %v1209_v58, 0.0 }
 0x164   : > { %vm1314_vm11 = vcmp.ge.f32.partialorder %v1204_v59, 0.0  ;;  %v1378_v0 = vmul.f32 0.01, %v1204_v59  ;;  %v6047_v1 = vpop.f32.mrb[54].mxu0  ;;  %6152 = vmatmul.mubr.msk.f32.gmra.mrb[50].mxu1 %vm1469_vm2, %v1441_v63  ;;  %v7395_v63 = vsub.s32 0, %v7290_v60 }
 0x165   : > { %v1219_v2 = vadd.f32 %v6047_v1, %v7175_v5  ;;  %v1213_v3 = vpop.f32.mrb[55].mxu0  ;;  %v1443_v9 = vsel %vm1315_vm10, %v1209_v58, %v1379_v62  ;;  %v560_v62 = vld [vmem:[%s7124_s20 + $0x80] sm:$0xff]  ;;  %v561_v1 = vld [vmem:[%s7124_s20 + $0x88] sm:$0xff] }
 0x166   : > { %v1214_v4 = vadd.f32 %v7175_v5, %v1213_v3  ;;  %v1442_v7 = vsel %vm1314_vm11, %v1204_v59, %v1378_v0 }
 0x167   : > { %v1381_v8 = vmul.f32 0.01, %v1219_v2  ;;  %6154 = vmatprep.mubr.msk.f32.mxu1 %vm1469_vm2, %v1442_v7  ;;  %vm1317_vm12 = vcmp.ge.f32.partialorder %v1219_v2, 0.0  ;;  %v562_v7 = vld [vmem:[%s7124_s20 + $0x90] sm:$0xff] }
 0x168   : > { %vm1316_vm13 = vcmp.ge.f32.partialorder %v1214_v4, 0.0  ;;  %v1380_v10 = vmul.f32 0.01, %v1214_v4  ;;  %v6050_v12 = vpop.f32.mrb[56].mxu0  ;;  %6155 = vmatmul.mubr.msk.f32.gmra.mrb[52].mxu1 %vm1469_vm2, %v1443_v9 }
 0x169   : > { %v1229_v13 = vadd.f32 %v6050_v12, %v7175_v5  ;;  %v1223_v14 = vpop.f32.mrb[57].mxu0  ;;  %v1445_v18 = vsel %vm1317_vm12, %v1219_v2, %v1381_v8  ;;  %v7403_v2 = vrot.slane %v7299_v6, %v7395_v63 }
 0x16a   : > { %v1224_v15 = vadd.f32 %v7175_v5, %v1223_v14  ;;  %v1444_v16 = vsel %vm1316_vm13, %v1214_v4, %v1380_v10 }
 0x16b   : > { %v1383_v17 = vmul.f32 0.01, %v1229_v13  ;;  %6157 = vmatprep.mubr.msk.f32.mxu1 %vm1469_vm2, %v1444_v16  ;;  %vm1319_vm14 = vcmp.ge.f32.partialorder %v1229_v13, 0.0 }
 0x16c   : > { %vm1318_vm15 = vcmp.ge.f32.partialorder %v1224_v15, 0.0  ;;  %v1382_v19 = vmul.f32 0.01, %v1224_v15  ;;  %v6053_v20 = vpop.f32.mrb[58].mxu0  ;;  %6158 = vmatmul.mubr.msk.f32.gmra.mrb[54].mxu1 %vm1469_vm2, %v1445_v18 }
 0x16d   : > { %v1239_v21 = vadd.f32 %v6053_v20, %v7175_v5  ;;  %v1233_v22 = vpop.f32.mrb[59].mxu0  ;;  %v1447_v26 = vsel %vm1319_vm14, %v1229_v13, %v1383_v17  ;;  %v563_v13 = vld [vmem:[%s7124_s20 + $0x98] sm:$0xff] }
 0x16e   : > { %v1234_v23 = vadd.f32 %v7175_v5, %v1233_v22  ;;  %v1446_v24 = vsel %vm1318_vm15, %v1224_v15, %v1382_v19  ;;  %v564_v19 = vld [vmem:[%s7124_s20 + $0xa0] sm:$0xff] }
 0x16f   : > { %v1385_v25 = vmul.f32 0.01, %v1239_v21  ;;  %6160 = vmatprep.mubr.msk.f32.mxu1 %vm1469_vm2, %v1446_v24  ;;  %vm1321_vm0 = vcmp.ge.f32.partialorder %v1239_v21, 0.0 }
 0x170   : > { %vm1320_vm1 = vcmp.ge.f32.partialorder %v1234_v23, 0.0  ;;  %v1384_v27 = vmul.f32 0.01, %v1234_v23  ;;  %v6056_v28 = vpop.f32.mrb[60].mxu0  ;;  %6161 = vmatmul.mubr.msk.f32.gmra.mrb[56].mxu1 %vm1469_vm2, %v1447_v26 }
 0x171   : > { %v1249_v29 = vadd.f32 %v6056_v28, %v7175_v5  ;;  %v1243_v30 = vpop.f32.mrb[61].mxu0  ;;  %v1449_v34 = vsel %vm1321_vm0, %v1239_v21, %v1385_v25  ;;  %v565_v25 = vld [vmem:[%s7124_s20 + $0xa8] sm:$0xff] }
 0x172   : > { %v1244_v31 = vadd.f32 %v7175_v5, %v1243_v30  ;;  %v1448_v32 = vsel %vm1320_vm1, %v1234_v23, %v1384_v27 }
 0x173   : > { %v1387_v33 = vmul.f32 0.01, %v1249_v29  ;;  %6163 = vmatprep.mubr.msk.f32.mxu1 %vm1469_vm2, %v1448_v32  ;;  %vm1323_vm3 = vcmp.ge.f32.partialorder %v1249_v29, 0.0 }
 0x174   : > { %vm1322_vm4 = vcmp.ge.f32.partialorder %v1244_v31, 0.0  ;;  %v1386_v37 = vmul.f32 0.01, %v1244_v31  ;;  %v6059_v38 = vpop.f32.mrb[62].mxu0  ;;  %6164 = vmatmul.mubr.msk.f32.gmra.mrb[58].mxu1 %vm1469_vm2, %v1449_v34 }
 0x175   : > { %v1259_v39 = vadd.f32 %v6059_v38, %v7175_v5  ;;  %v1253_v40 = vpop.f32.mrb[63].mxu0  ;;  %v1451_v44 = vsel %vm1323_vm3, %v1249_v29, %v1387_v33  ;;  %v567_v38 = vld [vmem:[%s7124_s20 + $0xb8] sm:$0xff] }
 0x176   : > { %v1254_v41 = vadd.f32 %v7175_v5, %v1253_v40  ;;  %v1450_v42 = vsel %vm1322_vm4, %v1244_v31, %v1386_v37  ;;  %v566_v31 = vld [vmem:[%s7124_s20 + $0xb0] sm:$0xff] }
 0x177   : > { %v1389_v43 = vmul.f32 0.01, %v1259_v39  ;;  %6166 = vmatprep.mubr.msk.f32.mxu1 %vm1469_vm2, %v1450_v42  ;;  %vm1325_vm5 = vcmp.ge.f32.partialorder %v1259_v39, 0.0 }
 0x178   : > { %vm1324_vm6 = vcmp.ge.f32.partialorder %v1254_v41, 0.0  ;;  %v1388_v47 = vmul.f32 0.01, %v1254_v41  ;;  %6167 = vmatmul.mubr.msk.f32.gmra.mrb[60].mxu1 %vm1469_vm2, %v1451_v44  ;;  %v6190_v48 = vpop.f32.mrb[64].mxu0 }
 0x179   : > { %v7374_v51 = vadd.f32 %v6190_v48, %v5655_v45  ;;  %v2140_v5 = vpop.f32.mrb[65].mxu0  ;;  %v1453_v52 = vsel %vm1325_vm5, %v1259_v39, %v1389_v43 }
 0x17a   : > { %v1452_v50 = vsel %vm1324_vm6, %v1254_v41, %v1388_v47  ;;  %v7380_v55 = vadd.f32 %v5655_v45, %v2140_v5 }
 0x17b   : > { %6169 = vmatprep.mubr.msk.f32.mxu1 %vm1469_vm2, %v1452_v50 }
 0x17c   : > { %6170 = vmatmul.mubr.msk.f32.gmra.mrb[62].mxu1 %vm1469_vm2, %v1453_v52  ;;  %v6193_v56 = vpop.f32.mrb[66].mxu0  ;;  %v2839_v61 = vrot.slane %v7380_v55, %v7378_v54  ;;  %v2832_v34 = vcombine.high %v7380_v55, %v7380_v55  ;;  %v569_v52 = vld [vmem:[%s7124_s20 + $0xc8] sm:$0xff] }
 0x17d   : > { %2533 = vmatprep.mubr.f32.mxu1 %v6716_v49  ;;  %v7385_v58 = vadd.f32 %v6193_v56, %v5655_v45  ;;  %v2150_v53 = vpop.f32.mrb[67].mxu0 }
 0x17e   : > { %v7387_v59 = vadd.f32 %v5655_v45, %v2150_v53  ;;  %v2855_v0 = vrot.slane %v2839_v61, %v7378_v54  ;;  %v2847_v3 = vcombine.high %v2839_v61, %v2839_v61  ;;  %v2846_v41 = vrot.slane %v2832_v34, %v7378_v54  ;;  %v568_v45 = vld [vmem:[%s7124_s20 + $0xc0] sm:$0xff] }
 0x180   : > { %5675 = vmatmul.mubr.msk.f32.vlgmr.msra.gmra.mrb[64].mxu1 %vm1469_vm2, %v559_v57  ;;  %v7406_v4 = vrot.slane %v2855_v0, %v7395_v63  ;;  %v2869_v10 = vrot.slane %v2847_v3, %v7378_v54  ;;  %v2877_v23 = vcombine.high %v2855_v0, %v2855_v0  ;;  %v2862_v5 = vrot.slane %v2846_v41, %v7378_v54  ;;  %v570_v0 = vld [vmem:[%s7124_s20 + $0xd0] sm:$0xff] }
 0x181   : > { %2539 = vmatprep.mubr.f32.mxu1 %v6716_v49  ;;  %v2848_v57 = vcombine.high %v2846_v41, %v2846_v41 }
 0x182   : > { %v7430_v17 = vrot.slane %v2869_v10, %v7395_v63  ;;  %v7453_v29 = vrot.slane %v2877_v23, %v7395_v63  ;;  %v2879_v36 = vcombine.high %v2869_v10, %v2869_v10  ;;  %v7503_v61 = vrot.slane %v2862_v5, %v7395_v63 }
 0x184   : > { %5676 = vmatmul.mubr.msk.f32.gmra.mrb[66].mxu1 %vm1469_vm2, %v560_v62  ;;  %v7479_v43 = vrot.slane %v2879_v36, %v7395_v63  ;;  %v2878_v36 = vcombine.high %v2862_v5, %v2862_v5 }
 0x185   : > { %2545 = vmatprep.mubr.f32.mxu1 %v6716_v49 }
 0x188   : > { %5677 = vmatmul.mubr.msk.f32.gmra.mrb[68].mxu1 %vm1469_vm2, %v561_v1  ;;  %v2445_v60 = vpop.f32.mrb[68].mxu0 }
 0x189   : > { %2551 = vmatprep.mubr.f32.mxu1 %v6716_v49  ;;  %v7412_v8 = vadd.f32 %v2445_v60, %v7403_v2  ;;  %v7414_v9 = vpop.f32.mrb[69].mxu0 }
 0x18b   : > { %v3188_v6 = vsub.f32 %v7406_v4, %v7412_v8 }
 0x18c   : > { %5678 = vmatmul.mubr.msk.f32.gmra.mrb[70].mxu1 %vm1469_vm2, %v562_v7  ;;  %v2451_v12 = vpop.f32.mrb[70].mxu0  ;;  %v7516_v7 = vrot.slane %v2848_v57, %v7378_v54 }
 0x18d   : > { %2557 = vmatprep.mubr.f32.mxu1 %v6716_v49  ;;  %v7423_v14 = vadd.f32 %v2451_v12, %v7403_v2  ;;  %v7425_v15 = vpop.f32.mrb[71].mxu0  ;;  %v571_v12 = vld [vmem:[%s7124_s20 + $0xd8] sm:$0xff] }
 0x18e   : > { %v7530_v23 = vrot.slane %v7516_v7, %v7395_v63 }
 0x18f   : > { %v3189_v16 = vsub.f32 %v7406_v4, %v7423_v14 }
 0x190   : > { %5679 = vmatmul.mubr.msk.f32.gmra.mrb[72].mxu1 %vm1469_vm2, %v563_v13  ;;  %v2457_v18 = vpop.f32.mrb[72].mxu0 }
 0x191   : > { %2563 = vmatprep.mubr.f32.mxu1 %v6716_v49  ;;  %v7436_v20 = vadd.f32 %v2457_v18, %v7403_v2  ;;  %v7438_v21 = vpop.f32.mrb[73].mxu0 }
 0x193   : > { %v3190_v22 = vsub.f32 %v7430_v17, %v7436_v20 }
 0x194   : > { %5680 = vmatmul.mubr.msk.f32.gmra.mrb[74].mxu1 %vm1469_vm2, %v564_v19  ;;  %v2463_v24 = vpop.f32.mrb[74].mxu0  ;;  %v7609_v19 = vld [vmem:[%s9590_s11] ss:$0 sm:$0xff] }
 0x195   : > { %2569 = vmatprep.mubr.f32.mxu1 %v6716_v49  ;;  %v7446_v26 = vadd.f32 %v2463_v24, %v7403_v2  ;;  %v7448_v27 = vpop.f32.mrb[75].mxu0 }
 0x197   : > { %v3191_v28 = vsub.f32 %v7430_v17, %v7446_v26 }
 0x198   : > { %5681 = vmatmul.mubr.msk.f32.gmra.mrb[76].mxu1 %vm1469_vm2, %v565_v25  ;;  %v2469_v30 = vpop.f32.mrb[76].mxu0  ;;  %v572_v25 = vld [vmem:[%s7124_s20 + $0xe0] sm:$0xff] }
 0x199   : > { %2575 = vmatprep.mubr.f32.mxu1 %v6716_v49  ;;  %v7459_v32 = vadd.f32 %v2469_v30, %v7403_v2  ;;  %v7461_v33 = vpop.f32.mrb[77].mxu0 }
 0x19b   : > { %v3192_v35 = vsub.f32 %v7453_v29, %v7459_v32 }
 0x19c   : > { %5682 = vmatmul.mubr.msk.f32.gmra.mrb[78].mxu1 %vm1469_vm2, %v566_v31  ;;  %v2475_v37 = vpop.f32.mrb[78].mxu0 }
 0x19d   : > { %2581 = vmatprep.mubr.f32.mxu1 %v6716_v49  ;;  %v7471_v39 = vadd.f32 %v2475_v37, %v7403_v2  ;;  %v7473_v40 = vpop.f32.mrb[79].mxu0 }
 0x19f   : > { %v3193_v42 = vsub.f32 %v7453_v29, %v7471_v39 }
 0x1a0   : > { %5683 = vmatmul.mubr.msk.f32.gmra.mrb[80].mxu1 %vm1469_vm2, %v567_v38  ;;  %v2481_v44 = vpop.f32.mrb[80].mxu0  ;;  %v573_v38 = vld [vmem:[%s7124_s20 + $0xe8] sm:$0xff] }
 0x1a1   : > { %2587 = vmatprep.mubr.f32.mxu1 %v6716_v49  ;;  %v7485_v46 = vadd.f32 %v2481_v44, %v7403_v2  ;;  %v7487_v47 = vpop.f32.mrb[81].mxu0 }
 0x1a4   : > { %5684 = vmatmul.mubr.msk.f32.gmra.mrb[82].mxu1 %vm1469_vm2, %v568_v45  ;;  %v2487_v50 = vpop.f32.mrb[82].mxu0 }
 0x1a5   : > { %2593 = vmatprep.mubr.f32.mxu1 %v6716_v49  ;;  %v7496_v55 = vadd.f32 %v2487_v50, %v7403_v2  ;;  %v7498_v56 = vpop.f32.mrb[83].mxu0  ;;  %v7553_v50 = vrot.slane %v2878_v36, %v7395_v63  ;;  %v2448_v36 = vadd.f32 %v7414_v9, %v7310_v11  ;;  %v2466_v9 = vadd.f32 %v7448_v27, %v7310_v11 }
 0x1a6   : > { %v7631_v27 = vadd.f32 %v7498_v56, %v7310_v11 }
 0x1a8   : > { %5685 = vmatmul.mubr.msk.f32.gmra.mrb[84].mxu1 %vm1469_vm2, %v569_v52  ;;  %v2493_v62 = vpop.f32.mrb[84].mxu0  ;;  %v574_v52 = vld [vmem:[%s7124_s20 + $0xf0] sm:$0xff] }
 0x1a9   : > { %2599 = vmatprep.mubr.f32.mxu1 %v6716_v49  ;;  %v7509_v1 = vadd.f32 %v2493_v62, %v7403_v2  ;;  %v7511_v3 = vpop.f32.mrb[85].mxu0 }
 0x1ac   : > { %5686 = vmatmul.mubr.msk.f32.gmra.mrb[86].mxu1 %vm1469_vm2, %v570_v0  ;;  %v2499_v10 = vpop.f32.mrb[86].mxu0  ;;  %v2880_v0 = vcombine.high %v7516_v7, %v7516_v7  ;;  %v2460_v7 = vadd.f32 %v7438_v21, %v7310_v11  ;;  %v2472_v21 = vadd.f32 %v7461_v33, %v7310_v11  ;;  %v7636_v33 = vld [vmem:[%s9591_s12] ss:$0 sm:$0xff] }
 0x1ad   : > { %2605 = vmatprep.mubr.f32.mxu1 %v6716_v49  ;;  %v7522_v13 = vadd.f32 %v2499_v10, %v7403_v2  ;;  %v7524_v18 = vpop.f32.mrb[87].mxu0 }
 0x1ae   : > { %v7604_v60 = vrot.slane %v2880_v0, %v7395_v63  ;;  %v2478_v0 = vadd.f32 %v7473_v40, %v7310_v11  ;;  %v7649_v56 = vadd.f32 %v7524_v18, %v7310_v11  ;;  %v582_v18 = vld [vmem:[%s7124_s20 + $0x130] sm:$0xff] }
 0x1b0   : > { %5687 = vmatmul.mubr.msk.f32.gmra.mrb[88].mxu1 %vm1469_vm2, %v571_v12  ;;  %v2505_v24 = vpop.f32.mrb[88].mxu0  ;;  %v575_v12 = vld [vmem:[%s7124_s20 + $0xf8] sm:$0xff] }
 0x1b1   : > { %2611 = vmatprep.mubr.f32.mxu1 %v6716_v49  ;;  %v7536_v30 = vadd.f32 %v2505_v24, %v7403_v2  ;;  %v7538_v31 = vpop.f32.mrb[89].mxu0 }
 0x1b2   : > { %v7656_v4 = vadd.f32 %v7538_v31, %v7310_v11 }
 0x1b4   : > { %5688 = vmatmul.mubr.msk.f32.gmra.mrb[90].mxu1 %vm1469_vm2, %v572_v25  ;;  %v2511_v37 = vpop.f32.mrb[90].mxu0 }
 0x1b5   : > { %2617 = vmatprep.mubr.f32.mxu1 %v6716_v49  ;;  %v7546_v41 = vadd.f32 %v2511_v37, %v7403_v2  ;;  %v7548_v44 = vpop.f32.mrb[91].mxu0 }
 0x1b6   : > { %v7660_v8 = vadd.f32 %v7548_v44, %v7310_v11 }
 0x1b8   : > { %5689 = vmatmul.mubr.msk.f32.gmra.mrb[92].mxu1 %vm1469_vm2, %v573_v38  ;;  %v2517_v5 = vpop.f32.mrb[92].mxu0  ;;  %v576_v38 = vld [vmem:[%s7124_s20 + $0x100] sm:$0xff] }
 0x1b9   : > { %2623 = vmatprep.mubr.f32.mxu1 %v6716_v49  ;;  %v7559_v57 = vadd.f32 %v2517_v5, %v7403_v2  ;;  %v7561_v62 = vpop.f32.mrb[93].mxu0 }
 0x1bc   : > { %5690 = vmatmul.mubr.msk.f32.gmra.mrb[94].mxu1 %vm1469_vm2, %v574_v52  ;;  %v2523_v10 = vpop.f32.mrb[94].mxu0  ;;  %v577_v52 = vld [vmem:[%s7124_s20 + $0x108] sm:$0xff] }
 0x1bd   : > { %2629 = vmatprep.mubr.f32.mxu1 %v6716_v49  ;;  %v7569_v24 = vadd.f32 %v2523_v10, %v7403_v2  ;;  %v2525_v25 = vpop.f32.mrb[95].mxu0  ;;  %v578_v10 = vld [vmem:[%s7124_s20 + $0x110] sm:$0xff] }
 0x1c0   : > { %5691 = vmatmul.mubr.msk.f32.gmra.mrb[96].mxu1 %vm1469_vm2, %v575_v12  ;;  %v2529_v37 = vpop.f32.mrb[96].mxu0  ;;  %v579_v12 = vld [vmem:[%s7124_s20 + $0x118] sm:$0xff] }
 0x1c1   : > { %2635 = vmatprep.mubr.f32.mxu1 %v6716_v49  ;;  %v2531_v5 = vpop.f32.mrb[97].mxu0 }
 0x1c4   : > { %5692 = vmatmul.mubr.msk.f32.gmra.mrb[98].mxu1 %vm1469_vm2, %v576_v38  ;;  %v7591_v38 = vld [vmem:[%s9589_s10] ss:$0 sm:$0xff] }
 0x1c5   : > { %2641 = vmatprep.mubr.f32.mxu1 %v6716_v49 }
 0x1c8   : > { %5693 = vmatmul.mubr.msk.f32.gmra.mrb[100].mxu1 %vm1469_vm2, %v577_v52  ;;  %v580_v52 = vld [vmem:[%s7124_s20 + $0x120] sm:$0xff] }
 0x1c9   : > { %2647 = vmatprep.mubr.f32.mxu1 %v6716_v49 }
 0x1cc   : > { %5694 = vmatmul.mubr.msk.f32.gmra.mrb[102].mxu1 %vm1469_vm2, %v578_v10  ;;  %v2454_v10 = vadd.f32 %v7425_v15, %v7310_v11 }
 0x1cd   : > { %2653 = vmatprep.mubr.f32.mxu1 %v6716_v49 }
 0x1d0   : > { %5695 = vmatmul.mubr.msk.f32.gmra.mrb[104].mxu1 %vm1469_vm2, %v579_v12 }
 0x1d1   : > { %2659 = vmatprep.mubr.f32.mxu1 %v6716_v49 }
 0x1d3   : > { %v6078_v34 = vpop.f32.mrb[0].mxu1 }
 0x1d4   : > { %v1734_v12 = vadd.f32 %v6078_v34, %v7591_v38  ;;  %v1728_v45 = vpop.f32.mrb[1].mxu1  ;;  %5696 = vmatmul.mubr.msk.f32.gmra.mrb[106].mxu1 %vm1469_vm2, %v580_v52  ;;  %v581_v34 = vld [vmem:[%s7124_s20 + $0x128] sm:$0xff] }
 0x1d5   : > { %v1729_v15 = vadd.f32 %v7591_v38, %v1728_v45  ;;  %2665 = vmatprep.mubr.f32.mxu1 %v6716_v49  ;;  %v7627_v45 = vadd.f32 %v7487_v47, %v7310_v11  ;;  %v7645_v47 = vadd.f32 %v7511_v3, %v7310_v11 }
 0x1d6   : > { %v3253_v52 = vadd.f32 %v3189_v16, %v1734_v12  ;;  %v7623_v48 = vadd.f32 %v2454_v10, %v1734_v12 }
 0x1d7   : > { %v3252_v14 = vadd.f32 %v3188_v6, %v1729_v15  ;;  %v7641_v16 = vadd.f32 %v2448_v36, %v1729_v15  ;;  %v6081_v40 = vpop.f32.mrb[2].mxu1  ;;  %v7668_v36 = vadd.f32 %v7561_v62, %v7310_v11  ;;  %v7671_v15 = vadd.f32 %v2525_v25, %v7310_v11 }
 0x1d8   : > { %9628 = vst [vmem:[#allocation9_spill] sm:$0xff] %v7623_v48  ;;  %v3324_v10 = vmul.f32 %v7609_v19, %v3253_v52  ;;  %v1744_v12 = vadd.f32 %v6081_v40, %v7591_v38  ;;  %v1738_v53 = vpop.f32.mrb[3].mxu1  ;;  %5697 = vmatmul.mubr.msk.f32.gmra.mrb[108].mxu1 %vm1469_vm2, %v581_v34  ;;  %v7689_v40 = vadd.f32 %v2531_v5, %v7310_v11 }
 0x1d9   : > { %9629 = vst [vmem:[#allocation10_spill] sm:$0xff] %v7641_v16  ;;  %v3323_v6 = vmul.f32 %v7609_v19, %v3252_v14  ;;  %v1739_v3 = vadd.f32 %v7591_v38, %v1738_v53  ;;  %2671 = vmatprep.mubr.f32.mxu1 %v6716_v49  ;;  %v7680_v53 = vadd.f32 %v2529_v37, %v7403_v2 }
 0x1da   : > { %v3395_v31 = vadd.f32 %v7636_v33, %v3324_v10  ;;  %v3255_v44 = vadd.f32 %v3191_v28, %v1744_v12  ;;  %v7677_v34 = vadd.f32 %v2466_v9, %v1744_v12 }
 0x1db   : > { %v3254_v62 = vadd.f32 %v3190_v22, %v1739_v3  ;;  %v7685_v52 = vadd.f32 %v2460_v7, %v1739_v3  ;;  %v6084_v25 = vpop.f32.mrb[4].mxu1  ;;  %v3394_v14 = vadd.f32 %v7636_v33, %v3323_v6  ;;  %v583_v22 = vld [vmem:[%s7124_s20 + $0x138] sm:$0xff] }
 0x1dc   : > { %9630 = vst [vmem:[#allocation11_spill] sm:$0xff] %v7677_v34  ;;  %v3326_v26 = vmul.f32 %v7609_v19, %v3255_v44  ;;  %v1754_v28 = vadd.f32 %v6084_v25, %v7591_v38  ;;  %v1748_v9 = vpop.f32.mrb[5].mxu1  ;;  %5698 = vmatmul.mubr.msk.f32.gmra.mrb[110].mxu1 %vm1469_vm2, %v582_v18  ;;  %vm3459_vm7 = vcmp.ge.f32.partialorder %v3395_v31, 0.0  ;;  %v3523_v37 = vmul.f32 0.01, %v3395_v31 }
 0x1dd   : > { %9631 = vst [vmem:[#allocation12_spill] sm:$0xff] %v7685_v52  ;;  %v3325_v17 = vmul.f32 %v7609_v19, %v3254_v62  ;;  %v1749_v20 = vadd.f32 %v7591_v38, %v1748_v9  ;;  %2677 = vmatprep.mubr.f32.mxu1 %v6716_v49  ;;  %vm3458_vm8 = vcmp.ge.f32.partialorder %v3394_v14, 0.0  ;;  %v3522_v7 = vmul.f32 0.01, %v3394_v14 }
 0x1de   : > { %v3257_v5 = vadd.f32 %v3193_v42, %v1754_v28  ;;  %v7701_v10 = vadd.f32 %v2478_v0, %v1754_v28  ;;  %v3587_v12 = vsel %vm3459_vm7, %v3395_v31, %v3523_v37  ;;  %v3397_v6 = vadd.f32 %v7636_v33, %v3326_v26 }
 0x1df   : > { %v3256_v3 = vadd.f32 %v3192_v35, %v1749_v20  ;;  %v7707_v18 = vadd.f32 %v2472_v21, %v1749_v20  ;;  %v6087_v44 = vpop.f32.mrb[6].mxu1  ;;  %v3586_v62 = vsel %vm3458_vm8, %v3394_v14, %v3522_v7  ;;  %v3396_v25 = vadd.f32 %v7636_v33, %v3325_v17  ;;  %v584_v35 = vld [vmem:[%s7124_s20 + $0x140] sm:$0xff] }
 0x1e0   : > { %9632 = vst [vmem:[#allocation13_spill] sm:$0xff] %v7701_v10  ;;  %v3328_v9 = vmul.f32 %v7609_v19, %v3257_v5  ;;  %v1764_v39 = vadd.f32 %v6087_v44, %v7591_v38  ;;  %v1758_v42 = vpop.f32.mrb[7].mxu1  ;;  %5699 = vmatmul.mubr.msk.f32.gmra.mrb[112].mxu1 %vm1469_vm2, %v583_v22  ;;  %6226 = vmatprep.mubr.f32.mxu0 %v3586_v62  ;;  %vm3461_vm9 = vcmp.ge.f32.partialorder %v3397_v6, 0.0  ;;  %v3525_v0 = vmul.f32 0.01, %v3397_v6 }
 0x1e1   : > { %9633 = vst [vmem:[#allocation14_spill] sm:$0xff] %v7707_v18  ;;  %v3327_v29 = vmul.f32 %v7609_v19, %v3256_v3  ;;  %v1759_v32 = vadd.f32 %v7591_v38, %v1758_v42  ;;  %6227 = vmatmul.mubr.f32.vlgmr.msra.gmra.mrb[98].mxu0 %v3587_v12  ;;  %2683 = vmatprep.mubr.f32.mxu1 %v6716_v49  ;;  %vm3460_vm10 = vcmp.ge.f32.partialorder %v3396_v25, 0.0  ;;  %v3524_v21 = vmul.f32 0.01, %v3396_v25 }
 0x1e2   : > { %v9634_v31 = vsub.f32 %v7479_v43, %v7496_v55  ;;  %v7721_v26 = vadd.f32 %v7631_v27, %v1764_v39  ;;  %v3589_v28 = vsel %vm3461_vm9, %v3397_v6, %v3525_v0  ;;  %v3399_v37 = vadd.f32 %v7636_v33, %v3328_v9 }
 0x1e3   : > { %v9636_v17 = vsub.f32 %v7479_v43, %v7485_v46  ;;  %v7728_v22 = vadd.f32 %v7627_v45, %v1759_v32  ;;  %v6090_v7 = vpop.f32.mrb[8].mxu1  ;;  %v3588_v5 = vsel %vm3460_vm10, %v3396_v25, %v3524_v21  ;;  %v3398_v12 = vadd.f32 %v7636_v33, %v3327_v29  ;;  %v585_v45 = vld [vmem:[%s7124_s20 + $0x148] sm:$0xff] }
 0x1e4   : > { %v3259_v14 = vadd.f32 %v9634_v31, %v1764_v39  ;;  %9635 = vst [vmem:[#allocation15_spill] sm:$0xff] %v7721_v26  ;;  %v1774_v27 = vadd.f32 %v6090_v7, %v7591_v38  ;;  %v1768_v3 = vpop.f32.mrb[9].mxu1  ;;  %5700 = vmatmul.mubr.msk.f32.gmra.mrb[114].mxu1 %vm1469_vm2, %v584_v35  ;;  %6229 = vmatprep.mubr.f32.mxu0 %v3588_v5  ;;  %vm3463_vm11 = vcmp.ge.f32.partialorder %v3399_v37, 0.0  ;;  %v3527_v6 = vmul.f32 0.01, %v3399_v37 }
 0x1e5   : > { %v3258_v20 = vadd.f32 %v9636_v17, %v1759_v32  ;;  %9637 = vst [vmem:[#allocation16_spill] sm:$0xff] %v7728_v22  ;;  %v1769_v46 = vadd.f32 %v7591_v38, %v1768_v3  ;;  %6230 = vmatmul.mubr.f32.gmra.mrb[100].mxu0 %v3589_v28  ;;  %2689 = vmatprep.mubr.f32.mxu1 %v6716_v49  ;;  %vm3462_vm12 = vcmp.ge.f32.partialorder %v3398_v12, 0.0  ;;  %v3526_v44 = vmul.f32 0.01, %v3398_v12 }
 0x1e6   : > { %v3330_v55 = vmul.f32 %v7609_v19, %v3259_v14  ;;  %v9638_v62 = vsub.f32 %v7503_v61, %v7522_v13  ;;  %v7742_v9 = vadd.f32 %v7649_v56, %v1774_v27  ;;  %v3591_v39 = vsel %vm3463_vm11, %v3399_v37, %v3527_v6 }
 0x1e7   : > { %v3329_v43 = vmul.f32 %v7609_v19, %v3258_v20  ;;  %v9640_v0 = vsub.f32 %v7503_v61, %v7509_v1  ;;  %v7749_v32 = vadd.f32 %v7645_v47, %v1769_v46  ;;  %v6093_v35 = vpop.f32.mrb[10].mxu1  ;;  %v3590_v21 = vsel %vm3462_vm12, %v3398_v12, %v3526_v44  ;;  %v586_v47 = vld [vmem:[%s7124_s20 + $0x150] sm:$0xff] }
 0x1e8   : > { %v3261_v25 = vadd.f32 %v9638_v62, %v1774_v27  ;;  %9639 = vst [vmem:[#allocation17_spill] sm:$0xff] %v7742_v9  ;;  %v3401_v42 = vadd.f32 %v7636_v33, %v3330_v55  ;;  %v1784_v56 = vadd.f32 %v6093_v35, %v7591_v38  ;;  %v1778_v14 = vpop.f32.mrb[11].mxu1  ;;  %5701 = vmatmul.mubr.msk.f32.gmra.mrb[116].mxu1 %vm1469_vm2, %v585_v45 }
 0x1e9   : > { %v3260_v29 = vadd.f32 %v9640_v0, %v1769_v46  ;;  %9641 = vst [vmem:[#allocation18_spill] sm:$0xff] %v7749_v32  ;;  %v3400_v31 = vadd.f32 %v7636_v33, %v3329_v43  ;;  %6232 = vmatprep.mubr.f32.mxu0 %v3590_v21  ;;  %v1779_v1 = vadd.f32 %v7591_v38, %v1778_v14 }
 0x1ea   : > { %v3332_v13 = vmul.f32 %v7609_v19, %v3261_v25  ;;  %vm3465_vm13 = vcmp.ge.f32.partialorder %v3401_v42, 0.0  ;;  %v3529_v28 = vmul.f32 0.01, %v3401_v42  ;;  %6233 = vmatmul.mubr.f32.gmra.mrb[102].mxu0 %v3591_v39  ;;  %2695 = vmatprep.mubr.f32.mxu1 %v6716_v49  ;;  %v9642_v17 = vsub.f32 %v7530_v23, %v7546_v41 }
 0x1eb   : > { %v3331_v61 = vmul.f32 %v7609_v19, %v3260_v29  ;;  %vm3464_vm14 = vcmp.ge.f32.partialorder %v3400_v31, 0.0  ;;  %v3528_v37 = vmul.f32 0.01, %v3400_v31  ;;  %v7763_v7 = vadd.f32 %v7660_v8, %v1784_v56  ;;  %v6096_v6 = vpop.f32.mrb[12].mxu1 }
 0x1ec   : > { %v3263_v20 = vadd.f32 %v9642_v17, %v1784_v56  ;;  %v3593_v5 = vsel %vm3465_vm13, %v3401_v42, %v3529_v28  ;;  %v3403_v12 = vadd.f32 %v7636_v33, %v3332_v13  ;;  %v9644_v55 = vsub.f32 %v7530_v23, %v7536_v30  ;;  %v1788_v45 = vpop.f32.mrb[13].mxu1  ;;  %5702 = vmatmul.mubr.msk.f32.gmra.mrb[118].mxu1 %vm1469_vm2, %v586_v47  ;;  %v588_v28 = vld [vmem:[%s7124_s20 + $0x160] sm:$0xff] }
 0x1ed   : > { %9643 = vst [vmem:[#allocation19_spill] sm:$0xff] %v7763_v7  ;;  %v7770_v3 = vadd.f32 %v7656_v4, %v1779_v1  ;;  %v3592_v43 = vsel %vm3464_vm14, %v3400_v31, %v3528_v37  ;;  %v3402_v46 = vadd.f32 %v7636_v33, %v3331_v61  ;;  %v1794_v8 = vadd.f32 %v6096_v6, %v7591_v38  ;;  %v587_v4 = vld [vmem:[%s7124_s20 + $0x158] sm:$0xff] }
 0x1ee   : > { %v3262_v27 = vadd.f32 %v9644_v55, %v1779_v1  ;;  %v3334_v41 = vmul.f32 %v7609_v19, %v3263_v20  ;;  %6235 = vmatprep.mubr.f32.mxu0 %v3592_v43  ;;  %vm3467_vm15 = vcmp.ge.f32.partialorder %v3403_v12, 0.0  ;;  %v3531_v44 = vmul.f32 0.01, %v3403_v12  ;;  %2701 = vmatprep.mubr.f32.mxu1 %v6716_v49 }
 0x1ef   : > { %9645 = vst [vmem:[#allocation20_spill] sm:$0xff] %v7770_v3  ;;  %v1789_v30 = vadd.f32 %v7591_v38, %v1788_v45  ;;  %6236 = vmatmul.mubr.f32.gmra.mrb[104].mxu0 %v3593_v5  ;;  %vm3466_vm0 = vcmp.ge.f32.partialorder %v3402_v46, 0.0  ;;  %v3530_v62 = vmul.f32 0.01, %v3402_v46  ;;  %v9646_v25 = vsub.f32 %v7553_v50, %v7569_v24  ;;  %v7795_v13 = vpop.f32.mrb[14].mxu1 }
 0x1f0   : > { %v3333_v23 = vmul.f32 %v7609_v19, %v3262_v27  ;;  %v7784_v42 = vadd.f32 %v7671_v15, %v1794_v8  ;;  %v3202_v0 = vsub.f32 %v7604_v60, %v7680_v53  ;;  %v3405_v29 = vadd.f32 %v7636_v33, %v3334_v41  ;;  %v1798_v14 = vpop.f32.mrb[15].mxu1  ;;  %5703 = vmatmul.mubr.msk.f32.gmra.mrb[120].mxu1 %vm1469_vm2, %v587_v4 }
 0x1f1   : > { %v3265_v39 = vadd.f32 %v9646_v25, %v1794_v8  ;;  %v9648_v35 = vsub.f32 %v7553_v50, %v7559_v57  ;;  %v7793_v31 = vadd.f32 %v7668_v36, %v1789_v30  ;;  %v3594_v24 = vsel %vm3466_vm0, %v3402_v46, %v3530_v62  ;;  %2707 = vmatprep.mubr.f32.mxu1 %v6716_v49 }
 0x1f2   : > { %9647 = vst [vmem:[#allocation21_spill] sm:$0xff] %v7784_v42  ;;  %v3404_v56 = vadd.f32 %v7636_v33, %v3333_v23  ;;  %6238 = vmatprep.mubr.f32.mxu0 %v3594_v24  ;;  %v3595_v53 = vsel %vm3467_vm15, %v3403_v12, %v3531_v44  ;;  %vm3469_vm1 = vcmp.ge.f32.partialorder %v3405_v29, 0.0  ;;  %v3533_v50 = vmul.f32 0.01, %v3405_v29  ;;  %v590_v23 = vld [vmem:[%s7124_s20 + $0x170] sm:$0xff] }
 0x1f3   : > { %v3264_v21 = vadd.f32 %v9648_v35, %v1789_v30  ;;  %9649 = vst [vmem:[#allocation22_spill] sm:$0xff] %v7793_v31  ;;  %v3336_v15 = vmul.f32 %v7609_v19, %v3265_v39  ;;  %v1799_v36 = vadd.f32 %v7591_v38, %v1798_v14  ;;  %6239 = vmatmul.mubr.f32.gmra.mrb[106].mxu0 %v3595_v53  ;;  %v7809_v17 = vpop.f32.mrb[16].mxu1  ;;  %v591_v39 = vld [vmem:[%s7124_s20 + $0x178] sm:$0xff]  ;;  %v592_v35 = vld [vmem:[%s7124_s20 + $0x180] sm:$0xff]  ;;  %v594_v53 = vld [vmem:[%s7124_s20 + $0x190] sm:$0xff] }
 0x1f4   : > { %vm3468_vm3 = vcmp.ge.f32.partialorder %v3404_v56, 0.0  ;;  %v3532_v61 = vmul.f32 0.01, %v3404_v56  ;;  %v7812_v12 = vpop.f32.mrb[17].mxu1  ;;  %5704 = vmatmul.mubr.msk.f32.gmra.mrb[122].mxu1 %vm1469_vm2, %v588_v28  ;;  %v3597_v55 = vsel %vm3469_vm1, %v3405_v29, %v3533_v50 }
 0x1f5   : > { %v3335_v57 = vmul.f32 %v7609_v19, %v3264_v21  ;;  %v3407_v1 = vadd.f32 %v7636_v33, %v3336_v15  ;;  %v3266_v47 = vadd.f32 %v3202_v0, %v1799_v36  ;;  %v7807_v37 = vadd.f32 %v7689_v40, %v1799_v36  ;;  %2713 = vmatprep.mubr.f32.mxu1 %v6716_v49  ;;  %v589_v40 = vld [vmem:[%s7124_s20 + $0x168] sm:$0xff]  ;;  %v595_v36 = vld [vmem:[%s7124_s20 + $0x198] sm:$0xff] }
 0x1f6   : > { %v3596_v20 = vsel %vm3468_vm3, %v3404_v56, %v3532_v61  ;;  %v593_v56 = vld [vmem:[%s7124_s20 + $0x188] sm:$0xff] }
 0x1f7   : > { %9650 = vst [vmem:[#allocation23_spill] sm:$0xff] %v7807_v37  ;;  %v3406_v5 = vadd.f32 %v7636_v33, %v3335_v57  ;;  %6241 = vmatprep.mubr.f32.mxu0 %v3596_v20  ;;  %v3535_v27 = vmul.f32 0.01, %v3407_v1  ;;  %v3337_v6 = vmul.f32 %v7609_v19, %v3266_v47  ;;  %vm3471_vm5 = vcmp.ge.f32.partialorder %v3407_v1, 0.0  ;;  %v7819_v46 = vpop.f32.mrb[18].mxu1 }
 0x1f8   : > { %6242 = vmatmul.mubr.f32.gmra.mrb[108].mxu0 %v3597_v55  ;;  %v7822_v45 = vpop.f32.mrb[19].mxu1  ;;  %5705 = vmatmul.mubr.msk.f32.gmra.mrb[124].mxu1 %vm1469_vm2, %v589_v40 }
 0x1f9   : > { %vm3470_vm4 = vcmp.ge.f32.partialorder %v3406_v5, 0.0  ;;  %v3534_v43 = vmul.f32 0.01, %v3406_v5  ;;  %v3408_v8 = vadd.f32 %v7636_v33, %v3337_v6  ;;  %v3599_v44 = vsel %vm3471_vm5, %v3407_v1, %v3535_v27  ;;  %2719 = vmatprep.mubr.f32.mxu1 %v6716_v49  ;;  %v596_v1 = vld [vmem:[%s7124_s20 + $0x1a0] sm:$0xff]  ;;  %v598_v6 = vld [vmem:[%s7124_s20 + $0x1b0] sm:$0xff] }
 0x1fb   : > { %v3598_v41 = vsel %vm3470_vm4, %v3406_v5, %v3534_v43  ;;  %vm3472_vm6 = vcmp.ge.f32.partialorder %v3408_v8, 0.0  ;;  %v3536_v30 = vmul.f32 0.01, %v3408_v8  ;;  %v7827_v4 = vpop.f32.mrb[20].mxu1  ;;  %v597_v5 = vld [vmem:[%s7124_s20 + $0x1a8] sm:$0xff] }
 0x1fc   : > { %6244 = vmatprep.mubr.f32.mxu0 %v3598_v41  ;;  %v7829_v25 = vpop.f32.mrb[21].mxu1  ;;  %5706 = vmatmul.mubr.msk.f32.gmra.mrb[126].mxu1 %vm1469_vm2, %v590_v23  ;;  %v599_v41 = vld [vmem:[%s7124_s20 + $0x1b8] sm:$0xff]  ;;  %v600_v23 = vld [vmem:[%s7124_s20 + $0x1c0] sm:$0xff] }
 0x1fd   : > { %6245 = vmatmul.mubr.f32.gmra.mrb[110].mxu0 %v3599_v44  ;;  %v3600_v62 = vsel %vm3472_vm6, %v3408_v8, %v3536_v30  ;;  %2725 = vmatprep.mubr.f32.mxu1 %v6716_v49 }
 0x1fe   : > { %6247 = vmatprep.mubr.f32.mxu0 %v3600_v62 }
 0x1ff   : > { %v7834_v0 = vpop.f32.mrb[22].mxu1 }
 0x200   : > { %v7836_v29 = vpop.f32.mrb[23].mxu1  ;;  %5707 = vmatmul.mubr.msk.f32.gmra.mrb[128].mxu1 %vm1469_vm2, %v591_v39  ;;  %v601_v39 = vld [vmem:[%s7124_s20 + $0x1c8] sm:$0xff] }
 0x201   : > { %2731 = vmatprep.mubr.f32.mxu1 %v6716_v49 }
 0x203   : > { %v7841_v21 = vpop.f32.mrb[24].mxu1 }
 0x204   : > { %v7843_v24 = vpop.f32.mrb[25].mxu1  ;;  %5708 = vmatmul.mubr.msk.f32.gmra.mrb[130].mxu1 %vm1469_vm2, %v592_v35 }
 0x205   : > { %2737 = vmatprep.mubr.f32.mxu1 %v6716_v49 }
 0x207   : > { %v7848_v15 = vpop.f32.mrb[26].mxu1 }
 0x208   : > { %v7850_v14 = vpop.f32.mrb[27].mxu1  ;;  %5709 = vmatmul.mubr.msk.f32.gmra.mrb[132].mxu1 %vm1469_vm2, %v593_v56 }
 0x209   : > { %2743 = vmatprep.mubr.f32.mxu1 %v6716_v49 }
 0x20b   : > { %v7855_v50 = vpop.f32.mrb[28].mxu1 }
 0x20c   : > { %v7857_v57 = vpop.f32.mrb[29].mxu1  ;;  %5710 = vmatmul.mubr.msk.f32.gmra.mrb[134].mxu1 %vm1469_vm2, %v594_v53  ;;  %v602_v53 = vld [vmem:[%s7124_s20 + $0x1d0] sm:$0xff] }
 0x20d   : > { %2749 = vmatprep.mubr.f32.mxu1 %v6716_v49 }
 0x20f   : > { %v7862_v28 = vpop.f32.mrb[30].mxu1 }
 0x210   : > { %v7864_v61 = vpop.f32.mrb[31].mxu1  ;;  %5711 = vmatmul.mubr.msk.f32.gmra.mrb[136].mxu1 %vm1469_vm2, %v595_v36 }
 0x211   : > { %2755 = vmatprep.mubr.f32.mxu1 %v6716_v49 }
 0x213   : > { %v7869_v47 = vpop.f32.mrb[32].mxu1 }
 0x214   : > { %v7871_v20 = vpop.f32.mrb[33].mxu1  ;;  %5712 = vmatmul.mubr.msk.f32.gmra.mrb[138].mxu1 %vm1469_vm2, %v596_v1 }
 0x215   : > { %2761 = vmatprep.mubr.f32.mxu1 %v6716_v49 }
 0x217   : > { %v7876_v55 = vpop.f32.mrb[34].mxu1 }
 0x218   : > { %v7878_v27 = vpop.f32.mrb[35].mxu1  ;;  %5713 = vmatmul.mubr.msk.f32.gmra.mrb[140].mxu1 %vm1469_vm2, %v597_v5  ;;  %v603_v5 = vld [vmem:[%s7124_s20 + $0x1d8] sm:$0xff] }
 0x219   : > { %2767 = vmatprep.mubr.f32.mxu1 %v6716_v49 }
 0x21b   : > { %v7883_v40 = vpop.f32.mrb[36].mxu1 }
 0x21c   : > { %v7885_v43 = vpop.f32.mrb[37].mxu1  ;;  %5714 = vmatmul.mubr.msk.f32.gmra.mrb[142].mxu1 %vm1469_vm2, %v598_v6 }
 0x21d   : > { %2773 = vmatprep.mubr.f32.mxu1 %v6716_v49 }
 0x21f   : > { %v7890_v8 = vpop.f32.mrb[38].mxu1 }
 0x220   : > { %v7892_v44 = vpop.f32.mrb[39].mxu1  ;;  %5715 = vmatmul.mubr.msk.f32.gmra.mrb[144].mxu1 %vm1469_vm2, %v599_v41 }
 0x221   : > { %2779 = vmatprep.mubr.f32.mxu1 %v6716_v49 }
 0x223   : > { %v7897_v30 = vpop.f32.mrb[40].mxu1 }
 0x224   : > { %v7899_v62 = vpop.f32.mrb[41].mxu1  ;;  %5716 = vmatmul.mubr.msk.f32.gmra.mrb[146].mxu1 %vm1469_vm2, %v600_v23  ;;  %v604_v23 = vld [vmem:[%s7124_s20 + $0x1e0] sm:$0xff] }
 0x225   : > { %2785 = vmatprep.mubr.f32.mxu1 %v6716_v49 }
 0x227   : > { %v7904_v35 = vpop.f32.mrb[42].mxu1 }
 0x228   : > { %v7906_v56 = vpop.f32.mrb[43].mxu1  ;;  %5717 = vmatmul.mubr.msk.f32.gmra.mrb[148].mxu1 %vm1469_vm2, %v601_v39 }
 0x229   : > { %2791 = vmatprep.mubr.f32.mxu1 %v6716_v49 }
 0x22b   : > { %v7911_v36 = vpop.f32.mrb[44].mxu1 }
 0x22c   : > { %v7913_v1 = vpop.f32.mrb[45].mxu1  ;;  %5718 = vmatmul.mubr.msk.f32.gmra.mrb[150].mxu1 %vm1469_vm2, %v602_v53  ;;  %v605_v53 = vld [vmem:[%s7124_s20 + $0x1e8] sm:$0xff] }
 0x22d   : > { %2797 = vmatprep.mubr.f32.mxu1 %v6716_v49 }
 0x22f   : > { %v7918_v6 = vpop.f32.mrb[46].mxu1 }
 0x230   : > { %v7920_v41 = vpop.f32.mrb[47].mxu1  ;;  %5719 = vmatmul.mubr.msk.f32.gmra.mrb[152].mxu1 %vm1469_vm2, %v603_v5  ;;  %v606_v5 = vld [vmem:[%s7124_s20 + $0x1f0] sm:$0xff] }
 0x231   : > { %2803 = vmatprep.mubr.f32.mxu1 %v6716_v49 }
 0x233   : > { %v7925_v39 = vpop.f32.mrb[48].mxu1 }
 0x234   : > { %v7927_v37 = vpop.f32.mrb[49].mxu1  ;;  %5720 = vmatmul.mubr.msk.f32.gmra.mrb[154].mxu1 %vm1469_vm2, %v604_v23  ;;  %v607_v23 = vld [vmem:[%s7124_s20 + $0x1f8] sm:$0xff]  ;;  %s9538_s20 = scalar_lea.sflag [#allocation3], %s518_s2 }
 0x235   : > { %2809 = vmatprep.mubr.f32.mxu1 %v6716_v49 }
 0x237   : > { %v7932_v42 = vpop.f32.mrb[50].mxu1 }
 0x238   : > { %v7934_v31 = vpop.f32.mrb[51].mxu1  ;;  %5721 = vmatmul.mubr.msk.f32.gmra.mrb[156].mxu1 %vm1469_vm2, %v605_v53 }
 0x239   : > { %9651 = vst [vmem:[#allocation24_spill] sm:$0xff] %v7934_v31  ;;  %2815 = vmatprep.mubr.f32.mxu1 %v6716_v49 }
 0x23b   : > { %v7939_v7 = vpop.f32.mrb[52].mxu1 }
 0x23c   : > { %9652 = vst [vmem:[#allocation25_spill] sm:$0xff] %v7939_v7  ;;  %v7941_v3 = vpop.f32.mrb[53].mxu1  ;;  %5722 = vmatmul.mubr.msk.f32.gmra.mrb[158].mxu1 %vm1469_vm2, %v606_v5 }
 0x23d   : > { %9653 = vst [vmem:[#allocation26_spill] sm:$0xff] %v7941_v3  ;;  %2821 = vmatprep.mubr.f32.mxu1 %v6716_v49  ;;  %v2888_v49 = vrot.slane %v7374_v51, %v7378_v54 }
 0x23f   : > { %v7946_v9 = vpop.f32.mrb[54].mxu1 }
 0x240   : > { %9654 = vst [vmem:[#allocation27_spill] sm:$0xff] %v7946_v9  ;;  %v7948_v32 = vpop.f32.mrb[55].mxu1  ;;  %5723 = vmatmul.mubr.msk.f32.gmra.mrb[160].mxu1 %vm1469_vm2, %v607_v23  ;;  %v2904_v23 = vrot.slane %v2888_v49, %v7378_v54 }
 0x241   : > { %9655 = vst [vmem:[#allocation28_spill] sm:$0xff] %v7948_v32 }
 0x243   : > { %v7951_v26 = vpop.f32.mrb[56].mxu1 }
 0x244   : > { %9656 = vst [vmem:[#allocation29_spill] sm:$0xff] %v7951_v26  ;;  %v7953_v53 = vpop.f32.mrb[57].mxu1  ;;  %v3063_v26 = vrot.slane %v2904_v23, %v7395_v63 }
 0x245   : > { %9657 = vst [vmem:[#allocation30_spill] sm:$0xff] %v7953_v53 }
 0x247   : > { %v7955_v22 = vpop.f32.mrb[58].mxu1 }
 0x248   : > { %9658 = vst [vmem:[#allocation31_spill] sm:$0xff] %v7955_v22  ;;  %v7957_v10 = vpop.f32.mrb[59].mxu1  ;;  %v2896_v22 = vcombine.high %v2888_v49, %v2888_v49 }
 0x249   : > { %9659 = vst [vmem:[#allocation32_spill] sm:$0xff] %v7957_v10  ;;  %v1804_v10 = vadd.f32 %v7795_v13, %v7591_v38 }
 0x24a   : > { %v7983_v13 = vrot.slane %v2896_v22, %v7378_v54 }
 0x24b   : > { %v7959_v18 = vpop.f32.mrb[60].mxu1 }
 0x24c   : > { %9660 = vst [vmem:[#allocation33_spill] sm:$0xff] %v7959_v18  ;;  %v7961_v5 = vpop.f32.mrb[61].mxu1  ;;  %v3067_v22 = vrot.slane %v7983_v13, %v7395_v63 }
 0x24d   : > { %9661 = vst [vmem:[#allocation34_spill] sm:$0xff] %v7961_v5 }
 0x24f   : > { %v7965_v34 = vpop.f32.mrb[62].mxu1 }
 0x250   : > { %9662 = vst [vmem:[#allocation35_spill] sm:$0xff] %v7965_v34  ;;  %v7967_v52 = vpop.f32.mrb[63].mxu1 }
 0x251   : > { %9663 = vst [vmem:[#allocation36_spill] sm:$0xff] %v7967_v52 }
 0x253   : > { %v2535_v48 = vpop.f32.mrb[64].mxu1 }
 0x254   : > { %v2536_v16 = vadd.f32 %v2535_v48, %v7403_v2  ;;  %v2537_v53 = vpop.f32.mrb[65].mxu1  ;;  %v1809_v48 = vadd.f32 %v7591_v38, %v7812_v12  ;;  %v1814_v12 = vadd.f32 %v7809_v17, %v7591_v38 }
 0x255   : > { %v2538_v18 = vadd.f32 %v2537_v53, %v7310_v11 }
 0x256   : > { %v3203_v5 = vsub.f32 %v7604_v60, %v2536_v16 }
 0x257   : > { %v7976_v32 = vadd.f32 %v2538_v18, %v1804_v10  ;;  %v2541_v34 = vpop.f32.mrb[66].mxu1 }
 0x258   : > { %v3267_v52 = vadd.f32 %v3203_v5, %v1804_v10  ;;  %v2542_v9 = vadd.f32 %v2541_v34, %v7403_v2  ;;  %v2543_v3 = vpop.f32.mrb[67].mxu1 }
 0x259   : > { %9664 = vst [vmem:[#allocation37_spill] sm:$0xff] %v7976_v32  ;;  %v2544_v49 = vadd.f32 %v2543_v3, %v7310_v11 }
 0x25a   : > { %v3338_v53 = vmul.f32 %v7609_v19, %v3267_v52  ;;  %v3204_v60 = vsub.f32 %v3063_v26, %v2542_v9 }
 0x25b   : > { %v7986_v16 = vadd.f32 %v2544_v49, %v1809_v48  ;;  %v2547_v18 = vpop.f32.mrb[68].mxu1 }
 0x25c   : > { %v3268_v32 = vadd.f32 %v3204_v60, %v1809_v48  ;;  %v2548_v10 = vadd.f32 %v2547_v18, %v7403_v2  ;;  %v2549_v5 = vpop.f32.mrb[69].mxu1  ;;  %v3409_v34 = vadd.f32 %v7636_v33, %v3338_v53 }
 0x25d   : > { %9665 = vst [vmem:[#allocation38_spill] sm:$0xff] %v7986_v16  ;;  %v2550_v3 = vadd.f32 %v2549_v5, %v7310_v11  ;;  %v1819_v5 = vadd.f32 %v7591_v38, %v7822_v45  ;;  %v1824_v45 = vadd.f32 %v7819_v46, %v7591_v38 }
 0x25e   : > { %v3339_v52 = vmul.f32 %v7609_v19, %v3268_v32  ;;  %v3205_v9 = vsub.f32 %v3063_v26, %v2548_v10  ;;  %vm3473_vm2 = vcmp.ge.f32.partialorder %v3409_v34, 0.0  ;;  %v3537_v49 = vmul.f32 0.01, %v3409_v34 }
 0x25f   : > { %v7996_v16 = vadd.f32 %v2550_v3, %v1814_v12  ;;  %v2553_v48 = vpop.f32.mrb[70].mxu1  ;;  %v2926_v32 = vcombine.high %v2904_v23, %v2904_v23 }
 0x260   : > { %v3269_v60 = vadd.f32 %v3205_v9, %v1814_v12  ;;  %v2554_v18 = vadd.f32 %v2553_v48, %v7403_v2  ;;  %v2555_v53 = vpop.f32.mrb[71].mxu1  ;;  %v3601_v7 = vsel %vm3473_vm2, %v3409_v34, %v3537_v49  ;;  %v3410_v17 = vadd.f32 %v7636_v33, %v3339_v52 }
 0x261   : > { %9666 = vst [vmem:[#allocation39_spill] sm:$0xff] %v7996_v16  ;;  %v2556_v31 = vadd.f32 %v2555_v53, %v7310_v11  ;;  %6248 = vmatmul.mubr.f32.gmra.mrb[112].mxu0 %v3601_v7  ;;  %v3071_v23 = vrot.slane %v2926_v32, %v7395_v63 }
 0x262   : > { %v3340_v26 = vmul.f32 %v7609_v19, %v3269_v60  ;;  %v3206_v10 = vsub.f32 %v3067_v22, %v2554_v18  ;;  %vm3474_vm7 = vcmp.ge.f32.partialorder %v3410_v17, 0.0  ;;  %v3538_v3 = vmul.f32 0.01, %v3410_v17 }
 0x263   : > { %v8004_v16 = vadd.f32 %v2556_v31, %v1819_v5  ;;  %v2559_v12 = vpop.f32.mrb[72].mxu1 }
 0x264   : > { %v3270_v9 = vadd.f32 %v3206_v10, %v1819_v5  ;;  %v2560_v34 = vadd.f32 %v2559_v12, %v7403_v2  ;;  %v2561_v49 = vpop.f32.mrb[73].mxu1  ;;  %v3602_v52 = vsel %vm3474_vm7, %v3410_v17, %v3538_v3  ;;  %v3411_v48 = vadd.f32 %v7636_v33, %v3340_v26 }
 0x265   : > { %9667 = vst [vmem:[#allocation40_spill] sm:$0xff] %v8004_v16  ;;  %v2562_v7 = vadd.f32 %v2561_v49, %v7310_v11  ;;  %6250 = vmatprep.mubr.f32.mxu0 %v3602_v52  ;;  %v1829_v12 = vadd.f32 %v7591_v38, %v7829_v25  ;;  %v2881_v52 = vcombine.high %v7374_v51, %v7374_v51 }
 0x266   : > { %v3341_v60 = vmul.f32 %v7609_v19, %v3270_v9  ;;  %v3207_v31 = vsub.f32 %v3067_v22, %v2560_v34  ;;  %vm3475_vm8 = vcmp.ge.f32.partialorder %v3411_v48, 0.0  ;;  %v3539_v18 = vmul.f32 0.01, %v3411_v48 }
 0x267   : > { %v8013_v53 = vadd.f32 %v2562_v7, %v1824_v45  ;;  %v2565_v5 = vpop.f32.mrb[74].mxu1  ;;  %v2928_v22 = vcombine.high %v7983_v13, %v7983_v13  ;;  %v1834_v13 = vadd.f32 %v7827_v4, %v7591_v38 }
 0x268   : > { %v3271_v10 = vadd.f32 %v3207_v31, %v1824_v45  ;;  %v2566_v17 = vadd.f32 %v2565_v5, %v7403_v2  ;;  %v2567_v26 = vpop.f32.mrb[75].mxu1  ;;  %v3603_v3 = vsel %vm3475_vm8, %v3411_v48, %v3539_v18  ;;  %v3412_v46 = vadd.f32 %v7636_v33, %v3341_v60 }
 0x269   : > { %9668 = vst [vmem:[#allocation41_spill] sm:$0xff] %v8013_v53  ;;  %v2568_v32 = vadd.f32 %v2567_v26, %v7310_v11  ;;  %6251 = vmatmul.mubr.f32.gmra.mrb[114].mxu0 %v3603_v3  ;;  %v2895_v3 = vrot.slane %v2881_v52, %v7378_v54 }
 0x26a   : > { %v3342_v9 = vmul.f32 %v7609_v19, %v3271_v10  ;;  %v3208_v34 = vsub.f32 %v3071_v23, %v2566_v17  ;;  %vm3476_vm9 = vcmp.ge.f32.partialorder %v3412_v46, 0.0  ;;  %v3540_v49 = vmul.f32 0.01, %v3412_v46 }
 0x26b   : > { %v8025_v48 = vadd.f32 %v2568_v32, %v1829_v12  ;;  %v2571_v45 = vpop.f32.mrb[76].mxu1  ;;  %v3075_v10 = vrot.slane %v2928_v22, %v7395_v63  ;;  %v1839_v22 = vadd.f32 %v7591_v38, %v7836_v29 }
 0x26c   : > { %v3272_v7 = vadd.f32 %v3208_v34, %v1829_v12  ;;  %v2572_v25 = vadd.f32 %v2571_v45, %v7403_v2  ;;  %v2573_v60 = vpop.f32.mrb[77].mxu1  ;;  %v3604_v31 = vsel %vm3476_vm9, %v3412_v46, %v3540_v49  ;;  %v3413_v18 = vadd.f32 %v7636_v33, %v3342_v9 }
 0x26d   : > { %9669 = vst [vmem:[#allocation42_spill] sm:$0xff] %v8025_v48  ;;  %v2574_v5 = vadd.f32 %v2573_v60, %v7310_v11  ;;  %6253 = vmatprep.mubr.f32.mxu0 %v3604_v31  ;;  %v8046_v31 = vrot.slane %v2895_v3, %v7378_v54 }
 0x26e   : > { %v3343_v51 = vmul.f32 %v7609_v19, %v3272_v7  ;;  %v3209_v17 = vsub.f32 %v3071_v23, %v2572_v25  ;;  %vm3477_vm10 = vcmp.ge.f32.partialorder %v3413_v18, 0.0  ;;  %v3541_v26 = vmul.f32 0.01, %v3413_v18 }
 0x26f   : > { %v8035_v12 = vadd.f32 %v2574_v5, %v1834_v13  ;;  %v2577_v46 = vpop.f32.mrb[78].mxu1 }
 0x270   : > { %v3273_v32 = vadd.f32 %v3209_v17, %v1834_v13  ;;  %v2578_v9 = vadd.f32 %v2577_v46, %v7403_v2  ;;  %v2579_v34 = vpop.f32.mrb[79].mxu1  ;;  %v3605_v4 = vsel %vm3477_vm10, %v3413_v18, %v3541_v26  ;;  %v3414_v49 = vadd.f32 %v7636_v33, %v3343_v51 }
 0x271   : > { %9670 = vst [vmem:[#allocation43_spill] sm:$0xff] %v8035_v12  ;;  %v2580_v45 = vadd.f32 %v2579_v34, %v7310_v11  ;;  %6254 = vmatmul.mubr.f32.gmra.mrb[116].mxu0 %v3605_v4  ;;  %v1844_v17 = vadd.f32 %v7834_v0, %v7591_v38  ;;  %v2897_v34 = vcombine.high %v2895_v3, %v2895_v3 }
 0x272   : > { %v3344_v23 = vmul.f32 %v7609_v19, %v3273_v32  ;;  %v3210_v7 = vsub.f32 %v3075_v10, %v2578_v9  ;;  %vm3478_vm11 = vcmp.ge.f32.partialorder %v3414_v49, 0.0  ;;  %v3542_v52 = vmul.f32 0.01, %v3414_v49 }
 0x273   : > { %v8043_v25 = vadd.f32 %v2580_v45, %v1839_v22  ;;  %v2583_v60 = vpop.f32.mrb[80].mxu1 }
 0x274   : > { %v3274_v18 = vadd.f32 %v3210_v7, %v1839_v22  ;;  %v2584_v13 = vadd.f32 %v2583_v60, %v7403_v2  ;;  %v2585_v5 = vpop.f32.mrb[81].mxu1  ;;  %v3606_v51 = vsel %vm3478_vm11, %v3414_v49, %v3542_v52  ;;  %v3415_v29 = vadd.f32 %v7636_v33, %v3344_v23 }
 0x275   : > { %9671 = vst [vmem:[#allocation44_spill] sm:$0xff] %v8043_v25  ;;  %v2586_v26 = vadd.f32 %v2585_v5, %v7310_v11  ;;  %6256 = vmatprep.mubr.f32.mxu0 %v3606_v51  ;;  %v3079_v49 = vrot.slane %v8046_v31, %v7395_v63  ;;  %v1849_v60 = vadd.f32 %v7591_v38, %v7843_v24  ;;  %v9718_v25 = vld [vmem:[#allocation36_spill] sm:$0xff] }
 0x276   : > { %v3345_v46 = vmul.f32 %v7609_v19, %v3274_v18  ;;  %v3211_v32 = vsub.f32 %v3075_v10, %v2584_v13  ;;  %vm3479_vm12 = vcmp.ge.f32.partialorder %v3415_v29, 0.0  ;;  %v3543_v9 = vmul.f32 0.01, %v3415_v29 }
 0x277   : > { %v8054_v4 = vadd.f32 %v2586_v26, %v1844_v17  ;;  %v2589_v22 = vpop.f32.mrb[82].mxu1 }
 0x278   : > { %v3275_v45 = vadd.f32 %v3211_v32, %v1844_v17  ;;  %v2590_v23 = vadd.f32 %v2589_v22, %v7403_v2  ;;  %v2591_v7 = vpop.f32.mrb[83].mxu1  ;;  %v3607_v0 = vsel %vm3479_vm12, %v3415_v29, %v3543_v9  ;;  %v3416_v52 = vadd.f32 %v7636_v33, %v3345_v46 }
 0x279   : > { %9672 = vst [vmem:[#allocation45_spill] sm:$0xff] %v8054_v4  ;;  %v2592_v10 = vadd.f32 %v2591_v7, %v7310_v11  ;;  %6257 = vmatmul.mubr.f32.gmra.mrb[118].mxu0 %v3607_v0  ;;  %v8067_v17 = vrot.slane %v2897_v34, %v7378_v54  ;;  %v2979_v9 = vcombine.high %v7385_v58, %v7385_v58  ;;  %v9716_v4 = vld [vmem:[#allocation35_spill] sm:$0xff] }
 0x27a   : > { %v3346_v3 = vmul.f32 %v7609_v19, %v3275_v45  ;;  %v3212_v18 = vsub.f32 %v3079_v49, %v2590_v23  ;;  %vm3480_vm13 = vcmp.ge.f32.partialorder %v3416_v52, 0.0  ;;  %v3544_v13 = vmul.f32 0.01, %v3416_v52 }
 0x27b   : > { %v8064_v5 = vadd.f32 %v2592_v10, %v1849_v60  ;;  %v2595_v51 = vpop.f32.mrb[84].mxu1  ;;  %v8075_v22 = vrot.slane %v7385_v58, %v7378_v54  ;;  %v1854_v45 = vadd.f32 %v7841_v21, %v7591_v38  ;;  %v3083_v21 = vrot.slane %v8067_v17, %v7395_v63 }
 0x27c   : > { %v3276_v29 = vadd.f32 %v3212_v18, %v1849_v60  ;;  %v2596_v26 = vadd.f32 %v2595_v51, %v7403_v2  ;;  %v2597_v46 = vpop.f32.mrb[85].mxu1  ;;  %v3608_v32 = vsel %vm3480_vm13, %v3416_v52, %v3544_v13  ;;  %v3417_v24 = vadd.f32 %v7636_v33, %v3346_v3 }
 0x27d   : > { %9673 = vst [vmem:[#allocation46_spill] sm:$0xff] %v8064_v5  ;;  %v2598_v34 = vadd.f32 %v2597_v46, %v7310_v11  ;;  %6259 = vmatprep.mubr.f32.mxu0 %v3608_v32  ;;  %v2930_v52 = vcombine.high %v7387_v59, %v7387_v59  ;;  %v2937_v60 = vrot.slane %v7387_v59, %v7378_v54 }
 0x27e   : > { %v3347_v23 = vmul.f32 %v7609_v19, %v3276_v29  ;;  %v3213_v7 = vsub.f32 %v3079_v49, %v2596_v26  ;;  %vm3481_vm14 = vcmp.ge.f32.partialorder %v3417_v24, 0.0  ;;  %v3545_v0 = vmul.f32 0.01, %v3417_v24 }
 0x27f   : > { %v8085_v10 = vadd.f32 %v2598_v34, %v1854_v45  ;;  %v2601_v58 = vpop.f32.mrb[86].mxu1  ;;  %v8092_v29 = vrot.slane %v2979_v9, %v7378_v54  ;;  %v1859_v59 = vadd.f32 %v7591_v38, %v7850_v14  ;;  %v8105_v9 = vrot.slane %v2930_v52, %v7378_v54 }
 0x280   : > { %v3277_v3 = vadd.f32 %v3213_v7, %v1854_v45  ;;  %v2602_v18 = vadd.f32 %v2601_v58, %v7403_v2  ;;  %v2603_v13 = vpop.f32.mrb[87].mxu1  ;;  %v3609_v51 = vsel %vm3481_vm14, %v3417_v24, %v3545_v0  ;;  %v3418_v49 = vadd.f32 %v7636_v33, %v3347_v23 }
 0x281   : > { %9674 = vst [vmem:[#allocation47_spill] sm:$0xff] %v8085_v10  ;;  %v2604_v46 = vadd.f32 %v2603_v13, %v7310_v11  ;;  %6260 = vmatmul.mubr.f32.gmra.mrb[120].mxu0 %v3609_v51  ;;  %v8102_v24 = vrot.slane %v8075_v22, %v7378_v54  ;;  %v2927_v14 = vcombine.high %v8046_v31, %v8046_v31 }
 0x282   : > { %v3348_v32 = vmul.f32 %v7609_v19, %v3277_v3  ;;  %v3214_v45 = vsub.f32 %v3083_v21, %v2602_v18  ;;  %vm3482_vm15 = vcmp.ge.f32.partialorder %v3418_v49, 0.0  ;;  %v3546_v34 = vmul.f32 0.01, %v3418_v49 }
 0x283   : > { %v8107_v23 = vadd.f32 %v2604_v46, %v1859_v59  ;;  %v2607_v7 = vpop.f32.mrb[88].mxu1  ;;  %v2945_v51 = vcombine.high %v2937_v60, %v2937_v60  ;;  %v2953_v26 = vrot.slane %v2937_v60, %v7378_v54  ;;  %v1864_v52 = vadd.f32 %v7848_v15, %v7591_v38 }
 0x284   : > { %v3278_v0 = vadd.f32 %v3214_v45, %v1859_v59  ;;  %v2608_v58 = vadd.f32 %v2607_v7, %v7403_v2  ;;  %v2609_v3 = vpop.f32.mrb[89].mxu1  ;;  %v3610_v18 = vsel %vm3482_vm15, %v3418_v49, %v3546_v34  ;;  %v3419_v13 = vadd.f32 %v7636_v33, %v3348_v32 }
 0x285   : > { %9675 = vst [vmem:[#allocation48_spill] sm:$0xff] %v8107_v23  ;;  %v2610_v46 = vadd.f32 %v2609_v3, %v7310_v11  ;;  %6262 = vmatprep.mubr.f32.mxu0 %v3610_v18  ;;  %v3087_v45 = vrot.slane %v2927_v14, %v7395_v63  ;;  %v2929_v60 = vcombine.high %v8067_v17, %v8067_v17 }
 0x286   : > { %v3349_v23 = vmul.f32 %v7609_v19, %v3278_v0  ;;  %v3215_v10 = vsub.f32 %v3083_v21, %v2608_v58  ;;  %vm3483_vm0 = vcmp.ge.f32.partialorder %v3419_v13, 0.0  ;;  %v3547_v31 = vmul.f32 0.01, %v3419_v13 }
 0x287   : > { %v8120_v49 = vadd.f32 %v2610_v46, %v1864_v52  ;;  %v2613_v32 = vpop.f32.mrb[90].mxu1  ;;  %v2946_v0 = vcombine.high %v8105_v9, %v8105_v9  ;;  %v1869_v58 = vadd.f32 %v7591_v38, %v7857_v57  ;;  %v2967_v14 = vrot.slane %v2945_v51, %v7378_v54 }
 0x288   : > { %v3279_v15 = vadd.f32 %v3215_v10, %v1864_v52  ;;  %v2614_v34 = vadd.f32 %v2613_v32, %v7403_v2  ;;  %v2615_v7 = vpop.f32.mrb[91].mxu1  ;;  %v3611_v3 = vsel %vm3483_vm0, %v3419_v13, %v3547_v31  ;;  %v3420_v21 = vadd.f32 %v7636_v33, %v3349_v23 }
 0x289   : > { %9676 = vst [vmem:[#allocation49_spill] sm:$0xff] %v8120_v49  ;;  %v2616_v18 = vadd.f32 %v2615_v7, %v7310_v11  ;;  %6263 = vmatmul.mubr.f32.gmra.mrb[122].mxu0 %v3611_v3  ;;  %v8137_v23 = vrot.slane %v2929_v60, %v7395_v63  ;;  %v8140_v31 = vrot.slane %v2953_v26, %v7395_v63 }
 0x28a   : > { %v3350_v17 = vmul.f32 %v7609_v19, %v3279_v15  ;;  %v3216_v10 = vsub.f32 %v3087_v45, %v2614_v34  ;;  %vm3484_vm1 = vcmp.ge.f32.partialorder %v3420_v21, 0.0  ;;  %v3548_v52 = vmul.f32 0.01, %v3420_v21  ;;  %v8147_v15 = vld [vmem:[%s9589_s10] ss:$0 sm:$0xff] }
 0x28b   : > { %v8134_v46 = vadd.f32 %v2616_v18, %v1869_v58  ;;  %v2619_v13 = vpop.f32.mrb[92].mxu1  ;;  %v2975_v38 = vcombine.high %v2953_v26, %v2953_v26  ;;  %v1874_v60 = vadd.f32 %v8147_v15, %v7855_v50  ;;  %v8153_v26 = vrot.slane %v2967_v14, %v7395_v63 }
 0x28c   : > { %v3280_v57 = vadd.f32 %v3216_v10, %v1869_v58  ;;  %v2620_v32 = vadd.f32 %v2619_v13, %v7403_v2  ;;  %v2621_v7 = vpop.f32.mrb[93].mxu1  ;;  %v3612_v51 = vsel %vm3484_vm1, %v3420_v21, %v3548_v52  ;;  %v3421_v19 = vadd.f32 %v7636_v33, %v3350_v17  ;;  %v8160_v33 = vld [vmem:[%s9590_s11] ss:$0 sm:$0xff] }
 0x28d   : > { %9677 = vst [vmem:[#allocation50_spill] sm:$0xff] %v8134_v46  ;;  %v2622_v34 = vadd.f32 %v2621_v7, %v7310_v11  ;;  %6265 = vmatprep.mubr.f32.mxu0 %v3612_v51  ;;  %v2960_v3 = vrot.slane %v8105_v9, %v7378_v54  ;;  %v8166_v10 = vrot.slane %v2975_v38, %v7395_v63 }
 0x28e   : > { %v3351_v21 = vmul.f32 %v8160_v33, %v3280_v57  ;;  %v3217_v58 = vsub.f32 %v3087_v45, %v2620_v32  ;;  %vm3485_vm3 = vcmp.ge.f32.partialorder %v3421_v19, 0.0  ;;  %v3549_v18 = vmul.f32 0.01, %v3421_v19  ;;  %v8175_v45 = vld [vmem:[%s9591_s12] ss:$0 sm:$0xff] }
 0x28f   : > { %v8163_v50 = vadd.f32 %v2622_v34, %v1874_v60  ;;  %v2625_v17 = vpop.f32.mrb[94].mxu1  ;;  %v2977_v52 = vcombine.high %v2967_v14, %v2967_v14  ;;  %v8169_v13 = vrot.slane %v2946_v0, %v7378_v54  ;;  %v1879_v38 = vadd.f32 %v8147_v15, %v7864_v61 }
 0x290   : > { %v3281_v9 = vadd.f32 %v3217_v58, %v1874_v60  ;;  %v2626_v7 = vadd.f32 %v2625_v17, %v7403_v2  ;;  %v2627_v51 = vpop.f32.mrb[95].mxu1  ;;  %v3613_v59 = vsel %vm3485_vm3, %v3421_v19, %v3549_v18  ;;  %v3422_v57 = vadd.f32 %v8175_v45, %v3351_v21 }
 0x291   : > { %9678 = vst [vmem:[#allocation51_spill] sm:$0xff] %v8163_v50  ;;  %v2628_v14 = vadd.f32 %v2627_v51, %v7310_v11  ;;  %6266 = vmatmul.mubr.f32.gmra.mrb[124].mxu0 %v3613_v59  ;;  %v8182_v0 = vrot.slane %v2960_v3, %v7395_v63  ;;  %v2976_v32 = vcombine.high %v2960_v3, %v2960_v3 }
 0x292   : > { %v3352_v60 = vmul.f32 %v8160_v33, %v3281_v9  ;;  %v3218_v19 = vsub.f32 %v8137_v23, %v2626_v7  ;;  %vm3486_vm4 = vcmp.ge.f32.partialorder %v3422_v57, 0.0  ;;  %v3550_v34 = vmul.f32 0.01, %v3422_v57 }
 0x293   : > { %v1884_v58 = vadd.f32 %v8147_v15, %v7862_v28  ;;  %v8188_v21 = vadd.f32 %v2628_v14, %v1879_v38  ;;  %v2631_v18 = vpop.f32.mrb[96].mxu1  ;;  %v8191_v61 = vrot.slane %v2977_v52, %v7395_v63  ;;  %v8195_v59 = vrot.slane %v8169_v13, %v7395_v63 }
 0x294   : > { %v3282_v3 = vadd.f32 %v3218_v19, %v1879_v38  ;;  %v2632_v17 = vadd.f32 %v2631_v18, %v7403_v2  ;;  %v2633_v9 = vpop.f32.mrb[97].mxu1  ;;  %v3614_v7 = vsel %vm3486_vm4, %v3422_v57, %v3550_v34  ;;  %v3423_v51 = vadd.f32 %v8175_v45, %v3352_v60 }
 0x295   : > { %9679 = vst [vmem:[#allocation52_spill] sm:$0xff] %v8188_v21  ;;  %v1894_v28 = vadd.f32 %v8147_v15, %v7869_v47  ;;  %v1889_v14 = vadd.f32 %v8147_v15, %v7871_v20  ;;  %v2634_v52 = vadd.f32 %v2633_v9, %v7310_v11  ;;  %6268 = vmatprep.mubr.f32.mxu0 %v3614_v7 }
 0x296   : > { %v8205_v21 = vrot.slane %v2976_v32, %v7395_v63  ;;  %v3353_v38 = vmul.f32 %v8160_v33, %v3282_v3  ;;  %v3219_v19 = vsub.f32 %v8137_v23, %v2632_v17  ;;  %vm3487_vm5 = vcmp.ge.f32.partialorder %v3423_v51, 0.0 }
 0x297   : > { %v3551_v57 = vmul.f32 0.01, %v3423_v51  ;;  %v8211_v60 = vadd.f32 %v8147_v15, %v7876_v55  ;;  %v1899_v47 = vadd.f32 %v8147_v15, %v7878_v27  ;;  %v8217_v20 = vadd.f32 %v8147_v15, %v7883_v40  ;;  %v2637_v32 = vpop.f32.mrb[98].mxu1 }
 0x298   : > { %v8219_v34 = vadd.f32 %v2634_v52, %v1884_v58  ;;  %v3283_v18 = vadd.f32 %v3219_v19, %v1884_v58  ;;  %v2638_v3 = vadd.f32 %v2637_v32, %v7403_v2  ;;  %v2639_v23 = vpop.f32.mrb[99].mxu1  ;;  %v3424_v9 = vadd.f32 %v8175_v45, %v3353_v38 }
 0x299   : > { %v3615_v17 = vsel %vm3487_vm5, %v3423_v51, %v3551_v57  ;;  %v8225_v55 = vadd.f32 %v8147_v15, %v7885_v43  ;;  %v8229_v27 = vadd.f32 %v8147_v15, %v7890_v8  ;;  %v2640_v40 = vadd.f32 %v2639_v23, %v7310_v11 }
 0x29a   : > { %9680 = vst [vmem:[#allocation53_spill] sm:$0xff] %v8219_v34  ;;  %6269 = vmatmul.mubr.f32.gmra.mrb[126].mxu0 %v3615_v17  ;;  %v2978_v58 = vcombine.high %v8169_v13, %v8169_v13  ;;  %v3354_v7 = vmul.f32 %v8160_v33, %v3283_v18  ;;  %v3220_v51 = vsub.f32 %v8140_v31, %v2638_v3  ;;  %vm3488_vm6 = vcmp.ge.f32.partialorder %v3424_v9, 0.0 }
 0x29b   : > { %v3552_v52 = vmul.f32 0.01, %v3424_v9  ;;  %v8238_v43 = vadd.f32 %v8147_v15, %v7892_v44  ;;  %v8242_v8 = vadd.f32 %v8147_v15, %v7897_v30  ;;  %v8244_v38 = vadd.f32 %v2640_v40, %v1889_v14  ;;  %v2643_v19 = vpop.f32.mrb[100].mxu1 }
 0x29c   : > { %v8248_v13 = vrot.slane %v8102_v24, %v7395_v63  ;;  %v3284_v57 = vadd.f32 %v3220_v51, %v1889_v14  ;;  %v2644_v32 = vadd.f32 %v2643_v19, %v7403_v2  ;;  %v2645_v18 = vpop.f32.mrb[101].mxu1  ;;  %v3425_v23 = vadd.f32 %v8175_v45, %v3354_v7 }
 0x29d   : > { %9681 = vst [vmem:[#allocation54_spill] sm:$0xff] %v8244_v38  ;;  %v3616_v3 = vsel %vm3488_vm6, %v3424_v9, %v3552_v52  ;;  %v8254_v44 = vadd.f32 %v8147_v15, %v7899_v62  ;;  %v8258_v30 = vadd.f32 %v8147_v15, %v7904_v35  ;;  %v2646_v17 = vadd.f32 %v2645_v18, %v7310_v11 }
 0x29e   : > { %6271 = vmatprep.mubr.f32.mxu0 %v3616_v3  ;;  %v8262_v40 = vrot.slane %v2978_v58, %v7395_v63  ;;  %v3355_v14 = vmul.f32 %v8160_v33, %v3284_v57  ;;  %v3221_v9 = vsub.f32 %v8140_v31, %v2644_v32  ;;  %vm3489_vm2 = vcmp.ge.f32.partialorder %v3425_v23, 0.0 }
 0x29f   : > { %v3553_v7 = vmul.f32 0.01, %v3425_v23  ;;  %v8268_v62 = vadd.f32 %v8147_v15, %v7906_v56  ;;  %v8270_v51 = vadd.f32 %v2646_v17, %v1894_v28  ;;  %v2649_v35 = vpop.f32.mrb[102].mxu1  ;;  %v9683_v52 = vcombine.high %v8075_v22, %v8075_v22 }
 0x2a0   : > { %v3024_v58 = vcombine.high %v8102_v24, %v8102_v24  ;;  %v3285_v57 = vadd.f32 %v3221_v9, %v1894_v28  ;;  %v2650_v31 = vadd.f32 %v2649_v35, %v7403_v2  ;;  %v2651_v32 = vpop.f32.mrb[103].mxu1  ;;  %v3426_v3 = vadd.f32 %v8175_v45, %v3355_v14 }
 0x2a1   : > { %9682 = vst [vmem:[#allocation55_spill] sm:$0xff] %v8270_v51  ;;  %v3016_v19 = vrot.slane %v9683_v52, %v7378_v54  ;;  %v3617_v18 = vsel %vm3489_vm2, %v3425_v23, %v3553_v7  ;;  %v8282_v56 = vadd.f32 %v8147_v15, %v7911_v36  ;;  %v8286_v17 = vadd.f32 %v8147_v15, %v7913_v1 }
 0x2a2   : > { %v2652_v22 = vadd.f32 %v2651_v32, %v7310_v11  ;;  %6272 = vmatmul.mubr.f32.gmra.mrb[128].mxu0 %v3617_v18  ;;  %v3009_v24 = vrot.slane %v8092_v29, %v7378_v54  ;;  %v3356_v28 = vmul.f32 %v8160_v33, %v3285_v57  ;;  %v3222_v23 = vsub.f32 %v8153_v26, %v2650_v31 }
 0x2a3   : > { %vm3490_vm7 = vcmp.ge.f32.partialorder %v3426_v3, 0.0  ;;  %v3554_v14 = vmul.f32 0.01, %v3426_v3  ;;  %v2655_v36 = vpop.f32.mrb[104].mxu1  ;;  %v8296_v7 = vrot.slane %v3016_v19, %v7395_v63  ;;  %v8299_v1 = vrot.slane %v3024_v58, %v7395_v63 }
 0x2a4   : > { %v8293_v9 = vadd.f32 %v2652_v22, %v1899_v47  ;;  %v9685_v35 = vcombine.high %v8092_v29, %v8092_v29  ;;  %v3286_v32 = vadd.f32 %v3222_v23, %v1899_v47  ;;  %v2656_v57 = vadd.f32 %v2655_v36, %v7403_v2  ;;  %v2657_v31 = vpop.f32.mrb[105].mxu1 }
 0x2a5   : > { %v3618_v18 = vsel %vm3490_vm7, %v3426_v3, %v3554_v14  ;;  %v3427_v22 = vadd.f32 %v8175_v45, %v3356_v28  ;;  %v2658_v51 = vadd.f32 %v2657_v31, %v7310_v11  ;;  %v3026_v58 = vcombine.high %v3016_v19, %v3016_v19 }
 0x2a6   : > { %9684 = vst [vmem:[#allocation56_spill] sm:$0xff] %v8293_v9  ;;  %v3023_v52 = vrot.slane %v9685_v35, %v7378_v54  ;;  %v8309_v9 = vadd.f32 %v8147_v15, %v7918_v6  ;;  %6274 = vmatprep.mubr.f32.mxu0 %v3618_v18  ;;  %v3025_v38 = vcombine.high %v3009_v24, %v3009_v24 }
 0x2a7   : > { %v3357_v34 = vmul.f32 %v8160_v33, %v3286_v32  ;;  %v3223_v54 = vsub.f32 %v8153_v26, %v2656_v57  ;;  %vm3491_vm8 = vcmp.ge.f32.partialorder %v3427_v22, 0.0  ;;  %v3555_v29 = vmul.f32 0.01, %v3427_v22  ;;  %v2661_v6 = vpop.f32.mrb[106].mxu1 }
 0x2a8   : > { %v8316_v47 = vadd.f32 %v8147_v15, %v7920_v41  ;;  %v8319_v3 = vadd.f32 %v2658_v51, %v8211_v60  ;;  %v8322_v28 = vrot.slane %v3009_v24, %v7395_v63  ;;  %v3027_v23 = vcombine.high %v3023_v52, %v3023_v52  ;;  %v2663_v36 = vpop.f32.mrb[107].mxu1 }
 0x2a9   : > { %v3287_v19 = vadd.f32 %v3223_v54, %v8211_v60  ;;  %v2662_v14 = vadd.f32 %v2661_v6, %v7403_v2  ;;  %v3619_v26 = vsel %vm3491_vm8, %v3427_v22, %v3555_v29  ;;  %v3428_v35 = vadd.f32 %v8175_v45, %v3357_v34 }
 0x2aa   : > { %9686 = vst [vmem:[#allocation57_spill] sm:$0xff] %v8319_v3  ;;  %9687 = vst [vmem:[#allocation58_spill] sm:$0xff] %v8322_v28  ;;  %v2664_v32 = vadd.f32 %v2663_v36, %v7310_v11  ;;  %6275 = vmatmul.mubr.f32.gmra.mrb[130].mxu0 %v3619_v26  ;;  %v8329_v41 = vrot.slane %v3026_v58, %v7395_v63  ;;  %v8332_v51 = vrot.slane %v3023_v52, %v7395_v63  ;;  %v9694_v36 = vld [vmem:[#allocation25_spill] sm:$0xff]  ;;  %v9707_v3 = vld [vmem:[#allocation31_spill] sm:$0xff] }
 0x2ab   : > { %v8335_v24 = vrot.slane %v3025_v38, %v7395_v63  ;;  %v3358_v60 = vmul.f32 %v8160_v33, %v3287_v19  ;;  %v3224_v57 = vsub.f32 %v8166_v10, %v2662_v14  ;;  %vm3492_vm9 = vcmp.ge.f32.partialorder %v3428_v35, 0.0  ;;  %v2667_v22 = vpop.f32.mrb[108].mxu1 }
 0x2ac   : > { %9688 = vst [vmem:[#allocation59_spill] sm:$0xff] %v8329_v41  ;;  %9689 = vst [vmem:[#allocation60_spill] sm:$0xff] %v8332_v51  ;;  %v3556_v31 = vmul.f32 0.01, %v3428_v35  ;;  %v8341_v34 = vadd.f32 %v8147_v15, %v7925_v39  ;;  %v8345_v18 = vadd.f32 %v8147_v15, %v7927_v37  ;;  %v8348_v52 = vadd.f32 %v2664_v32, %v8225_v55  ;;  %v2669_v29 = vpop.f32.mrb[109].mxu1  ;;  %v9693_v37 = vld [vmem:[#allocation24_spill] sm:$0xff] }
 0x2ad   : > { %9690 = vst [vmem:[#allocation61_spill] sm:$0xff] %v8335_v24  ;;  %v8351_v38 = vrot.slane %v3027_v23, %v7395_v63  ;;  %v3288_v58 = vadd.f32 %v3224_v57, %v8225_v55  ;;  %v2668_v54 = vadd.f32 %v2667_v22, %v7403_v2  ;;  %v3429_v39 = vadd.f32 %v8175_v45, %v3358_v60  ;;  %v9696_v32 = vld [vmem:[#allocation26_spill] sm:$0xff]  ;;  %v9698_v60 = vld [vmem:[#allocation27_spill] sm:$0xff] }
 0x2ae   : > { %9691 = vst [vmem:[#allocation62_spill] sm:$0xff] %v8348_v52  ;;  %v3620_v6 = vsel %vm3492_vm9, %v3428_v35, %v3556_v31  ;;  %v8358_v19 = vadd.f32 %v8147_v15, %v7932_v42  ;;  %v8362_v14 = vadd.f32 %v8147_v15, %v9693_v37  ;;  %v8366_v63 = vadd.f32 %v8147_v15, %v9694_v36  ;;  %v9700_v31 = vld [vmem:[#allocation28_spill] sm:$0xff]  ;;  %v9705_v52 = vld [vmem:[#allocation30_spill] sm:$0xff] }
 0x2af   : > { %9692 = vst [vmem:[#allocation63_spill] sm:$0xff] %v8351_v38  ;;  %v2670_v55 = vadd.f32 %v2669_v29, %v7310_v11  ;;  %6277 = vmatprep.mubr.f32.mxu0 %v3620_v6  ;;  %v3359_v23 = vmul.f32 %v8160_v33, %v3288_v58  ;;  %v3225_v26 = vsub.f32 %v8166_v10, %v2668_v54  ;;  %vm3493_vm10 = vcmp.ge.f32.partialorder %v3429_v39, 0.0  ;;  %v2673_v58 = vpop.f32.mrb[110].mxu1 }
 0x2b0   : > { %9695 = vst [vmem:[#allocation24_spill] sm:$0xff] %v8366_v63  ;;  %v3557_v35 = vmul.f32 0.01, %v3429_v39  ;;  %v8373_v42 = vadd.f32 %v8147_v15, %v9696_v32  ;;  %v8377_v57 = vadd.f32 %v8147_v15, %v9698_v60  ;;  %v8381_v22 = vadd.f32 %v8147_v15, %v9700_v31  ;;  %v2675_v6 = vpop.f32.mrb[111].mxu1  ;;  %v9703_v32 = vld [vmem:[#allocation29_spill] sm:$0xff] }
 0x2b1   : > { %v8384_v29 = vadd.f32 %v2670_v55, %v8217_v20  ;;  %v3289_v10 = vadd.f32 %v3225_v26, %v8217_v20  ;;  %v2674_v54 = vadd.f32 %v2673_v58, %v7403_v2  ;;  %v3430_v36 = vadd.f32 %v8175_v45, %v3359_v23  ;;  %v8407_v23 = vld [vmem:[%s9593_s14] ss:$0 sm:$0xff] }
 0x2b2   : > { %9697 = vst [vmem:[#allocation25_spill] sm:$0xff] %v8373_v42  ;;  %9699 = vst [vmem:[#allocation26_spill] sm:$0xff] %v8377_v57  ;;  %v3621_v37 = vsel %vm3493_vm10, %v3429_v39, %v3557_v35  ;;  %v8391_v60 = vadd.f32 %v8147_v15, %v9703_v32  ;;  %v8395_v31 = vadd.f32 %v8147_v15, %v9705_v52  ;;  %v9709_v52 = vld [vmem:[#allocation32_spill] sm:$0xff] }
 0x2b3   : > { %9701 = vst [vmem:[#allocation27_spill] sm:$0xff] %v8381_v22  ;;  %9702 = vst [vmem:[#allocation28_spill] sm:$0xff] %v8384_v29  ;;  %v8399_v55 = vadd.f32 %v8147_v15, %v9707_v3  ;;  %v2676_v20 = vadd.f32 %v2675_v6, %v7310_v11  ;;  %6278 = vmatmul.mubr.f32.gmra.mrb[132].mxu0 %v3621_v37  ;;  %v3360_v26 = vmul.f32 %v8160_v33, %v3289_v10  ;;  %v9711_v3 = vld [vmem:[#allocation33_spill] sm:$0xff]  ;;  %v9713_v6 = vld [vmem:[#allocation34_spill] sm:$0xff]  ;;  %v2679_v37 = vpop.f32.mrb[112].mxu1 }
 0x2b4   : > { %9704 = vst [vmem:[#allocation29_spill] sm:$0xff] %v8391_v60  ;;  %9706 = vst [vmem:[#allocation30_spill] sm:$0xff] %v8395_v31  ;;  %v3226_v39 = vsub.f32 %v8191_v61, %v2674_v54  ;;  %vm3494_vm11 = vcmp.ge.f32.partialorder %v3430_v36, 0.0  ;;  %v3558_v35 = vmul.f32 0.01, %v3430_v36  ;;  %v8411_v58 = vadd.f32 %v8147_v15, %v9709_v52  ;;  %v2681_v46 = vpop.f32.mrb[113].mxu1 }
 0x2b5   : > { %9708 = vst [vmem:[#allocation31_spill] sm:$0xff] %v8399_v55  ;;  %v8415_v32 = vadd.f32 %v8147_v15, %v9711_v3  ;;  %v8419_v10 = vadd.f32 %v8147_v15, %v9713_v6  ;;  %v8422_v54 = vadd.f32 %v2676_v20, %v8238_v43  ;;  %v2680_v50 = vadd.f32 %v2679_v37, %v7403_v2  ;;  %v6228_v49 = vpop.f32.mrb[98].mxu0 }
 0x2b6   : > { %9710 = vst [vmem:[#allocation32_spill] sm:$0xff] %v8411_v58  ;;  %v3290_v29 = vadd.f32 %v3226_v39, %v8238_v43  ;;  %v3622_v52 = vsel %vm3494_vm11, %v3430_v36, %v3558_v35  ;;  %v3431_v5 = vadd.f32 %v8175_v45, %v3360_v26  ;;  %v8429_v3 = vadd.f32 %v8147_v15, %v9716_v4  ;;  %v3739_v43 = vpop.f32.mrb[99].mxu0 }
 0x2b7   : > { %9712 = vst [vmem:[#allocation33_spill] sm:$0xff] %v8415_v32  ;;  %9714 = vst [vmem:[#allocation34_spill] sm:$0xff] %v8419_v10  ;;  %v8433_v6 = vadd.f32 %v8147_v15, %v9718_v25  ;;  %v2682_v20 = vadd.f32 %v2681_v46, %v7310_v11  ;;  %6280 = vmatprep.mubr.f32.mxu0 %v3622_v52  ;;  %v3227_v36 = vsub.f32 %v8191_v61, %v2680_v50  ;;  %v2685_v25 = vpop.f32.mrb[114].mxu1 }
 0x2b8   : > { %9715 = vst [vmem:[#allocation64_spill] sm:$0xff] %v8422_v54  ;;  %9717 = vst [vmem:[#allocation35_spill] sm:$0xff] %v8429_v3  ;;  %v3745_v54 = vadd.f32 %v6228_v49, %v8407_v23  ;;  %v3361_v39 = vmul.f32 %v8160_v33, %v3290_v29  ;;  %v3740_v26 = vadd.f32 %v8407_v23, %v3739_v43  ;;  %vm3495_vm12 = vcmp.ge.f32.partialorder %v3431_v5, 0.0  ;;  %v2687_v52 = vpop.f32.mrb[115].mxu1  ;;  %v6231_v29 = vpop.f32.mrb[100].mxu0 }
 0x2b9   : > { %9719 = vst [vmem:[#allocation36_spill] sm:$0xff] %v8433_v6  ;;  %v8441_v4 = vadd.f32 %v2682_v20, %v8229_v27  ;;  %v3559_v15 = vmul.f32 0.01, %v3431_v5  ;;  %v3291_v46 = vadd.f32 %v3227_v36, %v8229_v27  ;;  %v2686_v37 = vadd.f32 %v2685_v25, %v7403_v2  ;;  %v3749_v20 = vpop.f32.mrb[101].mxu0 }
 0x2ba   : > { %vm4059_vm13 = vcmp.ge.f32.partialorder %v3745_v54, 0.0  ;;  %v4123_v35 = vmul.f32 0.01, %v3745_v54  ;;  %vm4058_vm14 = vcmp.ge.f32.partialorder %v3740_v26, 0.0  ;;  %v4122_v49 = vmul.f32 0.01, %v3740_v26 }
 0x2bb   : > { %9720 = vst [vmem:[#allocation65_spill] sm:$0xff] %v8441_v4  ;;  %v2688_v50 = vadd.f32 %v2687_v52, %v7310_v11  ;;  %v3755_v61 = vadd.f32 %v6231_v29, %v8407_v23  ;;  %v3623_v43 = vsel %vm3495_vm12, %v3431_v5, %v3559_v15  ;;  %v8451_v4 = vmul.f32 %v8160_v33, %v3291_v46  ;;  %v2691_v52 = vpop.f32.mrb[116].mxu1 }
 0x2bc   : > { %v8445_v12 = vsel %vm4059_vm13, %v3745_v54, %v4123_v35  ;;  %v8453_v48 = vsel %vm4058_vm14, %v3740_v26, %v4122_v49  ;;  %v3228_v27 = vsub.f32 %v8182_v0, %v2686_v37  ;;  %v3750_v36 = vadd.f32 %v8407_v23, %v3749_v20  ;;  %6281 = vmatmul.mubr.f32.gmra.mrb[134].mxu0 %v3623_v43  ;;  %v2693_v46 = vpop.f32.mrb[117].mxu1 }
 0x2bd   : > { %v4250_v54 = vmax.f32 %v8453_v48, %v8445_v12  ;;  %v8460_v35 = vadd.f32 %v2688_v50, %v8254_v44  ;;  %vm4061_vm15 = vcmp.ge.f32.partialorder %v3755_v61, 0.0  ;;  %v4125_v25 = vmul.f32 0.01, %v3755_v61  ;;  %v6234_v49 = vpop.f32.mrb[102].mxu0 }
 0x2be   : > { %v3292_v5 = vadd.f32 %v3228_v27, %v8254_v44  ;;  %vm4060_vm0 = vcmp.ge.f32.partialorder %v3750_v36, 0.0  ;;  %v4124_v15 = vmul.f32 0.01, %v3750_v36  ;;  %v2692_v26 = vadd.f32 %v2691_v52, %v7403_v2  ;;  %v3759_v50 = vpop.f32.mrb[103].mxu0 }
 0x2bf   : > { %9721 = vst [vmem:[#allocation66_spill] sm:$0xff] %v8460_v35  ;;  %v4251_v37 = vrot.slane %v4250_v54, 4  ;;  %v8464_v29 = vsel %vm4061_vm15, %v3755_v61, %v4125_v25  ;;  %v2694_v20 = vadd.f32 %v2693_v46, %v7310_v11  ;;  %v3765_v43 = vadd.f32 %v6234_v49, %v8407_v23  ;;  %v2697_v25 = vpop.f32.mrb[118].mxu1 }
 0x2c0   : > { %v8469_v35 = vmul.f32 %v8160_v33, %v3292_v5  ;;  %v8471_v53 = vsel %vm4060_vm0, %v3750_v36, %v4124_v15  ;;  %v3229_v44 = vsub.f32 %v8182_v0, %v2692_v26  ;;  %v3760_v27 = vadd.f32 %v8407_v23, %v3759_v50  ;;  %v2699_v36 = vpop.f32.mrb[119].mxu1 }
 0x2c1   : > { %v4252_v52 = vmax.f32 %v4250_v54, %v4251_v37  ;;  %v4257_v16 = vmax.f32 %v8471_v53, %v8464_v29  ;;  %v8478_v61 = vadd.f32 %v2694_v20, %v8242_v8  ;;  %vm4063_vm1 = vcmp.ge.f32.partialorder %v3765_v43, 0.0 }
 0x2c2   : > { %v3293_v46 = vadd.f32 %v3229_v44, %v8242_v8  ;;  %v4127_v49 = vmul.f32 0.01, %v3765_v43  ;;  %vm4062_vm3 = vcmp.ge.f32.partialorder %v3760_v27, 0.0  ;;  %v4126_v5 = vmul.f32 0.01, %v3760_v27  ;;  %v6237_v26 = vpop.f32.mrb[104].mxu0 }
 0x2c3   : > { %9722 = vst [vmem:[#allocation67_spill] sm:$0xff] %v8478_v61  ;;  %v4253_v15 = vrot.slane %v4252_v52, 2  ;;  %v4258_v3 = vrot.slane %v4257_v16, 4  ;;  %v3432_v0 = vadd.f32 %v8175_v45, %v3361_v39  ;;  %v2698_v54 = vadd.f32 %v2697_v25, %v7403_v2  ;;  %v3769_v44 = vpop.f32.mrb[105].mxu0  ;;  %v2703_v39 = vpop.f32.mrb[120].mxu1 }
 0x2c4   : > { %v8484_v37 = vmul.f32 %v8160_v33, %v3293_v46  ;;  %v8486_v20 = vsel %vm4063_vm1, %v3765_v43, %v4127_v49  ;;  %v8488_v50 = vsel %vm4062_vm3, %v3760_v27, %v4126_v5  ;;  %v2700_v8 = vadd.f32 %v2699_v36, %v7310_v11  ;;  %v2705_v27 = vpop.f32.mrb[121].mxu1 }
 0x2c5   : > { %v4254_v61 = vmax.f32 %v4252_v52, %v4253_v15  ;;  %v4259_v6 = vmax.f32 %v4257_v16, %v4258_v3  ;;  %v4264_v38 = vmax.f32 %v8488_v50, %v8486_v20  ;;  %vm3496_vm4 = vcmp.ge.f32.partialorder %v3432_v0, 0.0 }
 0x2c6   : > { %v3560_v32 = vmul.f32 0.01, %v3432_v0  ;;  %v3230_v25 = vsub.f32 %v8195_v59, %v2698_v54  ;;  %v8495_v46 = vadd.f32 %v2700_v8, %v8268_v62  ;;  %v3775_v43 = vadd.f32 %v6237_v26, %v8407_v23  ;;  %v6240_v49 = vpop.f32.mrb[106].mxu0 }
 0x2c7   : > { %v4255_v5 = vrot.slane %v4254_v61, 1  ;;  %v4260_v36 = vrot.slane %v4259_v6, 2  ;;  %v4265_v10 = vrot.slane %v4264_v38, 4  ;;  %v3770_v16 = vadd.f32 %v8407_v23, %v3769_v44  ;;  %v3779_v3 = vpop.f32.mrb[107].mxu0  ;;  %v2709_v8 = vpop.f32.mrb[122].mxu1 }
 0x2c8   : > { %9723 = vst [vmem:[#allocation68_spill] sm:$0xff] %v8495_v46  ;;  %v3624_v52 = vsel %vm3496_vm4, %v3432_v0, %v3560_v32  ;;  %v3294_v15 = vadd.f32 %v3230_v25, %v8268_v62  ;;  %vm4065_vm5 = vcmp.ge.f32.partialorder %v3775_v43, 0.0  ;;  %v4129_v24 = vmul.f32 0.01, %v3775_v43  ;;  %v2711_v32 = vpop.f32.mrb[123].mxu1 }
 0x2c9   : > { %v4256_v55 = vmax.f32 %v4254_v61, %v4255_v5  ;;  %v4261_v54 = vmax.f32 %v4259_v6, %v4260_v36  ;;  %v4266_v58 = vmax.f32 %v4264_v38, %v4265_v10  ;;  %6283 = vmatprep.mubr.f32.mxu0 %v3624_v52  ;;  %vm4064_vm6 = vcmp.ge.f32.partialorder %v3770_v16, 0.0 }
 0x2ca   : > { %v8501_v26 = vmul.f32 %v8160_v33, %v3294_v15  ;;  %v8503_v46 = vsel %vm4065_vm5, %v3775_v43, %v4129_v24  ;;  %v4128_v51 = vmul.f32 0.01, %v3770_v16  ;;  %v3433_v44 = vadd.f32 %v8175_v45, %v8451_v4 }
 0x2cb   : > { %v8507_v0 = vpop.f32.mrb[108].mxu0  ;;  %v4474_v62 = vsub.f32 %v8453_v48, %v4256_v55  ;;  %v4475_v6 = vsub.f32 %v8445_v12, %v4256_v55  ;;  %v4262_v38 = vrot.slane %v4261_v54, 1  ;;  %v4267_v10 = vrot.slane %v4266_v58, 2  ;;  %v8516_v15 = vpop.f32.mrb[124].mxu1 }
 0x2cc   : > { %v8511_v61 = vpop.f32.mrb[109].mxu0  ;;  %v8513_v25 = vsel %vm4064_vm6, %v3770_v16, %v4128_v51  ;;  %vm3497_vm2 = vcmp.ge.f32.partialorder %v3433_v44, 0.0  ;;  %v3561_v24 = vmul.f32 0.01, %v3433_v44  ;;  %v2704_v43 = vadd.f32 %v2703_v39, %v7403_v2  ;;  %v8522_v51 = vpop.f32.mrb[125].mxu1 }
 0x2cd   : > { %v4538_v5 = vmul.f32 1.442695, %v4474_v62  ;;  %v4540_v36 = vmul.f32 1.442695, %v4475_v6  ;;  %v4263_v4 = vmax.f32 %v4261_v54, %v4262_v38  ;;  %v4268_v52 = vmax.f32 %v4266_v58, %v4267_v10 }
 0x2ce   : > { %v4271_v48 = vmax.f32 %v8513_v25, %v8503_v46  ;;  %v3625_v12 = vsel %vm3497_vm2, %v3433_v44, %v3561_v24  ;;  %v3231_v55 = vsub.f32 %v8195_v59, %v2704_v43  ;;  %v2706_v60 = vadd.f32 %v2705_v27, %v7310_v11 }
 0x2cf   : > { %6453 = vpow2.f32 %v4538_v5  ;;  %v4476_v39 = vsub.f32 %v8471_v53, %v4263_v4  ;;  %v4477_v54 = vsub.f32 %v8464_v29, %v4263_v4  ;;  %v4269_v58 = vrot.slane %v4268_v52, 1  ;;  %6284 = vmatmul.mubr.f32.gmra.mrb[136].mxu0 %v3625_v12  ;;  %v8535_v43 = vpop.f32.mrb[126].mxu1 }
 0x2d0   : > { %v8524_v16 = vpop.f32.mrb[110].mxu0  ;;  %6455 = vpow2.f32 %v4540_v36  ;;  %v4272_v6 = vrot.slane %v4271_v48, 4  ;;  %v3295_v44 = vadd.f32 %v3231_v55, %v8258_v30  ;;  %v8532_v59 = vadd.f32 %v2706_v60, %v8258_v30  ;;  %v8543_v4 = vpop.f32.mrb[127].mxu1 }
 0x2d1   : > { %v8528_v62 = vpop.f32.mrb[111].mxu0  ;;  %v4542_v27 = vmul.f32 1.442695, %v4476_v39  ;;  %v4544_v38 = vmul.f32 1.442695, %v4477_v54  ;;  %v4270_v10 = vmax.f32 %v4268_v52, %v4269_v58  ;;  %v3785_v24 = vadd.f32 %v6240_v49, %v8407_v23 }
 0x2d2   : > { %9724 = vst [vmem:[#allocation69_spill] sm:$0xff] %v8532_v59  ;;  %v4273_v53 = vmax.f32 %v4271_v48, %v4272_v6  ;;  %v8538_v29 = vmul.f32 %v8160_v33, %v3295_v44  ;;  %v3780_v5 = vadd.f32 %v8407_v23, %v3779_v3  ;;  %v3434_v36 = vadd.f32 %v8175_v45, %v8469_v35 }
 0x2d3   : > { %6457 = vpow2.f32 %v4542_v27  ;;  %v4478_v30 = vsub.f32 %v8488_v50, %v4270_v10  ;;  %v4479_v60 = vsub.f32 %v8486_v20, %v4270_v10  ;;  %vm4067_vm7 = vcmp.ge.f32.partialorder %v3785_v24, 0.0  ;;  %v8550_v58 = vpop.f32.mrb[128].mxu1 }
 0x2d4   : > { %6459 = vpow2.f32 %v4544_v38  ;;  %v4274_v49 = vrot.slane %v4273_v53, 2  ;;  %v4131_v52 = vmul.f32 0.01, %v3785_v24  ;;  %vm4066_vm8 = vcmp.ge.f32.partialorder %v3780_v5, 0.0  ;;  %v8556_v44 = vpop.f32.mrb[129].mxu1 }
 0x2d5   : > { %v4546_v48 = vmul.f32 1.442695, %v4478_v30  ;;  %v4548_v12 = vmul.f32 1.442695, %v4479_v60  ;;  %v4130_v55 = vmul.f32 0.01, %v3780_v5  ;;  %v2710_v3 = vadd.f32 %v2709_v8, %v7403_v2 }
 0x2d6   : > { %v4275_v39 = vmax.f32 %v4273_v53, %v4274_v49  ;;  %v8548_v54 = vsel %vm4067_vm7, %v3785_v24, %v4131_v52  ;;  %vm3498_vm9 = vcmp.ge.f32.partialorder %v3434_v36, 0.0  ;;  %v3562_v35 = vmul.f32 0.01, %v3434_v36 }
 0x2d7   : > { %6461 = vpow2.f32 %v4546_v48  ;;  %v8552_v50 = vsel %vm4066_vm8, %v3780_v5, %v4130_v55  ;;  %v3232_v20 = vsub.f32 %v8205_v21, %v2710_v3  ;;  %v2712_v6 = vadd.f32 %v2711_v32, %v7310_v11  ;;  %v8570_v30 = vpop.f32.mrb[130].mxu1 }
 0x2d8   : > { %6463 = vpow2.f32 %v4548_v12  ;;  %v4276_v27 = vrot.slane %v4275_v39, 1  ;;  %v4278_v8 = vmax.f32 %v8552_v50, %v8548_v54  ;;  %v3626_v38 = vsel %vm3498_vm9, %v3434_v36, %v3562_v35 }
 0x2d9   : > { %v8560_v10 = vpop.eup %6453  ;;  %6286 = vmatprep.mubr.f32.mxu0 %v3626_v38  ;;  %v3296_v24 = vadd.f32 %v3232_v20, %v8286_v17  ;;  %v8564_v53 = vadd.f32 %v2712_v6, %v8286_v17  ;;  %v3795_v5 = vadd.f32 %v8507_v0, %v8407_v23  ;;  %v3790_v32 = vadd.f32 %v8407_v23, %v8511_v61  ;;  %v8578_v17 = vpop.f32.mrb[131].mxu1 }
 0x2da   : > { %v8572_v60 = vpop.eup %6455  ;;  %v4277_v49 = vmax.f32 %v4275_v39, %v4276_v27  ;;  %v4279_v36 = vrot.slane %v4278_v8, 4  ;;  %v3435_v52 = vadd.f32 %v8175_v45, %v8484_v37  ;;  %v2716_v48 = vadd.f32 %v8516_v15, %v7403_v2 }
 0x2db   : > { %9725 = vst [vmem:[#allocation70_spill] sm:$0xff] %v8564_v53  ;;  %v4666_v0 = vadd.f32 %v8572_v60, %v8560_v10  ;;  %v8583_v12 = vmul.f32 %v8160_v33, %v3296_v24  ;;  %vm4069_vm10 = vcmp.ge.f32.partialorder %v3795_v5, 0.0  ;;  %v4133_v61 = vmul.f32 0.01, %v3795_v5  ;;  %v8591_v6 = vpop.f32.mrb[132].mxu1 }
 0x2dc   : > { %v4480_v55 = vsub.f32 %v8513_v25, %v4277_v49  ;;  %v4481_v3 = vsub.f32 %v8503_v46, %v4277_v49  ;;  %v4280_v39 = vmax.f32 %v4278_v8, %v4279_v36  ;;  %vm4068_vm11 = vcmp.ge.f32.partialorder %v3790_v32, 0.0  ;;  %v8596_v59 = vpop.f32.mrb[133].mxu1 }
 0x2dd   : > { %v8587_v37 = vpop.eup %6457  ;;  %v4667_v35 = vrot.slane %v4666_v0, 4  ;;  %v8589_v15 = vsel %vm4069_vm10, %v3795_v5, %v4133_v61  ;;  %v4132_v20 = vmul.f32 0.01, %v3790_v32  ;;  %vm3499_vm12 = vcmp.ge.f32.partialorder %v3435_v52, 0.0 }
 0x2de   : > { %v8593_v27 = vpop.eup %6459  ;;  %v4550_v38 = vmul.f32 1.442695, %v4480_v55  ;;  %v4552_v24 = vmul.f32 1.442695, %v4481_v3  ;;  %v4281_v53 = vrot.slane %v4280_v39, 2  ;;  %v3233_v25 = vsub.f32 %v8205_v21, %v2716_v48 }
 0x2df   : > { %v4668_v46 = vadd.f32 %v4667_v35, %v4666_v0  ;;  %v4673_v8 = vadd.f32 %v8593_v27, %v8587_v37  ;;  %v8600_v49 = vsel %vm4068_vm11, %v3790_v32, %v4132_v20  ;;  %v3563_v5 = vmul.f32 0.01, %v3435_v52  ;;  %v8608_v0 = vpop.f32.mrb[134].mxu1 }
 0x2e0   : > { %6465 = vpow2.f32 %v4550_v38  ;;  %v4282_v36 = vmax.f32 %v4280_v39, %v4281_v53  ;;  %v4285_v61 = vmax.f32 %v8600_v49, %v8589_v15  ;;  %v3297_v55 = vadd.f32 %v3233_v25, %v8282_v56  ;;  %v8617_v38 = vpop.f32.mrb[135].mxu1 }
 0x2e1   : > { %v8605_v3 = vpop.eup %6461  ;;  %v4669_v31 = vrot.slane %v4668_v46, 2  ;;  %v4674_v21 = vrot.slane %v4673_v8, 4  ;;  %6467 = vpow2.f32 %v4552_v24  ;;  %v3627_v48 = vsel %vm3499_vm12, %v3435_v52, %v3563_v5 }
 0x2e2   : > { %v8610_v35 = vpop.eup %6463  ;;  %v4283_v32 = vrot.slane %v4282_v36, 1  ;;  %v4286_v20 = vrot.slane %v4285_v61, 4  ;;  %6287 = vmatmul.mubr.f32.gmra.mrb[138].mxu0 %v3627_v48  ;;  %v8613_v53 = vmul.f32 %v8160_v33, %v3297_v55  ;;  %v2718_v39 = vadd.f32 %v8522_v51, %v7310_v11 }
 0x2e3   : > { %v4670_v25 = vadd.f32 %v4669_v31, %v4668_v46  ;;  %v4675_v28 = vadd.f32 %v4674_v21, %v4673_v8  ;;  %v4680_v52 = vadd.f32 %v8610_v35, %v8605_v3  ;;  %v3805_v24 = vadd.f32 %v8524_v16, %v8407_v23  ;;  %v8628_v31 = vpop.f32.mrb[136].mxu1 }
 0x2e4   : > { %v4284_v5 = vmax.f32 %v4282_v36, %v4283_v32  ;;  %v4287_v57 = vmax.f32 %v4285_v61, %v4286_v20  ;;  %v8624_v48 = vadd.f32 %v2718_v39, %v8282_v56  ;;  %v3800_v55 = vadd.f32 %v8407_v23, %v8528_v62  ;;  %v8632_v36 = vpop.f32.mrb[137].mxu1 }
 0x2e5   : > { %v4671_v22 = vrot.slane %v4670_v25, 1  ;;  %v4676_v51 = vrot.slane %v4675_v28, 2  ;;  %v4681_v41 = vrot.slane %v4680_v52, 4  ;;  %vm4071_vm13 = vcmp.ge.f32.partialorder %v3805_v24, 0.0 }
 0x2e6   : > { %9726 = vst [vmem:[#allocation71_spill] sm:$0xff] %v8624_v48  ;;  %v4482_v46 = vsub.f32 %v8552_v50, %v4284_v5  ;;  %v4483_v8 = vsub.f32 %v8548_v54, %v4284_v5  ;;  %v4288_v21 = vrot.slane %v4287_v57, 2  ;;  %v4135_v16 = vmul.f32 0.01, %v3805_v24 }
 0x2e7   : > { %v4672_v61 = vadd.f32 %v4671_v22, %v4670_v25  ;;  %v4677_v56 = vadd.f32 %v4676_v51, %v4675_v28  ;;  %v4682_v32 = vadd.f32 %v4681_v41, %v4680_v52  ;;  %vm4070_vm14 = vcmp.ge.f32.partialorder %v3800_v55, 0.0  ;;  %v8636_v50 = vpop.f32.mrb[138].mxu1 }
 0x2e8   : > { %v4554_v20 = vmul.f32 1.442695, %v4482_v46  ;;  %v4556_v23 = vmul.f32 1.442695, %v4483_v8  ;;  %v4289_v62 = vmax.f32 %v4287_v57, %v4288_v21  ;;  %v8634_v39 = vsel %vm4071_vm13, %v3805_v24, %v4135_v16  ;;  %v8644_v22 = vpop.f32.mrb[139].mxu1 }
 0x2e9   : > { %6469 = vrcp.f32 %v4672_v61  ;;  %v4678_v48 = vrot.slane %v4677_v56, 1  ;;  %v4683_v63 = vrot.slane %v4682_v32, 2  ;;  %v4134_v42 = vmul.f32 0.01, %v3800_v55 }
 0x2ea   : > { %v8638_v54 = vpop.eup %6465  ;;  %6471 = vpow2.f32 %v4554_v20  ;;  %v4290_v5 = vrot.slane %v4289_v62, 1  ;;  %v3436_v28 = vadd.f32 %v8175_v45, %v8501_v26  ;;  %v2722_v41 = vadd.f32 %v8535_v43, %v7403_v2 }
 0x2eb   : > { %v8646_v57 = vpop.eup %6467  ;;  %v4679_v25 = vadd.f32 %v4678_v48, %v4677_v56  ;;  %v4684_v52 = vadd.f32 %v4683_v63, %v4682_v32  ;;  %6473 = vpow2.f32 %v4556_v23  ;;  %v8649_v24 = vsel %vm4070_vm14, %v3800_v55, %v4134_v42  ;;  %v8656_v16 = vpop.f32.mrb[140].mxu1 }
 0x2ec   : > { %v4687_v51 = vadd.f32 %v8646_v57, %v8638_v54  ;;  %v4291_v46 = vmax.f32 %v4289_v62, %v4290_v5  ;;  %v4292_v26 = vmax.f32 %v8649_v24, %v8634_v39  ;;  %vm3500_vm15 = vcmp.ge.f32.partialorder %v3436_v28, 0.0  ;;  %v8660_v61 = vpop.f32.mrb[141].mxu1 }
 0x2ed   : > { %6475 = vrcp.f32 %v4679_v25  ;;  %v4685_v43 = vrot.slane %v4684_v52, 1  ;;  %v3564_v8 = vmul.f32 0.01, %v3436_v28  ;;  %v3234_v21 = vsub.f32 %v8262_v40, %v2722_v41 }
 0x2ee   : > { %v4688_v63 = vrot.slane %v4687_v51, 4  ;;  %v4484_v48 = vsub.f32 %v8600_v49, %v4291_v46  ;;  %v4485_v42 = vsub.f32 %v8589_v15, %v4291_v46  ;;  %v4293_v55 = vrot.slane %v4292_v26, 4 }
 0x2ef   : > { %v4686_v56 = vadd.f32 %v4685_v43, %v4684_v52  ;;  %v3628_v32 = vsel %vm3500_vm15, %v3436_v28, %v3564_v8  ;;  %v3298_v20 = vadd.f32 %v3234_v21, %v8316_v47  ;;  %v2724_v23 = vadd.f32 %v8543_v4, %v7310_v11  ;;  %v8673_v52 = vpop.f32.mrb[142].mxu1 }
 0x2f0   : > { %v4689_v62 = vadd.f32 %v4688_v63, %v4687_v51  ;;  %v4558_v5 = vmul.f32 1.442695, %v4484_v48  ;;  %v4560_v41 = vmul.f32 1.442695, %v4485_v42  ;;  %v4294_v25 = vmax.f32 %v4292_v26, %v4293_v55  ;;  %6289 = vmatprep.mubr.f32.mxu0 %v3628_v32  ;;  %v8677_v26 = vpop.f32.mrb[143].mxu1 }
 0x2f1   : > { %6477 = vrcp.f32 %v4686_v56  ;;  %v8666_v49 = vmul.f32 %v8160_v33, %v3298_v20  ;;  %v8669_v15 = vadd.f32 %v2724_v23, %v8316_v47  ;;  %v3437_v28 = vadd.f32 %v8175_v45, %v8538_v29  ;;  %v9729_v20 = vld [vmem:[#allocation10_spill] sm:$0xff] }
 0x2f2   : > { %v4690_v46 = vrot.slane %v4689_v62, 2  ;;  %6479 = vpow2.f32 %v4558_v5  ;;  %v4295_v4 = vrot.slane %v4294_v25, 2  ;;  %v2728_v51 = vadd.f32 %v8550_v58, %v7403_v2 }
 0x2f3   : > { %9727 = vst [vmem:[#allocation72_spill] sm:$0xff] %v8669_v15  ;;  %v6470_v43 = vpop.eup %6469  ;;  %6481 = vpow2.f32 %v4560_v41  ;;  %vm3501_vm0 = vcmp.ge.f32.partialorder %v3437_v28, 0.0  ;;  %v3565_v33 = vmul.f32 0.01, %v3437_v28  ;;  %v2730_v47 = vadd.f32 %v8556_v44, %v7310_v11  ;;  %v8693_v44 = vpop.f32.mrb[144].mxu1 }
 0x2f4   : > { %v8681_v8 = vpop.eup %6471  ;;  %v4891_v29 = vmul.f32 %v6470_v43, %v8560_v10  ;;  %v4892_v21 = vmul.f32 %v6470_v43, %v8572_v60  ;;  %v4691_v63 = vadd.f32 %v4690_v46, %v4689_v62  ;;  %v4296_v48 = vmax.f32 %v4294_v25, %v4295_v4  ;;  %v9730_v10 = vld [vmem:[#allocation9_spill] sm:$0xff]  ;;  %v8699_v41 = vpop.f32.mrb[145].mxu1 }
 0x2f5   : > { %v8685_v42 = vpop.eup %6473  ;;  %v3629_v58 = vsel %vm3501_vm0, %v3437_v28, %v3565_v33  ;;  %v3235_v55 = vsub.f32 %v8262_v40, %v2728_v51  ;;  %v8689_v56 = vadd.f32 %v2730_v47, %v8309_v9  ;;  %v3438_v32 = vadd.f32 %v8175_v45, %v8583_v12  ;;  %v8707_v47 = vld [vmem:[%s9590_s11] ss:$0 sm:$0xff] }
 0x2f6   : > { %v5050_v23 = vmul.f32 %v9729_v20, %v4891_v29  ;;  %v5051_v5 = vmul.f32 %v9730_v10, %v4892_v21  ;;  %v4692_v60 = vrot.slane %v4691_v63, 1  ;;  %v4694_v62 = vadd.f32 %v8685_v42, %v8681_v8  ;;  %6290 = vmatmul.mubr.f32.gmra.mrb[140].mxu0 %v3629_v58 }
 0x2f7   : > { %9728 = vst [vmem:[#allocation73_spill] sm:$0xff] %v8689_v56  ;;  %v6476_v40 = vpop.eup %6475  ;;  %v4297_v25 = vrot.slane %v4296_v48, 1  ;;  %v3299_v28 = vadd.f32 %v3235_v55, %v8309_v9  ;;  %vm3502_vm1 = vcmp.ge.f32.partialorder %v3438_v32, 0.0  ;;  %v3566_v46 = vmul.f32 0.01, %v3438_v32  ;;  %v8712_v9 = vpop.f32.mrb[146].mxu1 }
 0x2f8   : > { %v5114_v45 = vadd.f32 %v5051_v5, %v5050_v23  ;;  %v4894_v12 = vmul.f32 %v6476_v40, %v8587_v37  ;;  %v4895_v4 = vmul.f32 %v6476_v40, %v8593_v27  ;;  %v4693_v51 = vadd.f32 %v4692_v60, %v4691_v63  ;;  %v9731_v55 = vld [vmem:[#allocation12_spill] sm:$0xff]  ;;  %v9732_v37 = vld [vmem:[#allocation11_spill] sm:$0xff]  ;;  %v8716_v27 = vpop.f32.mrb[147].mxu1 }
 0x2f9   : > { %v4695_v43 = vrot.slane %v4694_v62, 4  ;;  %v4298_v33 = vmax.f32 %v4296_v48, %v4297_v25  ;;  %v8710_v29 = vmul.f32 %v8707_v47, %v3299_v28  ;;  %v3630_v21 = vsel %vm3502_vm1, %v3438_v32, %v3566_v46 }
 0x2fa   : > { %v5115_v58 = vrot.slane %v5114_v45, 4  ;;  %v5052_v20 = vmul.f32 %v9731_v55, %v4894_v12  ;;  %v5053_v23 = vmul.f32 %v9732_v37, %v4895_v4  ;;  %6483 = vrcp.f32 %v4693_v51  ;;  %6292 = vmatprep.mubr.f32.mxu0 %v3630_v21  ;;  %v9734_v55 = vld [vmem:[#allocation13_spill] sm:$0xff] }
 0x2fb   : > { %v6478_v63 = vpop.eup %6477  ;;  %v4696_v48 = vadd.f32 %v4695_v43, %v4694_v62  ;;  %v4486_v10 = vsub.f32 %v8649_v24, %v4298_v33  ;;  %v4487_v5 = vsub.f32 %v8634_v39, %v4298_v33  ;;  %v2734_v32 = vadd.f32 %v8570_v30, %v7403_v2  ;;  %v8729_v43 = vpop.f32.mrb[148].mxu1  ;;  %v9733_v30 = vld [vmem:[#allocation14_spill] sm:$0xff] }
 0x2fc   : > { %v8722_v60 = vpop.eup %6479  ;;  %v5116_v40 = vadd.f32 %v5115_v58, %v5114_v45  ;;  %v5121_v25 = vadd.f32 %v5053_v23, %v5052_v20  ;;  %v4897_v28 = vmul.f32 %v6478_v63, %v8605_v3  ;;  %v4898_v46 = vmul.f32 %v6478_v63, %v8610_v35  ;;  %v8733_v58 = vpop.f32.mrb[149].mxu1 }
 0x2fd   : > { %v8726_v12 = vpop.eup %6481  ;;  %v4697_v4 = vrot.slane %v4696_v48, 2  ;;  %v4562_v51 = vmul.f32 1.442695, %v4486_v10  ;;  %v4564_v62 = vmul.f32 1.442695, %v4487_v5  ;;  %v3236_v24 = vsub.f32 %v8248_v13, %v2734_v32 }
 0x2fe   : > { %v5117_v39 = vrot.slane %v5116_v40, 2  ;;  %v5122_v33 = vrot.slane %v5121_v25, 4  ;;  %v5054_v21 = vmul.f32 %v9733_v30, %v4897_v28  ;;  %v5055_v45 = vmul.f32 %v9734_v55, %v4898_v46 }
 0x2ff   : > { %vm5370_vm3 = vcmask 1041409   ;;  %v4698_v3 = vadd.f32 %v4697_v4, %v4696_v48  ;;  %v4701_v35 = vadd.f32 %v8726_v12, %v8722_v60  ;;  %6485 = vpow2.f32 %v4562_v51  ;;  %v8743_v46 = vpop.f32.mrb[150].mxu1 }
 0x300   : > { %v3300_v20 = vadd.f32 %v3236_v24, %v8345_v18  ;;  %v5118_v37 = vadd.f32 %v5117_v39, %v5116_v40  ;;  %v5123_v23 = vadd.f32 %v5122_v33, %v5121_v25  ;;  %v5128_v63 = vadd.f32 %v5055_v45, %v5054_v21  ;;  %v8748_v40 = vld [vmem:[%s9591_s12] ss:$0 sm:$0xff]  ;;  %v8752_v51 = vpop.f32.mrb[151].mxu1 }
 0x301   : > { %6487 = vpow2.f32 %v4564_v62  ;;  %v4699_v10 = vrot.slane %v4698_v3, 1  ;;  %v4702_v5 = vrot.slane %v4701_v35, 4  ;;  %v2736_v28 = vadd.f32 %v8578_v17, %v7310_v11 }
 0x302   : > { %v8739_v32 = vmul.f32 %v8707_v47, %v3300_v20  ;;  %v5119_v48 = vrot.slane %v5118_v37, 1  ;;  %v5124_v4 = vrot.slane %v5123_v23, 2  ;;  %v5129_v30 = vrot.slane %v5128_v63, 4 }
 0x303   : > { %v3439_v25 = vadd.f32 %v8748_v40, %v8613_v53  ;;  %v4700_v62 = vadd.f32 %v4699_v10, %v4698_v3  ;;  %v4703_v24 = vadd.f32 %v4702_v5, %v4701_v35  ;;  %v8755_v39 = vadd.f32 %v2736_v28, %v8345_v18  ;;  %v8761_v15 = vpop.f32.mrb[152].mxu1 }
 0x304   : > { %v2740_v17 = vadd.f32 %v8591_v6, %v7403_v2  ;;  %v6484_v33 = vpop.eup %6483  ;;  %v5120_v21 = vadd.f32 %v5119_v48, %v5118_v37  ;;  %v5125_v55 = vadd.f32 %v5124_v4, %v5123_v23  ;;  %v5130_v45 = vadd.f32 %v5129_v30, %v5128_v63  ;;  %v8764_v5 = vpop.f32.mrb[153].mxu1  ;;  %v9735_v6 = vld [vmem:[#allocation16_spill] sm:$0xff]  ;;  %v9736_v23 = vld [vmem:[#allocation15_spill] sm:$0xff] }
 0x305   : > { %vm3503_vm4 = vcmp.ge.f32.partialorder %v3439_v25, 0.0  ;;  %v4900_v20 = vmul.f32 %v6484_v33, %v8638_v54  ;;  %v4901_v56 = vmul.f32 %v6484_v33, %v8646_v57  ;;  %6489 = vrcp.f32 %v4700_v62 }
 0x306   : > { %v4704_v53 = vrot.slane %v4703_v24, 2  ;;  %v5126_v3 = vrot.slane %v5125_v55, 1  ;;  %v5131_v35 = vrot.slane %v5130_v45, 2  ;;  %v3567_v18 = vmul.f32 0.01, %v3439_v25 }
 0x307   : > { %v3237_v10 = vsub.f32 %v8248_v13, %v2740_v17  ;;  %v5056_v37 = vmul.f32 %v9735_v6, %v4900_v20  ;;  %v5057_v63 = vmul.f32 %v9736_v23, %v4901_v56  ;;  %v2742_v54 = vadd.f32 %v8596_v59, %v7310_v11 }
 0x308   : > { %v4705_v28 = vadd.f32 %v4704_v53, %v4703_v24  ;;  %v5127_v57 = vadd.f32 %v5126_v3, %v5125_v55  ;;  %v5132_v48 = vadd.f32 %v5131_v35, %v5130_v45  ;;  %v3631_v4 = vsel %vm3503_vm4, %v3439_v25, %v3567_v18  ;;  %v8779_v24 = vpop.f32.mrb[154].mxu1 }
 0x309   : > { %v3301_v30 = vadd.f32 %v3237_v10, %v8341_v34  ;;  %v8772_v62 = vpop.eup %6485  ;;  %v5135_v33 = vadd.f32 %v5057_v63, %v5056_v37  ;;  %6293 = vmatmul.mubr.f32.gmra.mrb[142].mxu0 %v3631_v4  ;;  %v8775_v17 = vadd.f32 %v2742_v54, %v8341_v34  ;;  %v3440_v56 = vadd.f32 %v8748_v40, %v8666_v49  ;;  %v8789_v53 = vpop.f32.mrb[155].mxu1 }
 0x30a   : > { %v4706_v13 = vrot.slane %v4705_v28, 1  ;;  %v8784_v55 = vsel %vm5370_vm3, %v5127_v57, %v5120_v21  ;;  %v5133_v25 = vrot.slane %v5132_v48, 1  ;;  %v2746_v20 = vadd.f32 %v8608_v0, %v7403_v2 }
 0x30b   : > { %v8781_v59 = vpop.eup %6487  ;;  %v3372_v45 = vmul.f32 %v8707_v47, %v3301_v30  ;;  %v5136_v34 = vrot.slane %v5135_v33, 4  ;;  %vm3504_vm5 = vcmp.ge.f32.partialorder %v3440_v56, 0.0  ;;  %v3568_v18 = vmul.f32 0.01, %v3440_v56  ;;  %v8800_v23 = vpop.f32.mrb[156].mxu1 }
 0x30c   : > { %v4707_v3 = vadd.f32 %v4706_v13, %v4705_v28  ;;  %v4708_v49 = vadd.f32 %v8781_v59, %v8772_v62  ;;  %v8793_v35 = vadd.f32 %v5133_v25, %v5132_v48  ;;  %v3238_v21 = vsub.f32 %v8296_v7, %v2746_v20  ;;  %v8808_v48 = vpop.f32.mrb[157].mxu1 }
 0x30d   : > { %v2748_v10 = vadd.f32 %v8617_v38, %v7310_v11  ;;  %v5137_v6 = vadd.f32 %v5136_v34, %v5135_v33  ;;  %v3441_v0 = vadd.f32 %v8748_v40, %v8710_v29  ;;  %v3632_v63 = vsel %vm3504_vm5, %v3440_v56, %v3568_v18 }
 0x30e   : > { %6491 = vrcp.f32 %v4707_v3  ;;  %v4709_v37 = vrot.slane %v4708_v49, 4  ;;  %v3302_v28 = vadd.f32 %v3238_v21, %v8362_v14  ;;  %v2752_v57 = vadd.f32 %v8628_v31, %v7403_v2  ;;  %6295 = vmatprep.mubr.f32.mxu0 %v3632_v63  ;;  %v9738_v21 = vld [vmem:[#allocation17_spill] sm:$0xff] }
 0x30f   : > { %v8804_v54 = vadd.f32 %v2748_v10, %v8362_v14  ;;  %v6490_v38 = vpop.eup %6489  ;;  %v5138_v4 = vrot.slane %v5137_v6, 2  ;;  %vm3505_vm6 = vcmp.ge.f32.partialorder %v3441_v0, 0.0  ;;  %v3569_v33 = vmul.f32 0.01, %v3441_v0  ;;  %v8816_v3 = vpop.f32.mrb[158].mxu1 }
 0x310   : > { %v4710_v30 = vadd.f32 %v4709_v37, %v4708_v49  ;;  %v4903_v29 = vmul.f32 %v6490_v38, %v8681_v8  ;;  %v4904_v13 = vmul.f32 %v6490_v38, %v8685_v42  ;;  %v3373_v56 = vmul.f32 %v8707_v47, %v3302_v28  ;;  %v9737_v49 = vld [vmem:[#allocation18_spill] sm:$0xff]  ;;  %v8823_v37 = vpop.f32.mrb[159].mxu1 }
 0x311   : > { %v3239_v14 = vsub.f32 %v8296_v7, %v2752_v57  ;;  %v5139_v25 = vadd.f32 %v5138_v4, %v5137_v6  ;;  %v3633_v34 = vsel %vm3505_vm6, %v3441_v0, %v3569_v33  ;;  %v2754_v31 = vadd.f32 %v8632_v36, %v7310_v11 }
 0x312   : > { %v4711_v20 = vrot.slane %v4710_v30, 2  ;;  %v5058_v18 = vmul.f32 %v9737_v49, %v4903_v29  ;;  %v5059_v10 = vmul.f32 %v9738_v21, %v4904_v13  ;;  %6296 = vmatmul.mubr.f32.gmra.mrb[144].mxu0 %v3633_v34  ;;  %v3442_v42 = vadd.f32 %v8748_v40, %v8739_v32  ;;  %v9739_v34 = vld [vmem:[#allocation25_spill] sm:$0xff] }
 0x313   : > { %v3303_v8 = vadd.f32 %v3239_v14, %v8358_v19  ;;  %v5140_v7 = vrot.slane %v5139_v25, 1  ;;  %v8826_v0 = vadd.f32 %v2754_v31, %v8358_v19  ;;  %v2758_v36 = vadd.f32 %v8636_v50, %v7403_v2 }
 0x314   : > { %v4712_v6 = vadd.f32 %v4711_v20, %v4710_v30  ;;  %v5142_v63 = vadd.f32 %v5059_v10, %v5058_v18  ;;  %vm3506_vm2 = vcmp.ge.f32.partialorder %v3442_v42, 0.0  ;;  %v3570_v57 = vmul.f32 0.01, %v3442_v42  ;;  %v8836_v30 = vpop.f32.mrb[160].mxu1 }
 0x315   : > { %v3374_v28 = vmul.f32 %v8707_v47, %v3303_v8  ;;  %v8831_v38 = vadd.f32 %v5140_v7, %v5139_v25  ;;  %v3240_v32 = vsub.f32 %v8299_v1, %v2758_v36  ;;  %v2760_v33 = vadd.f32 %v8644_v22, %v7310_v11  ;;  %v8841_v14 = vpop.f32.mrb[161].mxu1  ;;  %v9740_v7 = vld [vmem:[#allocation20_spill] sm:$0xff]  ;;  %v9741_v36 = vld [vmem:[#allocation19_spill] sm:$0xff] }
 0x316   : > { %v4713_v4 = vrot.slane %v4712_v6, 1  ;;  %v5143_v19 = vrot.slane %v5142_v63, 4  ;;  %v3634_v29 = vsel %vm3506_vm2, %v3442_v42, %v3570_v57  ;;  %v3443_v13 = vadd.f32 %v8748_v40, %v3372_v45 }
 0x317   : > { %v2764_v50 = vadd.f32 %v8656_v16, %v7403_v2  ;;  %6298 = vmatprep.mubr.f32.mxu0 %v3634_v29  ;;  %v3304_v31 = vadd.f32 %v3240_v32, %v9739_v34  ;;  %v8845_v49 = vadd.f32 %v2760_v33, %v9739_v34  ;;  %v2766_v22 = vadd.f32 %v8660_v61, %v7310_v11 }
 0x318   : > { %v6492_v20 = vpop.eup %6491  ;;  %v4714_v25 = vadd.f32 %v4713_v4, %v4712_v6  ;;  %v5144_v18 = vadd.f32 %v5143_v19, %v5142_v63  ;;  %vm3507_vm7 = vcmp.ge.f32.partialorder %v3443_v13, 0.0  ;;  %v3571_v10 = vmul.f32 0.01, %v3443_v13  ;;  %v9742_v4 = vld [vmem:[#allocation24_spill] sm:$0xff] }
 0x319   : > { %v4906_v21 = vmul.f32 %v6492_v20, %v8722_v60  ;;  %v4907_v45 = vmul.f32 %v6492_v20, %v8726_v12  ;;  %v3375_v16 = vmul.f32 %v8707_v47, %v3304_v31  ;;  %v3241_v8 = vsub.f32 %v8299_v1, %v2764_v50 }
 0x31a   : > { %6493 = vrcp.f32 %v4714_v25  ;;  %v5145_v42 = vrot.slane %v5144_v18, 2  ;;  %v8856_v32 = vadd.f32 %v2766_v22, %v9742_v4  ;;  %v3635_v61 = vsel %vm3507_vm7, %v3443_v13, %v3571_v10  ;;  %v9743_v13 = vld [vmem:[#allocation59_spill] sm:$0xff] }
 0x31b   : > { %v5060_v6 = vmul.f32 %v9740_v7, %v4906_v21  ;;  %v5061_v57 = vmul.f32 %v9741_v36, %v4907_v45  ;;  %v3305_v60 = vadd.f32 %v3241_v8, %v9742_v4  ;;  %v3444_v12 = vadd.f32 %v8748_v40, %v3373_v56  ;;  %6299 = vmatmul.mubr.f32.gmra.mrb[146].mxu0 %v3635_v61  ;;  %v9744_v56 = vld [vmem:[#allocation27_spill] sm:$0xff] }
 0x31c   : > { %v2770_v63 = vadd.f32 %v8673_v52, %v7403_v2  ;;  %v5146_v33 = vadd.f32 %v5145_v42, %v5144_v18  ;;  %v2772_v1 = vadd.f32 %v8677_v26, %v7310_v11  ;;  %v3445_v29 = vadd.f32 %v8748_v40, %v3374_v28 }
 0x31d   : > { %v5149_v19 = vadd.f32 %v5061_v57, %v5060_v6  ;;  %v3376_v50 = vmul.f32 %v8707_v47, %v3305_v60  ;;  %vm3508_vm8 = vcmp.ge.f32.partialorder %v3444_v12, 0.0  ;;  %v3572_v20 = vmul.f32 0.01, %v3444_v12 }
 0x31e   : > { %v3242_v25 = vsub.f32 %v9743_v13, %v2770_v63  ;;  %v5147_v34 = vrot.slane %v5146_v33, 1  ;;  %v8868_v22 = vadd.f32 %v2772_v1, %v9744_v56  ;;  %vm3509_vm9 = vcmp.ge.f32.partialorder %v3445_v29, 0.0 }
 0x31f   : > { %v5150_v31 = vrot.slane %v5149_v19, 4  ;;  %v3636_v52 = vsel %vm3508_vm8, %v3444_v12, %v3572_v20  ;;  %v3573_v21 = vmul.f32 0.01, %v3445_v29  ;;  %v2776_v26 = vadd.f32 %v8693_v44, %v7403_v2  ;;  %v9745_v44 = vld [vmem:[#allocation26_spill] sm:$0xff] }
 0x320   : > { %v3306_v18 = vadd.f32 %v3242_v25, %v9744_v56  ;;  %v8873_v28 = vadd.f32 %v5147_v34, %v5146_v33  ;;  %6301 = vmatprep.mubr.f32.mxu0 %v3636_v52  ;;  %v2778_v10 = vadd.f32 %v8699_v41, %v7310_v11  ;;  %v3446_v8 = vadd.f32 %v8748_v40, %v3375_v16  ;;  %v9746_v12 = vld [vmem:[#allocation58_spill] sm:$0xff]  ;;  %v9749_v52 = vld [vmem:[#allocation21_spill] sm:$0xff] }
 0x321   : > { %v5151_v45 = vadd.f32 %v5150_v31, %v5149_v19  ;;  %v3637_v7 = vsel %vm3509_vm9, %v3445_v29, %v3573_v21  ;;  %v3243_v6 = vsub.f32 %v9743_v13, %v2776_v26  ;;  %v2782_v36 = vadd.f32 %v8712_v9, %v7403_v2  ;;  %v9747_v13 = vld [vmem:[#allocation30_spill] sm:$0xff] }
 0x322   : > { %v3377_v42 = vmul.f32 %v8707_v47, %v3306_v18  ;;  %6302 = vmatmul.mubr.f32.gmra.mrb[148].mxu0 %v3637_v7  ;;  %v8883_v4 = vadd.f32 %v2778_v10, %v9745_v44  ;;  %vm3510_vm10 = vcmp.ge.f32.partialorder %v3446_v8, 0.0  ;;  %v3574_v61 = vmul.f32 0.01, %v3446_v8  ;;  %v9748_v56 = vld [vmem:[#allocation22_spill] sm:$0xff] }
 0x323   : > { %v5152_v57 = vrot.slane %v5151_v45, 2  ;;  %v3307_v41 = vadd.f32 %v3243_v6, %v9745_v44  ;;  %v3244_v16 = vsub.f32 %v9746_v12, %v2782_v36  ;;  %v2784_v63 = vadd.f32 %v8716_v27, %v7310_v11  ;;  %v9750_v36 = vld [vmem:[#allocation29_spill] sm:$0xff] }
 0x324   : > { %v6494_v60 = vpop.eup %6493  ;;  %v3447_v33 = vadd.f32 %v8748_v40, %v3376_v50  ;;  %v3638_v29 = vsel %vm3510_vm10, %v3446_v8, %v3574_v61  ;;  %v2790_v21 = vadd.f32 %v8733_v58, %v7310_v11  ;;  %v3448_v26 = vadd.f32 %v8748_v40, %v3377_v42  ;;  %v9751_v61 = vld [vmem:[#allocation60_spill] sm:$0xff] }
 0x325   : > { %v5153_v19 = vadd.f32 %v5152_v57, %v5151_v45  ;;  %v4909_v9 = vmul.f32 %v6494_v60, %v8772_v62  ;;  %v4910_v1 = vmul.f32 %v6494_v60, %v8781_v59  ;;  %v3378_v20 = vmul.f32 %v8707_v47, %v3307_v41  ;;  %6304 = vmatprep.mubr.f32.mxu0 %v3638_v29 }
 0x326   : > { %v3308_v25 = vadd.f32 %v3244_v16, %v9747_v13  ;;  %v8895_v34 = vadd.f32 %v2784_v63, %v9747_v13  ;;  %vm3511_vm11 = vcmp.ge.f32.partialorder %v3447_v33, 0.0  ;;  %v3575_v18 = vmul.f32 0.01, %v3447_v33 }
 0x327   : > { %v5154_v31 = vrot.slane %v5153_v19, 1  ;;  %v5062_v27 = vmul.f32 %v9748_v56, %v4909_v9  ;;  %v5063_v50 = vmul.f32 %v9749_v52, %v4910_v1  ;;  %v2788_v59 = vadd.f32 %v8729_v43, %v7403_v2 }
 0x328   : > { %v3379_v62 = vmul.f32 %v8707_v47, %v3308_v25  ;;  %v3639_v8 = vsel %vm3511_vm11, %v3447_v33, %v3575_v18  ;;  %v2794_v7 = vadd.f32 %v8743_v46, %v7403_v2  ;;  %v8911_v57 = vadd.f32 %v2790_v21, %v9750_v36  ;;  %v9752_v33 = vld [vmem:[#allocation32_spill] sm:$0xff]  ;;  %v9754_v21 = vld [vmem:[#allocation61_spill] sm:$0xff] }
 0x329   : > { %v8905_v45 = vadd.f32 %v5154_v31, %v5153_v19  ;;  %v5156_v10 = vadd.f32 %v5063_v50, %v5062_v27  ;;  %6305 = vmatmul.mubr.f32.gmra.mrb[150].mxu0 %v3639_v8  ;;  %v3245_v6 = vsub.f32 %v9746_v12, %v2788_v59  ;;  %vm3512_vm12 = vcmp.ge.f32.partialorder %v3448_v26, 0.0 }
 0x32a   : > { %v3576_v43 = vmul.f32 0.01, %v3448_v26  ;;  %v3246_v58 = vsub.f32 %v9751_v61, %v2794_v7  ;;  %v2796_v42 = vadd.f32 %v8752_v51, %v7310_v11  ;;  %v3449_v60 = vadd.f32 %v8748_v40, %v3378_v20  ;;  %v9753_v20 = vld [vmem:[#allocation31_spill] sm:$0xff] }
 0x32b   : > { %v5157_v44 = vrot.slane %v5156_v10, 4  ;;  %v3309_v41 = vadd.f32 %v3245_v6, %v9750_v36  ;;  %v2800_v46 = vadd.f32 %v8761_v15, %v7403_v2  ;;  %v2802_v12 = vadd.f32 %v8764_v5, %v7310_v11 }
 0x32c   : > { %v3640_v16 = vsel %vm3512_vm12, %v3448_v26, %v3576_v43  ;;  %v3310_v19 = vadd.f32 %v3246_v58, %v9752_v33  ;;  %v8924_v9 = vadd.f32 %v2796_v42, %v9752_v33  ;;  %vm3513_vm13 = vcmp.ge.f32.partialorder %v3449_v60, 0.0 }
 0x32d   : > { %v5158_v63 = vadd.f32 %v5157_v44, %v5156_v10  ;;  %6307 = vmatprep.mubr.f32.mxu0 %v3640_v16  ;;  %v3380_v51 = vmul.f32 %v8707_v47, %v3309_v41  ;;  %v3577_v1 = vmul.f32 0.01, %v3449_v60  ;;  %v3247_v29 = vsub.f32 %v9751_v61, %v2800_v46  ;;  %v9755_v10 = vld [vmem:[#allocation34_spill] sm:$0xff]  ;;  %v9756_v16 = vld [vmem:[#allocation33_spill] sm:$0xff] }
 0x32e   : > { %v8929_v13 = vadd.f32 %v2802_v12, %v9753_v20  ;;  %v3381_v25 = vmul.f32 %v8707_v47, %v3310_v19  ;;  %v3450_v5 = vadd.f32 %v8748_v40, %v3379_v62  ;;  %v2806_v31 = vadd.f32 %v8779_v24, %v7403_v2  ;;  %v9757_v12 = vld [vmem:[#allocation63_spill] sm:$0xff] }
 0x32f   : > { %v5159_v15 = vrot.slane %v5158_v63, 2  ;;  %v3641_v56 = vsel %vm3513_vm13, %v3449_v60, %v3577_v1  ;;  %v3311_v27 = vadd.f32 %v3247_v29, %v9753_v20  ;;  %v2808_v52 = vadd.f32 %v8789_v53, %v7310_v11 }
 0x330   : > { %v3451_v50 = vadd.f32 %v8748_v40, %v3380_v51  ;;  %6308 = vmatmul.mubr.f32.gmra.mrb[152].mxu0 %v3641_v56  ;;  %vm3514_vm14 = vcmp.ge.f32.partialorder %v3450_v5, 0.0  ;;  %v3578_v59 = vmul.f32 0.01, %v3450_v5  ;;  %v3248_v26 = vsub.f32 %v9754_v21, %v2806_v31 }
 0x331   : > { %v8939_v18 = vadd.f32 %v5159_v15, %v5158_v63  ;;  %v3382_v62 = vmul.f32 %v8707_v47, %v3311_v27  ;;  %v8944_v8 = vadd.f32 %v2808_v52, %v9755_v10  ;;  %v2812_v36 = vadd.f32 %v8800_v23, %v7403_v2  ;;  %v8978_v27 = vld [vmem:[%s9593_s14] ss:$0 sm:$0xff] }
 0x332   : > { %vm3515_vm15 = vcmp.ge.f32.partialorder %v3451_v50, 0.0  ;;  %v3579_v24 = vmul.f32 0.01, %v3451_v50  ;;  %v3642_v6 = vsel %vm3514_vm14, %v3450_v5, %v3578_v59  ;;  %v3312_v53 = vadd.f32 %v3248_v26, %v9755_v10 }
 0x333   : > { %v5161_v7 = vrot.slane %v8939_v18, 1  ;;  %6310 = vmatprep.mubr.f32.mxu0 %v3642_v6  ;;  %v2814_v44 = vadd.f32 %v8808_v48, %v7310_v11  ;;  %v3452_v61 = vadd.f32 %v8748_v40, %v3381_v25  ;;  %v2818_v58 = vadd.f32 %v8816_v3, %v7403_v2  ;;  %v9758_v3 = vld [vmem:[#allocation36_spill] sm:$0xff] }
 0x334   : > { %v3643_v43 = vsel %vm3515_vm15, %v3451_v50, %v3579_v24  ;;  %v3383_v42 = vmul.f32 %v8707_v47, %v3312_v53  ;;  %v3249_v60 = vsub.f32 %v9754_v21, %v2812_v36  ;;  %v2820_v41 = vadd.f32 %v8823_v37, %v7310_v11  ;;  %v6249_v1 = vpop.f32.mrb[112].mxu0 }
 0x335   : > { %6311 = vmatmul.mubr.f32.gmra.mrb[154].mxu0 %v3643_v43  ;;  %v3453_v23 = vadd.f32 %v8748_v40, %v3382_v62  ;;  %v8961_v46 = vadd.f32 %v2814_v44, %v9756_v16  ;;  %vm3516_vm0 = vcmp.ge.f32.partialorder %v3452_v61, 0.0  ;;  %v3580_v48 = vmul.f32 0.01, %v3452_v61  ;;  %v3809_v25 = vpop.f32.mrb[113].mxu0 }
 0x336   : > { %v3250_v63 = vsub.f32 %v9757_v12, %v2818_v58  ;;  %v3313_v33 = vadd.f32 %v3249_v60, %v9756_v16  ;;  %v8966_v19 = vadd.f32 %v2820_v41, %v9758_v3  ;;  %v2824_v20 = vadd.f32 %v8836_v30, %v7403_v2 }
 0x337   : > { %vm3517_vm1 = vcmp.ge.f32.partialorder %v3453_v23, 0.0  ;;  %v3581_v51 = vmul.f32 0.01, %v3453_v23  ;;  %v3644_v29 = vsel %vm3516_vm0, %v3452_v61, %v3580_v48  ;;  %v2826_v15 = vadd.f32 %v8841_v14, %v7310_v11  ;;  %v9759_v11 = vld [vmem:[#allocation35_spill] sm:$0xff] }
 0x338   : > { %v3314_v37 = vadd.f32 %v3250_v63, %v9758_v3  ;;  %v3384_v5 = vmul.f32 %v8707_v47, %v3313_v33  ;;  %6313 = vmatprep.mubr.f32.mxu0 %v3644_v29  ;;  %v3454_v56 = vadd.f32 %v8748_v40, %v3383_v42  ;;  %v3815_v52 = vadd.f32 %v8978_v27, %v6249_v1 }
 0x339   : > { %v3645_v31 = vsel %vm3517_vm1, %v3453_v23, %v3581_v51  ;;  %v3251_v2 = vsub.f32 %v9757_v12, %v2824_v20  ;;  %v8984_v30 = vadd.f32 %v2826_v15, %v9759_v11  ;;  %v3810_v14 = vadd.f32 %v8978_v27, %v3809_v25 }
 0x33a   : > { %v3385_v50 = vmul.f32 %v8707_v47, %v3314_v37  ;;  %6314 = vmatmul.mubr.f32.gmra.mrb[156].mxu0 %v3645_v31  ;;  %vm3518_vm4 = vcmp.ge.f32.partialorder %v3454_v56, 0.0  ;;  %v3582_v59 = vmul.f32 0.01, %v3454_v56  ;;  %v3455_v21 = vadd.f32 %v8748_v40, %v3384_v5 }
 0x33b   : > { %vm4073_vm5 = vcmp.ge.f32.partialorder %v3815_v52, 0.0  ;;  %v3315_v26 = vadd.f32 %v3251_v2, %v9759_v11  ;;  %v4137_v10 = vmul.f32 0.01, %v3815_v52  ;;  %vm4072_vm6 = vcmp.ge.f32.partialorder %v3810_v14, 0.0 }
 0x33c   : > { %v3456_v62 = vadd.f32 %v8748_v40, %v3385_v50  ;;  %v3646_v24 = vsel %vm3518_vm4, %v3454_v56, %v3582_v59  ;;  %vm3519_vm2 = vcmp.ge.f32.partialorder %v3455_v21, 0.0  ;;  %v3583_v6 = vmul.f32 0.01, %v3455_v21  ;;  %v6252_v42 = vpop.f32.mrb[114].mxu0 }
 0x33d   : > { %v4136_v53 = vmul.f32 0.01, %v3810_v14  ;;  %v3386_v36 = vmul.f32 %v8707_v47, %v3315_v26  ;;  %6316 = vmatprep.mubr.f32.mxu0 %v3646_v24  ;;  %v4201_v44 = vsel %vm4073_vm5, %v3815_v52, %v4137_v10  ;;  %v5162_v60 = vadd.f32 %v5161_v7, %v8939_v18  ;;  %v3819_v12 = vpop.f32.mrb[115].mxu0 }
 0x33e   : > { %vm3520_vm7 = vcmp.ge.f32.partialorder %v3456_v62, 0.0  ;;  %v3584_v43 = vmul.f32 0.01, %v3456_v62  ;;  %v3647_v61 = vsel %vm3519_vm2, %v3455_v21, %v3583_v6  ;;  %vm5372_vm8 = vcmask 1042434  }
 0x33f   : > { %v4200_v58 = vsel %vm4072_vm6, %v3810_v14, %v4136_v53  ;;  %6317 = vmatmul.mubr.f32.gmra.mrb[158].mxu0 %v3647_v61  ;;  %v3457_v23 = vadd.f32 %v8748_v40, %v3386_v36  ;;  %v3825_v48 = vadd.f32 %v8978_v27, %v6252_v42  ;;  %v3820_v47 = vadd.f32 %v8978_v27, %v3819_v12 }
 0x340   : > { %v3648_v41 = vsel %vm3520_vm7, %v3456_v62, %v3584_v43  ;;  %v4299_v16 = vmax.f32 %v4200_v58, %v4201_v44  ;;  %v5373_v63 = vsel %vm5372_vm8, %v8793_v35, %v8784_v55  ;;  %vm5374_vm9 = vcmask 1043459  }
 0x341   : > { %6319 = vmatprep.mubr.f32.mxu0 %v3648_v41  ;;  %vm5376_vm10 = vcmask 1044484   ;;  %vm3521_vm11 = vcmp.ge.f32.partialorder %v3457_v23, 0.0  ;;  %v3585_v18 = vmul.f32 0.01, %v3457_v23  ;;  %vm4075_vm12 = vcmp.ge.f32.partialorder %v3825_v48, 0.0 }
 0x342   : > { %v4300_v7 = vrot.slane %v4299_v16, 4  ;;  %v4139_v33 = vmul.f32 0.01, %v3825_v48  ;;  %vm4074_vm13 = vcmp.ge.f32.partialorder %v3820_v47, 0.0  ;;  %v4138_v40 = vmul.f32 0.01, %v3820_v47 }
 0x343   : > { %v5375_v3 = vsel %vm5374_vm9, %v8831_v38, %v5373_v63  ;;  %v3649_v51 = vsel %vm3521_vm11, %v3457_v23, %v3585_v18  ;;  %vm5378_vm14 = vcmask 1045509   ;;  %vm5380_vm15 = vcmask 1046534  }
 0x344   : > { %v4301_v1 = vmax.f32 %v4299_v16, %v4300_v7  ;;  %v5377_v29 = vsel %vm5376_vm10, %v8873_v28, %v5375_v3  ;;  %6320 = vmatmul.mubr.f32.gmra.mrb[160].mxu0 %v3649_v51  ;;  %v4203_v55 = vsel %vm4075_vm12, %v3825_v48, %v4139_v33  ;;  %v4202_v35 = vsel %vm4074_vm13, %v3820_v47, %v4138_v40  ;;  %v6255_v5 = vpop.f32.mrb[116].mxu0 }
 0x345   : > { %v5379_v37 = vsel %vm5378_vm14, %v8905_v45, %v5377_v29  ;;  %v4306_v15 = vmax.f32 %v4202_v35, %v4203_v55  ;;  %v3835_v56 = vadd.f32 %v8978_v27, %v6255_v5  ;;  %v3829_v52 = vpop.f32.mrb[117].mxu0 }
 0x346   : > { %v4302_v20 = vrot.slane %v4301_v1, 2  ;;  %v9005_v25 = vsel %vm5380_vm15, %v5162_v60, %v5379_v37  ;;  %v3830_v28 = vadd.f32 %v8978_v27, %v3829_v52 }
 0x347   : > { %v4307_v31 = vrot.slane %v4306_v15, 4  ;;  %vm4077_vm0 = vcmp.ge.f32.partialorder %v3835_v56, 0.0  ;;  %v4141_v11 = vmul.f32 0.01, %v3835_v56 }
 0x348   : > { %v4303_v38 = vmax.f32 %v4301_v1, %v4302_v20  ;;  %vm4076_vm1 = vcmp.ge.f32.partialorder %v3830_v28, 0.0  ;;  %v4140_v45 = vmul.f32 0.01, %v3830_v28 }
 0x349   : > { %v4308_v2 = vmax.f32 %v4306_v15, %v4307_v31  ;;  %v4205_v21 = vsel %vm4077_vm0, %v3835_v56, %v4141_v11 }
 0x34a   : > { %v4304_v50 = vrot.slane %v4303_v38, 1  ;;  %v4204_v26 = vsel %vm4076_vm1, %v3830_v28, %v4140_v45 }
 0x34b   : > { %v4309_v59 = vrot.slane %v4308_v2, 2  ;;  %v4313_v6 = vmax.f32 %v4204_v26, %v4205_v21 }
 0x34c   : > { %v4305_v14 = vmax.f32 %v4303_v38, %v4304_v50  ;;  %v6258_v53 = vpop.f32.mrb[118].mxu0 }
 0x34d   : > { %v4310_v24 = vmax.f32 %v4308_v2, %v4309_v59  ;;  %v4314_v42 = vrot.slane %v4313_v6, 4  ;;  %v3845_v60 = vadd.f32 %v8978_v27, %v6258_v53  ;;  %v3839_v41 = vpop.f32.mrb[119].mxu0 }
 0x34e   : > { %v4488_v62 = vsub.f32 %v4200_v58, %v4305_v14  ;;  %v4489_v10 = vsub.f32 %v4201_v44, %v4305_v14  ;;  %v3840_v48 = vadd.f32 %v8978_v27, %v3839_v41 }
 0x34f   : > { %v4311_v61 = vrot.slane %v4310_v24, 1  ;;  %v4315_v16 = vmax.f32 %v4313_v6, %v4314_v42  ;;  %vm4079_vm4 = vcmp.ge.f32.partialorder %v3845_v60, 0.0  ;;  %v4143_v12 = vmul.f32 0.01, %v3845_v60 }
 0x350   : > { %v4566_v36 = vmul.f32 1.442695, %v4488_v62  ;;  %v4568_v43 = vmul.f32 1.442695, %v4489_v10  ;;  %vm4078_vm5 = vcmp.ge.f32.partialorder %v3840_v48, 0.0 }
 0x351   : > { %v4312_v23 = vmax.f32 %v4310_v24, %v4311_v61  ;;  %v4316_v47 = vrot.slane %v4315_v16, 2  ;;  %v9011_v63 = vsel %vm4079_vm4, %v3845_v60, %v4143_v12  ;;  %v4142_v18 = vmul.f32 0.01, %v3840_v48 }
 0x352   : > { %6495 = vpow2.f32 %v4566_v36 }
 0x353   : > { %6497 = vpow2.f32 %v4568_v43  ;;  %v4490_v58 = vsub.f32 %v4202_v35, %v4312_v23  ;;  %v4491_v44 = vsub.f32 %v4203_v55, %v4312_v23  ;;  %v4317_v40 = vmax.f32 %v4315_v16, %v4316_v47 }
 0x354   : > { %v4206_v3 = vsel %vm4078_vm5, %v3840_v48, %v4142_v18  ;;  %v6261_v51 = vpop.f32.mrb[120].mxu0 }
 0x355   : > { %v4570_v7 = vmul.f32 1.442695, %v4490_v58  ;;  %v4572_v33 = vmul.f32 1.442695, %v4491_v44  ;;  %v4318_v1 = vrot.slane %v4317_v40, 1  ;;  %v4320_v29 = vmax.f32 %v4206_v3, %v9011_v63  ;;  %v3849_v20 = vpop.f32.mrb[121].mxu0 }
 0x356   : > { %v3855_v37 = vadd.f32 %v8978_v27, %v6261_v51  ;;  %v3850_v55 = vadd.f32 %v8978_v27, %v3849_v20 }
 0x357   : > { %6499 = vpow2.f32 %v4570_v7  ;;  %v4319_v35 = vmax.f32 %v4317_v40, %v4318_v1  ;;  %v4321_v15 = vrot.slane %v4320_v29, 4 }
 0x358   : > { %6501 = vpow2.f32 %v4572_v33  ;;  %vm4081_vm6 = vcmp.ge.f32.partialorder %v3855_v37, 0.0  ;;  %v4145_v5 = vmul.f32 0.01, %v3855_v37  ;;  %vm4080_vm2 = vcmp.ge.f32.partialorder %v3850_v55, 0.0 }
 0x359   : > { %v4144_v38 = vmul.f32 0.01, %v3850_v55  ;;  %v4492_v56 = vsub.f32 %v4204_v26, %v4319_v35  ;;  %v4493_v52 = vsub.f32 %v4205_v21, %v4319_v35  ;;  %v4322_v28 = vmax.f32 %v4320_v29, %v4321_v15 }
 0x35a   : > { %v9018_v50 = vsel %vm4081_vm6, %v3855_v37, %v4145_v5 }
 0x35b   : > { %v9022_v11 = vsel %vm4080_vm2, %v3850_v55, %v4144_v38  ;;  %v4574_v14 = vmul.f32 1.442695, %v4492_v56  ;;  %v4576_v59 = vmul.f32 1.442695, %v4493_v52  ;;  %v4323_v62 = vrot.slane %v4322_v28, 2 }
 0x35c   : > { %v9016_v31 = vpop.eup %6495  ;;  %v4327_v10 = vmax.f32 %v9022_v11, %v9018_v50  ;;  %v6264_v24 = vpop.f32.mrb[122].mxu0 }
 0x35d   : > { %v9020_v2 = vpop.eup %6497  ;;  %6503 = vpow2.f32 %v4574_v14  ;;  %v4324_v21 = vmax.f32 %v4322_v28, %v4323_v62  ;;  %v3865_v26 = vadd.f32 %v8978_v27, %v6264_v24  ;;  %v3859_v53 = vpop.f32.mrb[123].mxu0 }
 0x35e   : > { %v4715_v45 = vadd.f32 %v9020_v2, %v9016_v31  ;;  %6505 = vpow2.f32 %v4576_v59  ;;  %v4328_v36 = vrot.slane %v4327_v10, 4  ;;  %v3860_v43 = vadd.f32 %v8978_v27, %v3859_v53 }
 0x35f   : > { %v4325_v60 = vrot.slane %v4324_v21, 1  ;;  %vm4083_vm7 = vcmp.ge.f32.partialorder %v3865_v26, 0.0  ;;  %v4147_v41 = vmul.f32 0.01, %v3865_v26 }
 0x360   : > { %v4716_v6 = vrot.slane %v4715_v45, 4  ;;  %v4329_v16 = vmax.f32 %v4327_v10, %v4328_v36  ;;  %vm4082_vm11 = vcmp.ge.f32.partialorder %v3860_v43, 0.0  ;;  %v4146_v48 = vmul.f32 0.01, %v3860_v43 }
 0x361   : > { %v9030_v61 = vpop.eup %6499  ;;  %v4326_v44 = vmax.f32 %v4324_v21, %v4325_v60  ;;  %v9036_v47 = vsel %vm4083_vm7, %v3865_v26, %v4147_v41 }
 0x362   : > { %v4717_v42 = vadd.f32 %v4716_v6, %v4715_v45  ;;  %v9032_v23 = vpop.eup %6501  ;;  %v4330_v18 = vrot.slane %v4329_v16, 2  ;;  %v9038_v7 = vsel %vm4082_vm11, %v3860_v43, %v4146_v48 }
 0x363   : > { %v4722_v58 = vadd.f32 %v9032_v23, %v9030_v61  ;;  %v4494_v51 = vsub.f32 %v4206_v3, %v4326_v44  ;;  %v4495_v1 = vsub.f32 %v9011_v63, %v4326_v44  ;;  %v4334_v37 = vmax.f32 %v9038_v7, %v9036_v47 }
 0x364   : > { %v4718_v12 = vrot.slane %v4717_v42, 2  ;;  %v4331_v29 = vmax.f32 %v4329_v16, %v4330_v18  ;;  %v6267_v20 = vpop.f32.mrb[124].mxu0 }
 0x365   : > { %v4723_v40 = vrot.slane %v4722_v58, 4  ;;  %v4578_v15 = vmul.f32 1.442695, %v4494_v51  ;;  %v4580_v5 = vmul.f32 1.442695, %v4495_v1  ;;  %v3869_v38 = vpop.f32.mrb[125].mxu0  ;;  %v3875_v28 = vadd.f32 %v8978_v27, %v6267_v20 }
 0x366   : > { %v4719_v33 = vadd.f32 %v4718_v12, %v4717_v42  ;;  %v4332_v56 = vrot.slane %v4331_v29, 1  ;;  %v4335_v52 = vrot.slane %v4334_v37, 4  ;;  %v3870_v45 = vadd.f32 %v8978_v27, %v3869_v38 }
 0x367   : > { %v4724_v35 = vadd.f32 %v4723_v40, %v4722_v58  ;;  %v9045_v14 = vpop.eup %6503  ;;  %6507 = vpow2.f32 %v4578_v15  ;;  %vm4085_vm12 = vcmp.ge.f32.partialorder %v3875_v28, 0.0  ;;  %v4149_v21 = vmul.f32 0.01, %v3875_v28 }
 0x368   : > { %v4720_v55 = vrot.slane %v4719_v33, 1  ;;  %v9047_v59 = vpop.eup %6505  ;;  %6509 = vpow2.f32 %v4580_v5  ;;  %v4333_v62 = vmax.f32 %v4331_v29, %v4332_v56  ;;  %v4336_v10 = vmax.f32 %v4334_v37, %v4335_v52 }
 0x369   : > { %v4725_v63 = vrot.slane %v4724_v35, 2  ;;  %v4729_v6 = vadd.f32 %v9047_v59, %v9045_v14  ;;  %vm4084_vm13 = vcmp.ge.f32.partialorder %v3870_v45, 0.0  ;;  %v9053_v60 = vsel %vm4085_vm12, %v3875_v28, %v4149_v21 }
 0x36a   : > { %v4721_v3 = vadd.f32 %v4720_v55, %v4719_v33  ;;  %v4496_v26 = vsub.f32 %v9022_v11, %v4333_v62  ;;  %v4497_v53 = vsub.f32 %v9018_v50, %v4333_v62  ;;  %v4337_v36 = vrot.slane %v4336_v10, 2 }
 0x36b   : > { %v4726_v24 = vadd.f32 %v4725_v63, %v4724_v35  ;;  %v4730_v42 = vrot.slane %v4729_v6, 4  ;;  %v4148_v41 = vmul.f32 0.01, %v3870_v45 }
 0x36c   : > { %6511 = vrcp.f32 %v4721_v3  ;;  %v4582_v16 = vmul.f32 1.442695, %v4496_v26  ;;  %v4584_v48 = vmul.f32 1.442695, %v4497_v53  ;;  %v4338_v12 = vmax.f32 %v4336_v10, %v4337_v36 }
 0x36d   : > { %v4727_v43 = vrot.slane %v4726_v24, 1  ;;  %v6270_v58 = vpop.f32.mrb[126].mxu0  ;;  %v4731_v18 = vadd.f32 %v4730_v42, %v4729_v6  ;;  %v9055_v33 = vsel %vm4084_vm13, %v3870_v45, %v4148_v41  ;;  %v9760_v41 = vld [vmem:[#allocation23_spill] sm:$0xff] }
 0x36e   : > { %v3885_v40 = vadd.f32 %v8978_v27, %v6270_v58  ;;  %v3879_v11 = vpop.f32.mrb[127].mxu0  ;;  %6513 = vpow2.f32 %v4582_v16  ;;  %v4339_v50 = vrot.slane %v4338_v12, 1  ;;  %v4341_v51 = vmax.f32 %v9055_v33, %v9053_v60 }
 0x36f   : > { %v4728_v44 = vadd.f32 %v4727_v43, %v4726_v24  ;;  %v3880_v1 = vadd.f32 %v8978_v27, %v3879_v11  ;;  %v4732_v29 = vrot.slane %v4731_v18, 2 }
 0x370   : > { %vm4087_vm0 = vcmp.ge.f32.partialorder %v3885_v40, 0.0  ;;  %v4151_v37 = vmul.f32 0.01, %v3885_v40  ;;  %v4340_v20 = vmax.f32 %v4338_v12, %v4339_v50  ;;  %v4342_v55 = vrot.slane %v4341_v51, 4 }
 0x371   : > { %6515 = vrcp.f32 %v4728_v44  ;;  %vm4086_vm1 = vcmp.ge.f32.partialorder %v3880_v1, 0.0  ;;  %v9061_v35 = vpop.eup %6507  ;;  %v4733_v15 = vadd.f32 %v4732_v29, %v4731_v18  ;;  %v4150_v5 = vmul.f32 0.01, %v3880_v1 }
 0x372   : > { %6517 = vpow2.f32 %v4584_v48  ;;  %v9063_v38 = vpop.eup %6509  ;;  %v4498_v56 = vsub.f32 %v9038_v7, %v4340_v20  ;;  %v4499_v52 = vsub.f32 %v9036_v47, %v4340_v20  ;;  %v4343_v28 = vmax.f32 %v4341_v51, %v4342_v55  ;;  %v9761_v48 = vld [vmem:[#allocation37_spill] sm:$0xff] }
 0x373   : > { %v9067_v45 = vsel %vm4087_vm0, %v3885_v40, %v4151_v37  ;;  %v4734_v63 = vrot.slane %v4733_v15, 1  ;;  %v4736_v62 = vadd.f32 %v9063_v38, %v9061_v35  ;;  %v9071_v10 = vsel %vm4086_vm1, %v3880_v1, %v4150_v5 }
 0x374   : > { %v4586_v21 = vmul.f32 1.442695, %v4498_v56  ;;  %v4588_v26 = vmul.f32 1.442695, %v4499_v52  ;;  %v4344_v47 = vrot.slane %v4343_v28, 2  ;;  %v4348_v43 = vmax.f32 %v9071_v10, %v9067_v45 }
 0x375   : > { %v6273_v53 = vpop.f32.mrb[128].mxu0  ;;  %v4735_v7 = vadd.f32 %v4734_v63, %v4733_v15  ;;  %v4737_v36 = vrot.slane %v4736_v62, 4  ;;  %vm5382_vm0 = vcmask 1047559  }
 0x376   : > { %v6512_v3 = vpop.eup %6511  ;;  %v3889_v42 = vpop.f32.mrb[129].mxu0  ;;  %6519 = vpow2.f32 %v4586_v21  ;;  %v3895_v58 = vadd.f32 %v8978_v27, %v6273_v53  ;;  %v4349_v44 = vrot.slane %v4348_v43, 4  ;;  %v9763_v21 = vld [vmem:[#allocation39_spill] sm:$0xff] }
 0x377   : > { %v4912_v24 = vmul.f32 %v6512_v3, %v9016_v31  ;;  %v4913_v6 = vmul.f32 %v6512_v3, %v9020_v2  ;;  %6521 = vrcp.f32 %v4735_v7  ;;  %v4738_v31 = vadd.f32 %v4737_v36, %v4736_v62 }
 0x378   : > { %v4345_v2 = vmax.f32 %v4343_v28, %v4344_v47  ;;  %v9080_v18 = vpop.eup %6513  ;;  %6523 = vpow2.f32 %v4588_v26  ;;  %vm4089_vm4 = vcmp.ge.f32.partialorder %v3895_v58, 0.0  ;;  %v4153_v11 = vmul.f32 0.01, %v3895_v58 }
 0x379   : > { %v5064_v16 = vmul.f32 %v9760_v41, %v4912_v24  ;;  %v5065_v12 = vmul.f32 %v9761_v48, %v4913_v6  ;;  %v4739_v51 = vrot.slane %v4738_v31, 2  ;;  %v4350_v29 = vmax.f32 %v4348_v43, %v4349_v44  ;;  %v9762_v24 = vld [vmem:[#allocation38_spill] sm:$0xff] }
 0x37a   : > { %v4346_v1 = vrot.slane %v4345_v2, 1  ;;  %v3890_v37 = vadd.f32 %v8978_v27, %v3889_v42  ;;  %v9087_v56 = vsel %vm4089_vm4, %v3895_v58, %v4153_v11 }
 0x37b   : > { %v5163_v40 = vadd.f32 %v5065_v12, %v5064_v16  ;;  %v6516_v50 = vpop.eup %6515  ;;  %v4740_v52 = vadd.f32 %v4739_v51, %v4738_v31  ;;  %v4351_v63 = vrot.slane %v4350_v29, 2 }
 0x37c   : > { %v9083_v20 = vpop.eup %6517  ;;  %v4915_v15 = vmul.f32 %v6516_v50, %v9030_v61  ;;  %v4916_v5 = vmul.f32 %v6516_v50, %v9032_v23  ;;  %v4347_v3 = vmax.f32 %v4345_v2, %v4346_v1  ;;  %vm4088_vm5 = vcmp.ge.f32.partialorder %v3890_v37, 0.0 }
 0x37d   : > { %v5164_v55 = vrot.slane %v5163_v40, 4  ;;  %v4743_v28 = vadd.f32 %v9083_v20, %v9080_v18  ;;  %v6276_v53 = vpop.f32.mrb[130].mxu0  ;;  %v4741_v7 = vrot.slane %v4740_v52, 1  ;;  %v4352_v41 = vmax.f32 %v4350_v29, %v4351_v63  ;;  %v9764_v63 = vld [vmem:[#allocation40_spill] sm:$0xff] }
 0x37e   : > { %v5066_v6 = vmul.f32 %v9762_v24, %v4915_v15  ;;  %v5067_v26 = vmul.f32 %v9763_v21, %v4916_v5  ;;  %v4500_v61 = vsub.f32 %v9055_v33, %v4347_v3  ;;  %v4501_v23 = vsub.f32 %v9053_v60, %v4347_v3  ;;  %v3899_v47 = vpop.f32.mrb[131].mxu0  ;;  %v9765_v24 = vld [vmem:[#allocation41_spill] sm:$0xff] }
 0x37f   : > { %v5165_v62 = vadd.f32 %v5164_v55, %v5163_v40  ;;  %v4744_v36 = vrot.slane %v4743_v28, 4  ;;  %v4152_v16 = vmul.f32 0.01, %v3890_v37  ;;  %v4742_v48 = vadd.f32 %v4741_v7, %v4740_v52 }
 0x380   : > { %v5170_v42 = vadd.f32 %v5067_v26, %v5066_v6  ;;  %v4590_v58 = vmul.f32 1.442695, %v4500_v61  ;;  %v4592_v31 = vmul.f32 1.442695, %v4501_v23  ;;  %v9095_v2 = vpop.eup %6519  ;;  %v4353_v11 = vrot.slane %v4352_v41, 1 }
 0x381   : > { %v5166_v43 = vrot.slane %v5165_v62, 2  ;;  %v4745_v12 = vadd.f32 %v4744_v36, %v4743_v28  ;;  %v9100_v50 = vsel %vm4088_vm5, %v3890_v37, %v4152_v16  ;;  %v6522_v33 = vpop.eup %6521  ;;  %6525 = vrcp.f32 %v4742_v48 }
 0x382   : > { %v5171_v40 = vrot.slane %v5170_v42, 4  ;;  %v4355_v51 = vmax.f32 %v9100_v50, %v9087_v56  ;;  %v3905_v1 = vadd.f32 %v8978_v27, %v6276_v53  ;;  %v9105_v29 = vpop.eup %6523  ;;  %v4918_v15 = vmul.f32 %v6522_v33, %v9045_v14 }
 0x383   : > { %v9097_v44 = vadd.f32 %v5166_v43, %v5165_v62  ;;  %v4746_v60 = vrot.slane %v4745_v12, 2  ;;  %v4919_v5 = vmul.f32 %v6522_v33, %v9047_v59  ;;  %6527 = vpow2.f32 %v4590_v58 }
 0x384   : > { %v5172_v55 = vadd.f32 %v5171_v40, %v5170_v42  ;;  %v4750_v37 = vadd.f32 %v9105_v29, %v9095_v2  ;;  %6529 = vpow2.f32 %v4592_v31  ;;  %v4354_v28 = vmax.f32 %v4352_v41, %v4353_v11 }
 0x385   : > { %v4747_v52 = vadd.f32 %v4746_v60, %v4745_v12  ;;  %v5068_v62 = vmul.f32 %v9764_v63, %v4918_v15  ;;  %v5069_v6 = vmul.f32 %v9765_v24, %v4919_v5  ;;  %v4356_v21 = vrot.slane %v4355_v51, 4 }
 0x386   : > { %v5173_v3 = vrot.slane %v5172_v55, 2  ;;  %v6279_v26 = vpop.f32.mrb[132].mxu0  ;;  %v4751_v7 = vrot.slane %v4750_v37, 4  ;;  %v4502_v14 = vsub.f32 %v9071_v10, %v4354_v28  ;;  %v4503_v59 = vsub.f32 %v9067_v45, %v4354_v28 }
 0x387   : > { %v4748_v53 = vrot.slane %v4747_v52, 1  ;;  %v3909_v36 = vpop.f32.mrb[133].mxu0  ;;  %v5177_v23 = vadd.f32 %v5069_v6, %v5068_v62  ;;  %v4357_v43 = vmax.f32 %v4355_v51, %v4356_v21  ;;  %vm4091_vm6 = vcmp.ge.f32.partialorder %v3905_v1, 0.0 }
 0x388   : > { %v5174_v61 = vadd.f32 %v5173_v3, %v5172_v55  ;;  %v4752_v41 = vadd.f32 %v4751_v7, %v4750_v37  ;;  %v4594_v16 = vmul.f32 1.442695, %v4502_v14  ;;  %v4596_v48 = vmul.f32 1.442695, %v4503_v59 }
 0x389   : > { %v4749_v42 = vadd.f32 %v4748_v53, %v4747_v52  ;;  %v5178_v58 = vrot.slane %v5177_v23, 4  ;;  %v4358_v31 = vrot.slane %v4357_v43, 2  ;;  %v4155_v40 = vmul.f32 0.01, %v3905_v1 }
 0x38a   : > { %v5175_v12 = vrot.slane %v5174_v61, 1  ;;  %v4753_v11 = vrot.slane %v4752_v41, 2  ;;  %v3900_v33 = vadd.f32 %v8978_v27, %v3899_v47  ;;  %v3915_v10 = vadd.f32 %v8978_v27, %v6279_v26  ;;  %v9766_v26 = vld [vmem:[#allocation42_spill] sm:$0xff] }
 0x38b   : > { %6531 = vrcp.f32 %v4749_v42  ;;  %v5179_v60 = vadd.f32 %v5178_v58, %v5177_v23  ;;  %v4359_v55 = vmax.f32 %v4357_v43, %v4358_v31  ;;  %v6526_v51 = vpop.eup %6525  ;;  %v9118_v5 = vsel %vm4091_vm6, %v3905_v1, %v4155_v40  ;;  %v9767_v1 = vld [vmem:[#allocation43_spill] sm:$0xff] }
 0x38c   : > { %v5176_v45 = vadd.f32 %v5175_v12, %v5174_v61  ;;  %6533 = vpow2.f32 %v4594_v16  ;;  %v4754_v15 = vadd.f32 %v4753_v11, %v4752_v41  ;;  %vm4090_vm2 = vcmp.ge.f32.partialorder %v3900_v33, 0.0 }
 0x38d   : > { %6535 = vpow2.f32 %v4596_v48  ;;  %v9120_v52 = vpop.eup %6527  ;;  %v5180_v37 = vrot.slane %v5179_v60, 2  ;;  %v4921_v28 = vmul.f32 %v6526_v51, %v9061_v35  ;;  %v4922_v47 = vmul.f32 %v6526_v51, %v9063_v38 }
 0x38e   : > { %v4360_v3 = vrot.slane %v4359_v55, 1  ;;  %v9124_v63 = vpop.eup %6529  ;;  %v4755_v62 = vrot.slane %v4754_v15, 1  ;;  %v4154_v24 = vmul.f32 0.01, %v3900_v33  ;;  %vm4093_vm7 = vcmp.ge.f32.partialorder %v3915_v10, 0.0 }
 0x38f   : > { %v4157_v6 = vmul.f32 0.01, %v3915_v10  ;;  %v5181_v21 = vadd.f32 %v5180_v37, %v5179_v60  ;;  %v5070_v53 = vmul.f32 %v9766_v26, %v4921_v28  ;;  %v5071_v7 = vmul.f32 %v9767_v1, %v4922_v47  ;;  %v6282_v59 = vpop.f32.mrb[134].mxu0 }
 0x390   : > { %v4757_v14 = vadd.f32 %v9124_v63, %v9120_v52  ;;  %v4756_v61 = vadd.f32 %v4755_v62, %v4754_v15  ;;  %v4361_v35 = vmax.f32 %v4359_v55, %v4360_v3  ;;  %v9131_v38 = vsel %vm4090_vm2, %v3900_v33, %v4154_v24  ;;  %v3919_v43 = vpop.f32.mrb[135].mxu0 }
 0x391   : > { %v9133_v23 = vsel %vm4093_vm7, %v3915_v10, %v4157_v6  ;;  %v5182_v42 = vrot.slane %v5181_v21, 1  ;;  %v5184_v41 = vadd.f32 %v5071_v7, %v5070_v53  ;;  %v4362_v48 = vmax.f32 %v9131_v38, %v9118_v5  ;;  %v9769_v53 = vld [vmem:[#allocation45_spill] sm:$0xff] }
 0x392   : > { %v4758_v16 = vrot.slane %v4757_v14, 4  ;;  %6537 = vrcp.f32 %v4756_v61  ;;  %v4504_v12 = vsub.f32 %v9100_v50, %v4361_v35  ;;  %v4505_v58 = vsub.f32 %v9087_v56, %v4361_v35 }
 0x393   : > { %v3910_v31 = vadd.f32 %v8978_v27, %v3909_v36  ;;  %v5183_v40 = vadd.f32 %v5182_v42, %v5181_v21  ;;  %v5185_v11 = vrot.slane %v5184_v41, 4  ;;  %v4363_v60 = vrot.slane %v4362_v48, 4  ;;  %v9768_v21 = vld [vmem:[#allocation44_spill] sm:$0xff] }
 0x394   : > { %v4759_v33 = vadd.f32 %v4758_v16, %v4757_v14  ;;  %v4598_v55 = vmul.f32 1.442695, %v4504_v12  ;;  %v4600_v51 = vmul.f32 1.442695, %v4505_v58  ;;  %v3925_v15 = vadd.f32 %v8978_v27, %v6282_v59 }
 0x395   : > { %v6532_v10 = vpop.eup %6531  ;;  %vm4092_vm11 = vcmp.ge.f32.partialorder %v3910_v31, 0.0  ;;  %v9144_v28 = vsel %vm5370_vm3, %v5183_v40, %v5176_v45  ;;  %v5186_v50 = vadd.f32 %v5185_v11, %v5184_v41  ;;  %v4364_v62 = vmax.f32 %v4362_v48, %v4363_v60 }
 0x396   : > { %v9141_v37 = vpop.eup %6533  ;;  %v4924_v56 = vmul.f32 %v6532_v10, %v9080_v18  ;;  %v4925_v36 = vmul.f32 %v6532_v10, %v9083_v20  ;;  %v4760_v3 = vrot.slane %v4759_v33, 2  ;;  %6539 = vpow2.f32 %v4598_v55 }
 0x397   : > { %v9148_v47 = vpop.eup %6535  ;;  %v4156_v24 = vmul.f32 0.01, %v3910_v31  ;;  %v5187_v6 = vrot.slane %v5186_v50, 2  ;;  %6541 = vpow2.f32 %v4600_v51  ;;  %v4365_v14 = vrot.slane %v4364_v62, 2 }
 0x398   : > { %v5072_v26 = vmul.f32 %v9768_v21, %v4924_v56  ;;  %v5073_v1 = vmul.f32 %v9769_v53, %v4925_v36  ;;  %v4764_v45 = vadd.f32 %v9148_v47, %v9141_v37  ;;  %v4761_v7 = vadd.f32 %v4760_v3, %v4759_v33 }
 0x399   : > { %v9155_v18 = vsel %vm4092_vm11, %v3910_v31, %v4156_v24  ;;  %v5188_v20 = vadd.f32 %v5187_v6, %v5186_v50  ;;  %v4366_v41 = vmax.f32 %v4364_v62, %v4365_v14  ;;  %vm4095_vm12 = vcmp.ge.f32.partialorder %v3925_v15, 0.0  ;;  %v9770_v6 = vld [vmem:[#allocation46_spill] sm:$0xff] }
 0x39a   : > { %v5191_v59 = vadd.f32 %v5073_v1, %v5072_v26  ;;  %v4765_v61 = vrot.slane %v4764_v45, 4  ;;  %v4369_v35 = vmax.f32 %v9155_v18, %v9133_v23  ;;  %v4762_v42 = vrot.slane %v4761_v7, 1  ;;  %v9771_v26 = vld [vmem:[#allocation47_spill] sm:$0xff] }
 0x39b   : > { %v4159_v16 = vmul.f32 0.01, %v3925_v15  ;;  %v5189_v48 = vrot.slane %v5188_v20, 1  ;;  %v4367_v60 = vrot.slane %v4366_v41, 1  ;;  %v3920_v31 = vadd.f32 %v8978_v27, %v3919_v43 }
 0x39c   : > { %v5192_v12 = vrot.slane %v5191_v59, 4  ;;  %v4766_v58 = vadd.f32 %v4765_v61, %v4764_v45  ;;  %v4370_v40 = vrot.slane %v4369_v35, 4  ;;  %v6538_v11 = vpop.eup %6537  ;;  %v4763_v33 = vadd.f32 %v4762_v42, %v4761_v7 }
 0x39d   : > { %v9159_v10 = vsel %vm4095_vm12, %v3925_v15, %v4159_v16  ;;  %v9162_v55 = vadd.f32 %v5189_v48, %v5188_v20  ;;  %v4927_v50 = vmul.f32 %v6538_v11, %v9095_v2  ;;  %v4928_v56 = vmul.f32 %v6538_v11, %v9105_v29 }
 0x39e   : > { %v5193_v51 = vadd.f32 %v5192_v12, %v5191_v59  ;;  %6543 = vrcp.f32 %v4763_v33  ;;  %v4767_v36 = vrot.slane %v4766_v58, 2  ;;  %v4368_v3 = vmax.f32 %v4366_v41, %v4367_v60 }
 0x39f   : > { %v4371_v62 = vmax.f32 %v4369_v35, %v4370_v40  ;;  %v5074_v21 = vmul.f32 %v9770_v6, %v4927_v50  ;;  %v5075_v53 = vmul.f32 %v9771_v26, %v4928_v56  ;;  %vm4094_vm13 = vcmp.ge.f32.partialorder %v3920_v31, 0.0 }
 0x3a0   : > { %v5194_v24 = vrot.slane %v5193_v51, 2  ;;  %v9168_v15 = vpop.eup %6539  ;;  %v4768_v43 = vadd.f32 %v4767_v36, %v4766_v58  ;;  %v4506_v1 = vsub.f32 %v9131_v38, %v4368_v3  ;;  %v4507_v45 = vsub.f32 %v9118_v5, %v4368_v3 }
 0x3a1   : > { %v4372_v2 = vrot.slane %v4371_v62, 2  ;;  %v5198_v29 = vadd.f32 %v5075_v53, %v5074_v21  ;;  %v4158_v14 = vmul.f32 0.01, %v3920_v31  ;;  %v5168_v59 = vrot.slane %v9097_v44, 1  ;;  %v9173_v61 = vpop.eup %6541 }
 0x3a2   : > { %v5195_v7 = vadd.f32 %v5194_v24, %v5193_v51  ;;  %v6285_v20 = vpop.f32.mrb[136].mxu0  ;;  %v4769_v35 = vrot.slane %v4768_v43, 1  ;;  %v4602_v42 = vmul.f32 1.442695, %v4506_v1  ;;  %v4604_v41 = vmul.f32 1.442695, %v4507_v45 }
 0x3a3   : > { %v4373_v16 = vmax.f32 %v4371_v62, %v4372_v2  ;;  %v3929_v48 = vpop.f32.mrb[137].mxu0  ;;  %v5199_v58 = vrot.slane %v5198_v29, 4  ;;  %v4771_v5 = vadd.f32 %v9173_v61, %v9168_v15  ;;  %v9178_v38 = vsel %vm4094_vm13, %v3920_v31, %v4158_v14 }
 0x3a4   : > { %v5196_v12 = vrot.slane %v5195_v7, 1  ;;  %v4770_v40 = vadd.f32 %v4769_v35, %v4768_v43  ;;  %6545 = vpow2.f32 %v4602_v42  ;;  %v4376_v33 = vmax.f32 %v9178_v38, %v9159_v10 }
 0x3a5   : > { %v4374_v11 = vrot.slane %v4373_v16, 1  ;;  %v5200_v51 = vadd.f32 %v5199_v58, %v5198_v29  ;;  %v4772_v50 = vrot.slane %v4771_v5, 4  ;;  %6547 = vpow2.f32 %v4604_v41 }
 0x3a6   : > { %v5197_v60 = vadd.f32 %v5196_v12, %v5195_v7  ;;  %6549 = vrcp.f32 %v4770_v40  ;;  %v4377_v36 = vrot.slane %v4376_v33, 4  ;;  %v3935_v3 = vadd.f32 %v8978_v27, %v6285_v20  ;;  %v9772_v20 = vld [vmem:[#allocation48_spill] sm:$0xff] }
 0x3a7   : > { %v4375_v56 = vmax.f32 %v4373_v16, %v4374_v11  ;;  %v5201_v31 = vrot.slane %v5200_v51, 2  ;;  %v4773_v62 = vadd.f32 %v4772_v50, %v4771_v5  ;;  %v3930_v24 = vadd.f32 %v8978_v27, %v3929_v48 }
 0x3a8   : > { %v5169_v6 = vadd.f32 %v5168_v59, %v9097_v44  ;;  %v6544_v21 = vpop.eup %6543  ;;  %v4378_v43 = vmax.f32 %v4376_v33, %v4377_v36  ;;  %vm4097_vm1 = vcmp.ge.f32.partialorder %v3935_v3, 0.0  ;;  %v4161_v41 = vmul.f32 0.01, %v3935_v3 }
 0x3a9   : > { %v4508_v26 = vsub.f32 %v9155_v18, %v4375_v56  ;;  %v4509_v53 = vsub.f32 %v9133_v23, %v4375_v56  ;;  %v5202_v1 = vadd.f32 %v5201_v31, %v5200_v51  ;;  %v4930_v45 = vmul.f32 %v6544_v21, %v9120_v52  ;;  %v9773_v18 = vld [vmem:[#allocation49_spill] sm:$0xff] }
 0x3aa   : > { %v4931_v2 = vmul.f32 %v6544_v21, %v9124_v63  ;;  %v4774_v7 = vrot.slane %v4773_v62, 2  ;;  %v4379_v27 = vrot.slane %v4378_v43, 2  ;;  %vm4096_vm4 = vcmp.ge.f32.partialorder %v3930_v24, 0.0 }
 0x3ab   : > { %v4606_v29 = vmul.f32 1.442695, %v4508_v26  ;;  %v4608_v14 = vmul.f32 1.442695, %v4509_v53  ;;  %v5203_v44 = vrot.slane %v5202_v1, 1  ;;  %v5076_v59 = vmul.f32 %v9772_v20, %v4930_v45 }
 0x3ac   : > { %v5077_v35 = vmul.f32 %v9773_v18, %v4931_v2  ;;  %v4775_v23 = vadd.f32 %v4774_v7, %v4773_v62  ;;  %v4380_v42 = vmax.f32 %v4378_v43, %v4379_v27  ;;  %v4160_v16 = vmul.f32 0.01, %v3930_v24  ;;  %v9775_v2 = vld [vmem:[#allocation51_spill] sm:$0xff] }
 0x3ad   : > { %6551 = vpow2.f32 %v4606_v29  ;;  %v5204_v52 = vadd.f32 %v5203_v44, %v5202_v1  ;;  %v9197_v5 = vsel %vm4097_vm1, %v3935_v3, %v4161_v41  ;;  %v5383_v11 = vsel %vm5382_vm0, %v5169_v6, %v9005_v25  ;;  %v9774_v1 = vld [vmem:[#allocation50_spill] sm:$0xff] }
 0x3ae   : > { %v5205_v48 = vadd.f32 %v5077_v35, %v5076_v59  ;;  %v4776_v63 = vrot.slane %v4775_v23, 1  ;;  %6553 = vpow2.f32 %v4608_v14  ;;  %v9194_v12 = vpop.eup %6545  ;;  %v4381_v58 = vrot.slane %v4380_v42, 1  ;;  %5409 = vst [vmem:[%s9211_s24] sm:$0xff] %v5383_v11 }
 0x3af   : > { %v9200_v40 = vsel %vm4096_vm4, %v3930_v24, %v4160_v16  ;;  %v9204_v33 = vpop.eup %6547  ;;  %v5385_v36 = vsel %vm5372_vm8, %v9162_v55, %v9144_v28 }
 0x3b0   : > { %v5206_v51 = vrot.slane %v5205_v48, 4  ;;  %v4777_v50 = vadd.f32 %v4776_v63, %v4775_v23  ;;  %v4383_v56 = vmax.f32 %v9200_v40, %v9197_v5  ;;  %v6550_v3 = vpop.eup %6549  ;;  %v4778_v31 = vadd.f32 %v9204_v33, %v9194_v12 }
 0x3b1   : > { %v4382_v25 = vmax.f32 %v4380_v42, %v4381_v58  ;;  %v5386_v62 = vsel %vm5374_vm9, %v5197_v60, %v5385_v36  ;;  %v4933_v6 = vmul.f32 %v6550_v3, %v9141_v37  ;;  %v4934_v21 = vmul.f32 %v6550_v3, %v9148_v47 }
 0x3b2   : > { %v5207_v24 = vadd.f32 %v5206_v51, %v5205_v48  ;;  %6555 = vrcp.f32 %v4777_v50  ;;  %v4779_v26 = vrot.slane %v4778_v31, 4  ;;  %v4384_v53 = vrot.slane %v4383_v56, 4 }
 0x3b3   : > { %v4510_v28 = vsub.f32 %v9178_v38, %v4382_v25  ;;  %v4511_v55 = vsub.f32 %v9159_v10, %v4382_v25  ;;  %v5078_v45 = vmul.f32 %v9774_v1, %v4933_v6  ;;  %v5079_v7 = vmul.f32 %v9775_v2, %v4934_v21  ;;  %v9227_v38 = vld [vmem:[%s9593_s14] ss:$0 sm:$0xff]  ;;  %v9776_v2 = vld [vmem:[#allocation52_spill] sm:$0xff] }
 0x3b4   : > { %v5208_v43 = vrot.slane %v5207_v24, 2  ;;  %v5387_v29 = vsel %vm5376_vm10, %v5204_v52, %v5386_v62  ;;  %v4780_v60 = vadd.f32 %v4779_v26, %v4778_v31  ;;  %v4385_v37 = vmax.f32 %v4383_v56, %v4384_v53 }
 0x3b5   : > { %v4610_v14 = vmul.f32 1.442695, %v4510_v28  ;;  %v4612_v27 = vmul.f32 1.442695, %v4511_v55  ;;  %v6288_v44 = vpop.f32.mrb[138].mxu0  ;;  %v5212_v20 = vadd.f32 %v5079_v7, %v5078_v45 }
 0x3b6   : > { %v5209_v47 = vadd.f32 %v5208_v43, %v5207_v24  ;;  %v3945_v10 = vadd.f32 %v9227_v38, %v6288_v44  ;;  %v3939_v59 = vpop.f32.mrb[139].mxu0  ;;  %v4781_v35 = vrot.slane %v4780_v60, 2  ;;  %v4386_v23 = vrot.slane %v4385_v37, 2 }
 0x3b7   : > { %v9230_v18 = vpop.eup %6551  ;;  %6557 = vpow2.f32 %v4610_v14  ;;  %v3940_v42 = vadd.f32 %v9227_v38, %v3939_v59  ;;  %v5213_v52 = vrot.slane %v5212_v20, 4 }
 0x3b8   : > { %v9233_v41 = vpop.eup %6553  ;;  %v5210_v16 = vrot.slane %v5209_v47, 1  ;;  %6559 = vpow2.f32 %v4612_v27  ;;  %vm4099_vm5 = vcmp.ge.f32.partialorder %v3945_v10, 0.0  ;;  %v4782_v48 = vadd.f32 %v4781_v35, %v4780_v60  ;;  %v9777_v60 = vld [vmem:[#allocation53_spill] sm:$0xff] }
 0x3b9   : > { %v4785_v63 = vadd.f32 %v9233_v41, %v9230_v18  ;;  %v4387_v58 = vmax.f32 %v4385_v37, %v4386_v23  ;;  %v4163_v11 = vmul.f32 0.01, %v3945_v10  ;;  %v5214_v50 = vadd.f32 %v5213_v52, %v5212_v20 }
 0x3ba   : > { %v5211_v51 = vadd.f32 %v5210_v16, %v5209_v47  ;;  %vm4098_vm6 = vcmp.ge.f32.partialorder %v3940_v42, 0.0  ;;  %v4162_v56 = vmul.f32 0.01, %v3940_v42  ;;  %v4783_v36 = vrot.slane %v4782_v48, 1 }
 0x3bb   : > { %v4786_v3 = vrot.slane %v4785_v63, 4  ;;  %v4388_v31 = vrot.slane %v4387_v58, 1  ;;  %v9237_v25 = vsel %vm4099_vm5, %v3945_v10, %v4163_v11  ;;  %v5215_v24 = vrot.slane %v5214_v50, 2 }
 0x3bc   : > { %v6556_v62 = vpop.eup %6555  ;;  %v4226_v6 = vsel %vm4098_vm6, %v3940_v42, %v4162_v56  ;;  %v5388_v21 = vsel %vm5378_vm14, %v5211_v51, %v5387_v29  ;;  %v4784_v55 = vadd.f32 %v4783_v36, %v4782_v48 }
 0x3bd   : > { %v4936_v26 = vmul.f32 %v6556_v62, %v9168_v15  ;;  %v4937_v28 = vmul.f32 %v6556_v62, %v9173_v61  ;;  %v4787_v53 = vadd.f32 %v4786_v3, %v4785_v63  ;;  %v5216_v43 = vadd.f32 %v5215_v24, %v5214_v50 }
 0x3be   : > { %v4389_v1 = vmax.f32 %v4387_v58, %v4388_v31  ;;  %v4390_v45 = vmax.f32 %v4226_v6, %v9237_v25  ;;  %6561 = vrcp.f32 %v4784_v55 }
 0x3bf   : > { %v5080_v7 = vmul.f32 %v9776_v2, %v4936_v26  ;;  %v5081_v14 = vmul.f32 %v9777_v60, %v4937_v28  ;;  %v4788_v27 = vrot.slane %v4787_v53, 2  ;;  %v5217_v37 = vrot.slane %v5216_v43, 1  ;;  %v9778_v2 = vld [vmem:[#allocation54_spill] sm:$0xff]  ;;  %v9779_v60 = vld [vmem:[#allocation55_spill] sm:$0xff] }
 0x3c0   : > { %v4512_v44 = vsub.f32 %v9200_v40, %v4389_v1  ;;  %v4513_v29 = vsub.f32 %v9197_v5, %v4389_v1  ;;  %v4391_v15 = vrot.slane %v4390_v45, 4 }
 0x3c1   : > { %v9247_v47 = vpop.eup %6557  ;;  %v5219_v61 = vadd.f32 %v5081_v14, %v5080_v7  ;;  %v4789_v20 = vadd.f32 %v4788_v27, %v4787_v53  ;;  %v5218_v42 = vadd.f32 %v5217_v37, %v5216_v43 }
 0x3c2   : > { %v9249_v10 = vpop.eup %6559  ;;  %v4614_v59 = vmul.f32 1.442695, %v4512_v44  ;;  %v4616_v35 = vmul.f32 1.442695, %v4513_v29  ;;  %v4392_v23 = vmax.f32 %v4390_v45, %v4391_v15 }
 0x3c3   : > { %v5220_v16 = vrot.slane %v5219_v61, 4  ;;  %v4790_v52 = vrot.slane %v4789_v20, 1  ;;  %v4792_v48 = vadd.f32 %v9249_v10, %v9247_v47  ;;  %v5389_v5 = vsel %vm5380_vm15, %v5218_v42, %v5388_v21 }
 0x3c4   : > { %6563 = vpow2.f32 %v4614_v59  ;;  %v4393_v40 = vrot.slane %v4392_v23, 2 }
 0x3c5   : > { %v5221_v63 = vadd.f32 %v5220_v16, %v5219_v61  ;;  %v4791_v58 = vadd.f32 %v4790_v52, %v4789_v20  ;;  %v4793_v11 = vrot.slane %v4792_v48, 4  ;;  %6565 = vpow2.f32 %v4616_v35 }
 0x3c6   : > { %v4394_v51 = vmax.f32 %v4392_v23, %v4393_v40 }
 0x3c7   : > { %v5222_v50 = vrot.slane %v5221_v63, 2  ;;  %6567 = vrcp.f32 %v4791_v58  ;;  %v4794_v56 = vadd.f32 %v4793_v11, %v4792_v48 }
 0x3c8   : > { %v4395_v36 = vrot.slane %v4394_v51, 1  ;;  %v6562_v3 = vpop.eup %6561 }
 0x3c9   : > { %v5223_v31 = vadd.f32 %v5222_v50, %v5221_v63  ;;  %v4795_v62 = vrot.slane %v4794_v56, 2  ;;  %v6291_v24 = vpop.f32.mrb[140].mxu0  ;;  %v4939_v26 = vmul.f32 %v6562_v3, %v9194_v12  ;;  %v4940_v28 = vmul.f32 %v6562_v3, %v9204_v33  ;;  %v9781_v3 = vld [vmem:[#allocation57_spill] sm:$0xff] }
 0x3ca   : > { %v4396_v55 = vmax.f32 %v4394_v51, %v4395_v36  ;;  %v3955_v21 = vadd.f32 %v9227_v38, %v6291_v24  ;;  %v3949_v53 = vpop.f32.mrb[141].mxu0 }
 0x3cb   : > { %v4796_v43 = vadd.f32 %v4795_v62, %v4794_v56  ;;  %v3950_v1 = vadd.f32 %v9227_v38, %v3949_v53  ;;  %v5224_v45 = vrot.slane %v5223_v31, 1  ;;  %v5082_v7 = vmul.f32 %v9778_v2, %v4939_v26  ;;  %v9780_v56 = vld [vmem:[#allocation56_spill] sm:$0xff] }
 0x3cc   : > { %v5083_v14 = vmul.f32 %v9779_v60, %v4940_v28  ;;  %v4514_v27 = vsub.f32 %v4226_v6, %v4396_v55  ;;  %v4515_v37 = vsub.f32 %v9237_v25, %v4396_v55  ;;  %vm4101_vm2 = vcmp.ge.f32.partialorder %v3955_v21, 0.0 }
 0x3cd   : > { %v4797_v44 = vrot.slane %v4796_v43, 1  ;;  %v4165_v12 = vmul.f32 0.01, %v3955_v21  ;;  %vm4100_vm7 = vcmp.ge.f32.partialorder %v3950_v1, 0.0  ;;  %v4164_v61 = vmul.f32 0.01, %v3950_v1 }
 0x3ce   : > { %v9261_v33 = vpop.eup %6563  ;;  %v5226_v29 = vadd.f32 %v5083_v14, %v5082_v7  ;;  %v4618_v15 = vmul.f32 1.442695, %v4514_v27  ;;  %v4620_v35 = vmul.f32 1.442695, %v4515_v37  ;;  %v5225_v42 = vadd.f32 %v5224_v45, %v5223_v31 }
 0x3cf   : > { %v9263_v20 = vpop.eup %6565  ;;  %v4798_v59 = vadd.f32 %v4797_v44, %v4796_v43  ;;  %v4229_v23 = vsel %vm4101_vm2, %v3955_v21, %v4165_v12  ;;  %v4228_v6 = vsel %vm4100_vm7, %v3950_v1, %v4164_v61 }
 0x3d0   : > { %v5227_v16 = vrot.slane %v5226_v29, 4  ;;  %v4799_v25 = vadd.f32 %v9263_v20, %v9261_v33  ;;  %6569 = vpow2.f32 %v4618_v15  ;;  %v4397_v48 = vmax.f32 %v4228_v6, %v4229_v23 }
 0x3d1   : > { %v6568_v52 = vpop.eup %6567  ;;  %6571 = vrcp.f32 %v4798_v59  ;;  %v5390_v40 = vsel %vm5382_vm0, %v5225_v42, %v5389_v5  ;;  %v9782_v42 = vld [vmem:[#allocation62_spill] sm:$0xff] }
 0x3d2   : > { %v5228_v63 = vadd.f32 %v5227_v16, %v5226_v29  ;;  %v4942_v58 = vmul.f32 %v6568_v52, %v9230_v18  ;;  %v4943_v11 = vmul.f32 %v6568_v52, %v9233_v41  ;;  %v4800_v51 = vrot.slane %v4799_v25, 4  ;;  %5410 = vst [vmem:[%s9211_s24 + $0x8] sm:$0xff] %v5390_v40 }
 0x3d3   : > { %6573 = vpow2.f32 %v4620_v35  ;;  %v4398_v50 = vrot.slane %v4397_v48, 4 }
 0x3d4   : > { %v5084_v36 = vmul.f32 %v9780_v56, %v4942_v58  ;;  %v5085_v31 = vmul.f32 %v9781_v3, %v4943_v11  ;;  %v4801_v62 = vadd.f32 %v4800_v51, %v4799_v25  ;;  %v5229_v24 = vrot.slane %v5228_v63, 2  ;;  %v9783_v25 = vld [vmem:[#allocation28_spill] sm:$0xff] }
 0x3d5   : > { %v4399_v26 = vmax.f32 %v4397_v48, %v4398_v50 }
 0x3d6   : > { %v5233_v28 = vadd.f32 %v5085_v31, %v5084_v36  ;;  %v4802_v55 = vrot.slane %v4801_v62, 2  ;;  %v5230_v43 = vadd.f32 %v5229_v24, %v5228_v63 }
 0x3d7   : > { %v4400_v21 = vrot.slane %v4399_v26, 2 }
 0x3d8   : > { %v5234_v5 = vrot.slane %v5233_v28, 4  ;;  %v4803_v53 = vadd.f32 %v4802_v55, %v4801_v62  ;;  %v5231_v29 = vrot.slane %v5230_v43, 1 }
 0x3d9   : > { %v4401_v18 = vmax.f32 %v4399_v26, %v4400_v21 }
 0x3da   : > { %v9273_v1 = vpop.eup %6569  ;;  %v5235_v41 = vadd.f32 %v5234_v5, %v5233_v28  ;;  %v4804_v45 = vrot.slane %v4803_v53, 1  ;;  %v5232_v36 = vadd.f32 %v5231_v29, %v5230_v43 }
 0x3db   : > { %v6572_v2 = vpop.eup %6571  ;;  %v4402_v7 = vrot.slane %v4401_v18, 1 }
 0x3dc   : > { %v5236_v60 = vrot.slane %v5235_v41, 2  ;;  %v4945_v14 = vmul.f32 %v6572_v2, %v9247_v47  ;;  %v4946_v27 = vmul.f32 %v6572_v2, %v9249_v10  ;;  %v4805_v37 = vadd.f32 %v4804_v45, %v4803_v53  ;;  %v6294_v44 = vpop.f32.mrb[142].mxu0 }
 0x3dd   : > { %v9277_v12 = vpop.eup %6573  ;;  %v4403_v15 = vmax.f32 %v4401_v18, %v4402_v7  ;;  %v3965_v61 = vadd.f32 %v9227_v38, %v6294_v44  ;;  %v3959_v59 = vpop.f32.mrb[143].mxu0 }
 0x3de   : > { %v5237_v35 = vadd.f32 %v5236_v60, %v5235_v41  ;;  %v5086_v16 = vmul.f32 %v9782_v42, %v4945_v14  ;;  %v5087_v52 = vmul.f32 %v9783_v25, %v4946_v27  ;;  %6575 = vrcp.f32 %v4805_v37 }
 0x3df   : > { %v4806_v47 = vadd.f32 %v9277_v12, %v9273_v1  ;;  %v4516_v48 = vsub.f32 %v4228_v6, %v4403_v15  ;;  %v4517_v10 = vsub.f32 %v4229_v23, %v4403_v15  ;;  %vm4103_vm11 = vcmp.ge.f32.partialorder %v3965_v61, 0.0 }
 0x3e0   : > { %v5238_v40 = vrot.slane %v5237_v35, 1  ;;  %v5240_v63 = vadd.f32 %v5087_v52, %v5086_v16  ;;  %v4167_v58 = vmul.f32 0.01, %v3965_v61  ;;  %v3960_v11 = vadd.f32 %v9227_v38, %v3959_v59  ;;  %v9785_v16 = vld [vmem:[#allocation65_spill] sm:$0xff] }
 0x3e1   : > { %v4807_v51 = vrot.slane %v4806_v47, 4  ;;  %v4622_v50 = vmul.f32 1.442695, %v4516_v48  ;;  %v4624_v56 = vmul.f32 1.442695, %v4517_v10 }
 0x3e2   : > { %v5239_v3 = vadd.f32 %v5238_v40, %v5237_v35  ;;  %v5241_v31 = vrot.slane %v5240_v63, 4  ;;  %vm4102_vm12 = vcmp.ge.f32.partialorder %v3960_v11, 0.0  ;;  %v9285_v24 = vsel %vm4103_vm11, %v3965_v61, %v4167_v58  ;;  %v9784_v35 = vld [vmem:[#allocation64_spill] sm:$0xff] }
 0x3e3   : > { %v4808_v62 = vadd.f32 %v4807_v51, %v4806_v47  ;;  %6577 = vpow2.f32 %v4622_v50  ;;  %v4166_v26 = vmul.f32 0.01, %v3960_v11 }
 0x3e4   : > { %v5391_v23 = vsel %vm5370_vm3, %v5239_v3, %v5232_v36  ;;  %v5242_v6 = vadd.f32 %v5241_v31, %v5240_v63  ;;  %6579 = vpow2.f32 %v4624_v56 }
 0x3e5   : > { %v4809_v28 = vrot.slane %v4808_v62, 2  ;;  %v4230_v55 = vsel %vm4102_vm12, %v3960_v11, %v4166_v26  ;;  %v6297_v21 = vpop.f32.mrb[144].mxu0 }
 0x3e6   : > { %v5243_v5 = vrot.slane %v5242_v6, 2  ;;  %v4404_v53 = vmax.f32 %v4230_v55, %v9285_v24  ;;  %v3975_v43 = vadd.f32 %v9227_v38, %v6297_v21  ;;  %v3969_v18 = vpop.f32.mrb[145].mxu0 }
 0x3e7   : > { %v4810_v41 = vadd.f32 %v4809_v28, %v4808_v62  ;;  %v3970_v45 = vadd.f32 %v9227_v38, %v3969_v18 }
 0x3e8   : > { %v6576_v2 = vpop.eup %6575  ;;  %v5244_v7 = vadd.f32 %v5243_v5, %v5242_v6  ;;  %v4405_v60 = vrot.slane %v4404_v53, 4  ;;  %vm4105_vm13 = vcmp.ge.f32.partialorder %v3975_v43, 0.0  ;;  %v4169_v14 = vmul.f32 0.01, %v3975_v43 }
 0x3e9   : > { %v4948_v27 = vmul.f32 %v6576_v2, %v9261_v33  ;;  %v4949_v37 = vmul.f32 %v6576_v2, %v9263_v20  ;;  %v4811_v44 = vrot.slane %v4810_v41, 1  ;;  %vm4104_vm1 = vcmp.ge.f32.partialorder %v3970_v45, 0.0 }
 0x3ea   : > { %v5245_v29 = vrot.slane %v5244_v7, 1  ;;  %v4406_v15 = vmax.f32 %v4404_v53, %v4405_v60  ;;  %v9293_v61 = vsel %vm4105_vm13, %v3975_v43, %v4169_v14  ;;  %v4168_v59 = vmul.f32 0.01, %v3970_v45 }
 0x3eb   : > { %v5088_v42 = vmul.f32 %v9784_v35, %v4948_v27  ;;  %v5089_v25 = vmul.f32 %v9785_v16, %v4949_v37  ;;  %v4812_v52 = vadd.f32 %v4811_v44, %v4810_v41 }
 0x3ec   : > { %v5246_v47 = vadd.f32 %v5245_v29, %v5244_v7  ;;  %v4407_v48 = vrot.slane %v4406_v15, 2  ;;  %v9297_v10 = vsel %vm4104_vm1, %v3970_v45, %v4168_v59 }
 0x3ed   : > { %v9299_v40 = vpop.eup %6577  ;;  %v5247_v33 = vadd.f32 %v5089_v25, %v5088_v42  ;;  %6581 = vrcp.f32 %v4812_v52  ;;  %v4411_v20 = vmax.f32 %v9297_v10, %v9293_v61 }
 0x3ee   : > { %v9303_v63 = vpop.eup %6579  ;;  %v4408_v58 = vmax.f32 %v4406_v15, %v4407_v48  ;;  %v5392_v11 = vsel %vm5372_vm8, %v5246_v47, %v5391_v23  ;;  %v6300_v36 = vpop.f32.mrb[146].mxu0 }
 0x3ef   : > { %v5248_v51 = vrot.slane %v5247_v33, 4  ;;  %v4813_v50 = vadd.f32 %v9303_v63, %v9299_v40  ;;  %v4412_v56 = vrot.slane %v4411_v20, 4  ;;  %v3985_v31 = vadd.f32 %v9227_v38, %v6300_v36  ;;  %v3979_v62 = vpop.f32.mrb[147].mxu0 }
 0x3f0   : > { %v4409_v3 = vrot.slane %v4408_v58, 1  ;;  %v3980_v21 = vadd.f32 %v9227_v38, %v3979_v62 }
 0x3f1   : > { %v5249_v26 = vadd.f32 %v5248_v51, %v5247_v33  ;;  %v4814_v6 = vrot.slane %v4813_v50, 4  ;;  %v4413_v28 = vmax.f32 %v4411_v20, %v4412_v56  ;;  %vm4107_vm4 = vcmp.ge.f32.partialorder %v3985_v31, 0.0 }
 0x3f2   : > { %v4410_v5 = vmax.f32 %v4408_v58, %v4409_v3  ;;  %v4171_v53 = vmul.f32 0.01, %v3985_v31  ;;  %vm4106_vm5 = vcmp.ge.f32.partialorder %v3980_v21, 0.0  ;;  %v4170_v7 = vmul.f32 0.01, %v3980_v21  ;;  %v9786_v58 = vld [vmem:[#allocation66_spill] sm:$0xff] }
 0x3f3   : > { %v5250_v43 = vrot.slane %v5249_v26, 2  ;;  %v4815_v23 = vadd.f32 %v4814_v6, %v4813_v50  ;;  %v4414_v18 = vrot.slane %v4413_v28, 2  ;;  %v9787_v50 = vld [vmem:[#allocation67_spill] sm:$0xff] }
 0x3f4   : > { %v4518_v41 = vsub.f32 %v4230_v55, %v4410_v5  ;;  %v4519_v45 = vsub.f32 %v9285_v24, %v4410_v5  ;;  %v9311_v2 = vsel %vm4107_vm4, %v3985_v31, %v4171_v53  ;;  %v9313_v15 = vsel %vm4106_vm5, %v3980_v21, %v4170_v7 }
 0x3f5   : > { %v5251_v60 = vadd.f32 %v5250_v43, %v5249_v26  ;;  %v4816_v14 = vrot.slane %v4815_v23, 2  ;;  %v4415_v27 = vmax.f32 %v4413_v28, %v4414_v18  ;;  %v6303_v37 = vpop.f32.mrb[148].mxu0  ;;  %v4418_v24 = vmax.f32 %v9313_v15, %v9311_v2 }
 0x3f6   : > { %v4626_v44 = vmul.f32 1.442695, %v4518_v41  ;;  %v4628_v29 = vmul.f32 1.442695, %v4519_v45  ;;  %v3995_v59 = vadd.f32 %v9227_v38, %v6303_v37  ;;  %v3989_v35 = vpop.f32.mrb[149].mxu0 }
 0x3f7   : > { %v6582_v42 = vpop.eup %6581  ;;  %v5252_v16 = vrot.slane %v5251_v60, 1  ;;  %v4817_v25 = vadd.f32 %v4816_v14, %v4815_v23  ;;  %v4416_v55 = vrot.slane %v4415_v27, 1  ;;  %v4419_v36 = vrot.slane %v4418_v24, 4 }
 0x3f8   : > { %v4951_v52 = vmul.f32 %v6582_v42, %v9273_v1  ;;  %v4952_v47 = vmul.f32 %v6582_v42, %v9277_v12  ;;  %6583 = vpow2.f32 %v4626_v44  ;;  %vm4109_vm6 = vcmp.ge.f32.partialorder %v3995_v59, 0.0 }
 0x3f9   : > { %v5253_v48 = vadd.f32 %v5252_v16, %v5251_v60  ;;  %v4818_v33 = vrot.slane %v4817_v25, 1  ;;  %6585 = vpow2.f32 %v4628_v29  ;;  %v4417_v20 = vmax.f32 %v4415_v27, %v4416_v55 }
 0x3fa   : > { %v5090_v51 = vmul.f32 %v9786_v58, %v4951_v52  ;;  %v5091_v56 = vmul.f32 %v9787_v50, %v4952_v47  ;;  %v4173_v3 = vmul.f32 0.01, %v3995_v59  ;;  %v3990_v1 = vadd.f32 %v9227_v38, %v3989_v35 }
 0x3fb   : > { %v4819_v31 = vadd.f32 %v4818_v33, %v4817_v25  ;;  %v4520_v62 = vsub.f32 %v9297_v10, %v4417_v20  ;;  %v4521_v26 = vsub.f32 %v9293_v61, %v4417_v20  ;;  %v4420_v6 = vmax.f32 %v4418_v24, %v4419_v36 }
 0x3fc   : > { %v5254_v12 = vadd.f32 %v5091_v56, %v5090_v51  ;;  %v9325_v28 = vsel %vm4109_vm6, %v3995_v59, %v4173_v3  ;;  %v6306_v21 = vpop.f32.mrb[150].mxu0  ;;  %v9328_v5 = vsel %vm5374_vm9, %v5253_v48, %v5392_v11  ;;  %vm4108_vm2 = vcmp.ge.f32.partialorder %v3990_v1, 0.0 }
 0x3fd   : > { %6587 = vrcp.f32 %v4819_v31  ;;  %v4630_v53 = vmul.f32 1.442695, %v4520_v62  ;;  %v4632_v43 = vmul.f32 1.442695, %v4521_v26  ;;  %v3999_v23 = vpop.f32.mrb[151].mxu0  ;;  %v4421_v41 = vrot.slane %v4420_v6, 2 }
 0x3fe   : > { %v5255_v18 = vrot.slane %v5254_v12, 4  ;;  %v4172_v10 = vmul.f32 0.01, %v3990_v1  ;;  %v4005_v61 = vadd.f32 %v9227_v38, %v6306_v21  ;;  %v4000_v45 = vadd.f32 %v9227_v38, %v3999_v23 }
 0x3ff   : > { %6589 = vpow2.f32 %v4630_v53  ;;  %v4422_v60 = vmax.f32 %v4420_v6, %v4421_v41 }
 0x400   : > { %v5256_v7 = vadd.f32 %v5255_v18, %v5254_v12  ;;  %6591 = vpow2.f32 %v4632_v43  ;;  %v9332_v14 = vsel %vm4108_vm2, %v3990_v1, %v4172_v10  ;;  %vm4111_vm7 = vcmp.ge.f32.partialorder %v4005_v61, 0.0 }
 0x401   : > { %v4425_v11 = vmax.f32 %v9332_v14, %v9325_v28  ;;  %v4175_v27 = vmul.f32 0.01, %v4005_v61  ;;  %vm4110_vm11 = vcmp.ge.f32.partialorder %v4000_v45, 0.0  ;;  %v4423_v29 = vrot.slane %v4422_v60, 1 }
 0x402   : > { %v9336_v37 = vpop.eup %6583  ;;  %v5257_v44 = vrot.slane %v5256_v7, 2  ;;  %v4174_v59 = vmul.f32 0.01, %v4000_v45 }
 0x403   : > { %v9338_v35 = vpop.eup %6585  ;;  %v4426_v42 = vrot.slane %v4425_v11, 4  ;;  %v9340_v16 = vsel %vm4111_vm7, %v4005_v61, %v4175_v27  ;;  %v6309_v25 = vpop.f32.mrb[152].mxu0  ;;  %v4424_v52 = vmax.f32 %v4422_v60, %v4423_v29  ;;  %v9789_v60 = vld [vmem:[#allocation69_spill] sm:$0xff] }
 0x404   : > { %v5258_v55 = vadd.f32 %v5257_v44, %v5256_v7  ;;  %v4820_v24 = vadd.f32 %v9338_v35, %v9336_v37  ;;  %v9344_v47 = vsel %vm4110_vm11, %v4000_v45, %v4174_v59  ;;  %v4009_v48 = vpop.f32.mrb[153].mxu0  ;;  %v4015_v58 = vadd.f32 %v9227_v38, %v6309_v25  ;;  %v9788_v45 = vld [vmem:[#allocation68_spill] sm:$0xff] }
 0x405   : > { %v4427_v33 = vmax.f32 %v4425_v11, %v4426_v42  ;;  %v4432_v20 = vmax.f32 %v9344_v47, %v9340_v16  ;;  %v4010_v51 = vadd.f32 %v9227_v38, %v4009_v48  ;;  %v4522_v36 = vsub.f32 %v9313_v15, %v4424_v52 }
 0x406   : > { %v5259_v50 = vrot.slane %v5258_v55, 1  ;;  %v4821_v56 = vrot.slane %v4820_v24, 4  ;;  %v4523_v3 = vsub.f32 %v9311_v2, %v4424_v52  ;;  %vm4113_vm12 = vcmp.ge.f32.partialorder %v4015_v58, 0.0 }
 0x407   : > { %v6588_v31 = vpop.eup %6587  ;;  %v4428_v62 = vrot.slane %v4427_v33, 2  ;;  %v4433_v26 = vrot.slane %v4432_v20, 4  ;;  %v4177_v1 = vmul.f32 0.01, %v4015_v58  ;;  %v4634_v41 = vmul.f32 1.442695, %v4522_v36 }
 0x408   : > { %v6312_v12 = vpop.f32.mrb[154].mxu0  ;;  %v9352_v6 = vadd.f32 %v5259_v50, %v5258_v55  ;;  %v4954_v21 = vmul.f32 %v6588_v31, %v9299_v40  ;;  %v4955_v53 = vmul.f32 %v6588_v31, %v9303_v63  ;;  %v4822_v43 = vadd.f32 %v4821_v56, %v4820_v24 }
 0x409   : > { %v4019_v23 = vpop.f32.mrb[155].mxu0  ;;  %v9356_v18 = vpop.eup %6589  ;;  %v4636_v15 = vmul.f32 1.442695, %v4523_v3  ;;  %v4429_v10 = vmax.f32 %v4427_v33, %v4428_v62  ;;  %v4434_v2 = vmax.f32 %v4432_v20, %v4433_v26  ;;  %v9363_v44 = vsel %vm4113_vm12, %v4015_v58, %v4177_v1 }
 0x40a   : > { %v9358_v61 = vpop.eup %6591  ;;  %v5092_v7 = vmul.f32 %v9788_v45, %v4954_v21  ;;  %v5093_v11 = vmul.f32 %v9789_v60, %v4955_v53  ;;  %v4823_v27 = vrot.slane %v4822_v43, 2  ;;  %6593 = vpow2.f32 %v4634_v41 }
 0x40b   : > { %v4827_v40 = vadd.f32 %v9358_v61, %v9356_v18  ;;  %v4430_v63 = vrot.slane %v4429_v10, 1  ;;  %v4435_v29 = vrot.slane %v4434_v2, 2  ;;  %6595 = vpow2.f32 %v4636_v15 }
 0x40c   : > { %v5261_v59 = vadd.f32 %v5093_v11, %v5092_v7  ;;  %v4824_v42 = vadd.f32 %v4823_v27, %v4822_v43  ;;  %vm4112_vm13 = vcmp.ge.f32.partialorder %v4010_v51, 0.0  ;;  %v4176_v48 = vmul.f32 0.01, %v4010_v51 }
 0x40d   : > { %v6315_v25 = vpop.f32.mrb[156].mxu0  ;;  %v4828_v55 = vrot.slane %v4827_v40, 4  ;;  %v4431_v24 = vmax.f32 %v4429_v10, %v4430_v63  ;;  %v4436_v52 = vmax.f32 %v4434_v2, %v4435_v29  ;;  %v4025_v58 = vadd.f32 %v9227_v38, %v6312_v12 }
 0x40e   : > { %v4029_v33 = vpop.f32.mrb[157].mxu0  ;;  %v5262_v20 = vrot.slane %v5261_v59, 4  ;;  %v4825_v50 = vrot.slane %v4824_v42, 1  ;;  %v4020_v56 = vadd.f32 %v9227_v38, %v4019_v23  ;;  %v9372_v21 = vsel %vm4112_vm13, %v4010_v51, %v4176_v48 }
 0x40f   : > { %v4829_v36 = vadd.f32 %v4828_v55, %v4827_v40  ;;  %v4524_v3 = vsub.f32 %v9332_v14, %v4431_v24  ;;  %v4525_v31 = vsub.f32 %v9325_v28, %v4431_v24  ;;  %v4437_v62 = vrot.slane %v4436_v52, 1 }
 0x410   : > { %v5263_v26 = vadd.f32 %v5262_v20, %v5261_v59  ;;  %v4826_v1 = vadd.f32 %v4825_v50, %v4824_v42  ;;  %vm4115_vm1 = vcmp.ge.f32.partialorder %v4025_v58, 0.0  ;;  %v4439_v12 = vmax.f32 %v9372_v21, %v9363_v44 }
 0x411   : > { %v4830_v53 = vrot.slane %v4829_v36, 2  ;;  %v4638_v43 = vmul.f32 1.442695, %v4524_v3  ;;  %v4640_v41 = vmul.f32 1.442695, %v4525_v31  ;;  %v4438_v15 = vmax.f32 %v4436_v52, %v4437_v62 }
 0x412   : > { %v5264_v10 = vrot.slane %v5263_v26, 2  ;;  %6597 = vrcp.f32 %v4826_v1  ;;  %v4179_v23 = vmul.f32 0.01, %v4025_v58  ;;  %v6318_v14 = vpop.f32.mrb[158].mxu0  ;;  %v4440_v60 = vrot.slane %v4439_v12, 4 }
 0x413   : > { %v4831_v2 = vadd.f32 %v4830_v53, %v4829_v36  ;;  %6599 = vpow2.f32 %v4638_v43  ;;  %v4526_v28 = vsub.f32 %v9344_v47, %v4438_v15  ;;  %v4527_v45 = vsub.f32 %v9340_v16, %v4438_v15  ;;  %v4039_v51 = vpop.f32.mrb[159].mxu0 }
 0x414   : > { %v5265_v7 = vadd.f32 %v5264_v10, %v5263_v26  ;;  %6601 = vpow2.f32 %v4640_v41  ;;  %v9379_v11 = vsel %vm4115_vm1, %v4025_v58, %v4179_v23  ;;  %v9381_v27 = vpop.eup %6593  ;;  %vm4114_vm4 = vcmp.ge.f32.partialorder %v4020_v56, 0.0 }
 0x415   : > { %v4832_v40 = vrot.slane %v4831_v2, 1  ;;  %v4642_v63 = vmul.f32 1.442695, %v4526_v28  ;;  %v4644_v29 = vmul.f32 1.442695, %v4527_v45  ;;  %v9383_v59 = vpop.eup %6595  ;;  %v4441_v55 = vmax.f32 %v4439_v12, %v4440_v60 }
 0x416   : > { %v5266_v42 = vrot.slane %v5265_v7, 1  ;;  %v4178_v47 = vmul.f32 0.01, %v4020_v56  ;;  %v4035_v16 = vadd.f32 %v9227_v38, %v6315_v25  ;;  %v4834_v52 = vadd.f32 %v9383_v59, %v9381_v27 }
 0x417   : > { %v4833_v24 = vadd.f32 %v4832_v40, %v4831_v2  ;;  %6603 = vpow2.f32 %v4642_v63  ;;  %v4030_v48 = vadd.f32 %v9227_v38, %v4029_v33  ;;  %v6321_v20 = vpop.f32.mrb[160].mxu0  ;;  %v4442_v58 = vrot.slane %v4441_v55, 2 }
 0x418   : > { %v9389_v50 = vadd.f32 %v5266_v42, %v5265_v7  ;;  %6605 = vpow2.f32 %v4644_v29  ;;  %v9391_v36 = vsel %vm4114_vm4, %v4020_v56, %v4178_v47  ;;  %v9393_v3 = vpop.f32.mrb[161].mxu0  ;;  %v4835_v31 = vrot.slane %v4834_v52, 4  ;;  %v9790_v29 = vld [vmem:[#allocation70_spill] sm:$0xff] }
 0x419   : > { %6607 = vrcp.f32 %v4833_v24  ;;  %v4446_v25 = vmax.f32 %v9391_v36, %v9379_v11  ;;  %vm4117_vm5 = vcmp.ge.f32.partialorder %v4035_v16, 0.0  ;;  %v4443_v62 = vmax.f32 %v4441_v55, %v4442_v58  ;;  %v9791_v55 = vld [vmem:[#allocation71_spill] sm:$0xff] }
 0x41a   : > { %v4181_v26 = vmul.f32 0.01, %v4035_v16  ;;  %vm4116_vm6 = vcmp.ge.f32.partialorder %v4030_v48, 0.0  ;;  %v4180_v1 = vmul.f32 0.01, %v4030_v48  ;;  %v4836_v33 = vadd.f32 %v4835_v31, %v4834_v52 }
 0x41b   : > { %v4447_v53 = vrot.slane %v4446_v25, 4  ;;  %v4045_v43 = vadd.f32 %v9227_v38, %v6318_v14  ;;  %v9399_v41 = vadd.f32 %v9227_v38, %v4039_v51  ;;  %v4444_v15 = vrot.slane %v4443_v62, 1 }
 0x41c   : > { %v6598_v56 = vpop.eup %6597  ;;  %v9401_v10 = vsel %vm4117_vm5, %v4035_v16, %v4181_v26  ;;  %v9403_v12 = vsel %vm4116_vm6, %v4030_v48, %v4180_v1  ;;  %v9406_v23 = vadd.f32 %v9227_v38, %v6321_v20  ;;  %v4837_v7 = vrot.slane %v4836_v33, 2 }
 0x41d   : > { %v9408_v2 = vpop.eup %6599  ;;  %v4957_v28 = vmul.f32 %v6598_v56, %v9336_v37  ;;  %v4958_v45 = vmul.f32 %v6598_v56, %v9338_v35  ;;  %v4448_v14 = vmax.f32 %v4446_v25, %v4447_v53  ;;  %v4445_v51 = vmax.f32 %v4443_v62, %v4444_v15 }
 0x41e   : > { %v9412_v60 = vpop.eup %6601  ;;  %v4453_v40 = vmax.f32 %v9403_v12, %v9401_v10  ;;  %vm4119_vm2 = vcmp.ge.f32.partialorder %v4045_v43, 0.0  ;;  %v4183_v63 = vmul.f32 0.01, %v4045_v43  ;;  %v4838_v16 = vadd.f32 %v4837_v7, %v4836_v33 }
 0x41f   : > { %v5094_v42 = vmul.f32 %v9790_v29, %v4957_v28  ;;  %v5095_v47 = vmul.f32 %v9791_v55, %v4958_v45  ;;  %v4841_v37 = vadd.f32 %v9412_v60, %v9408_v2  ;;  %v4528_v35 = vsub.f32 %v9372_v21, %v4445_v51  ;;  %v9792_v55 = vld [vmem:[#allocation72_spill] sm:$0xff] }
 0x420   : > { %v4529_v24 = vsub.f32 %v9363_v44, %v4445_v51  ;;  %v4449_v52 = vrot.slane %v4448_v14, 2  ;;  %v4454_v48 = vrot.slane %v4453_v40, 4  ;;  %v4839_v31 = vrot.slane %v4838_v16, 1 }
 0x421   : > { %v9422_v20 = vpop.eup %6603  ;;  %v5268_v58 = vadd.f32 %v5095_v47, %v5094_v42  ;;  %v4842_v25 = vrot.slane %v4841_v37, 4  ;;  %v9424_v62 = vsel %vm4119_vm2, %v4045_v43, %v4183_v63  ;;  %v4646_v1 = vmul.f32 1.442695, %v4528_v35 }
 0x422   : > { %v9426_v26 = vpop.eup %6605  ;;  %v4648_v33 = vmul.f32 1.442695, %v4529_v24  ;;  %v4450_v53 = vmax.f32 %v4448_v14, %v4449_v52  ;;  %v4455_v56 = vmax.f32 %v4453_v40, %v4454_v48  ;;  %v4840_v21 = vadd.f32 %v4839_v31, %v4838_v16  ;;  %v9793_v40 = vld [vmem:[#allocation73_spill] sm:$0xff] }
 0x423   : > { %v6608_v15 = vpop.eup %6607  ;;  %v5269_v28 = vrot.slane %v5268_v58, 4  ;;  %v4843_v45 = vadd.f32 %v4842_v25, %v4841_v37  ;;  %v4848_v44 = vadd.f32 %v9426_v26, %v9422_v20  ;;  %6609 = vpow2.f32 %v4646_v1 }
 0x424   : > { %v4960_v7 = vmul.f32 %v6608_v15, %v9356_v18  ;;  %v4961_v51 = vmul.f32 %v6608_v15, %v9358_v61  ;;  %v4451_v43 = vrot.slane %v4450_v53, 1  ;;  %6611 = vrcp.f32 %v4840_v21 }
 0x425   : > { %v5270_v63 = vadd.f32 %v5269_v28, %v5268_v58  ;;  %v4844_v29 = vrot.slane %v4843_v45, 2  ;;  %v4849_v42 = vrot.slane %v4848_v44, 4  ;;  %6613 = vpow2.f32 %v4648_v33 }
 0x426   : > { %v5096_v14 = vmul.f32 %v9792_v55, %v4960_v7  ;;  %v5097_v47 = vmul.f32 %v9793_v40, %v4961_v51  ;;  %v4452_v16 = vmax.f32 %v4450_v53, %v4451_v43  ;;  %v4456_v52 = vrot.slane %v4455_v56, 2 }
 0x427   : > { %v5271_v37 = vrot.slane %v5270_v63, 2  ;;  %v4845_v35 = vadd.f32 %v4844_v29, %v4843_v45  ;;  %v4850_v24 = vadd.f32 %v4849_v42, %v4848_v44  ;;  %vm4118_vm7 = vcmp.ge.f32.partialorder %v9399_v41, 0.0 }
 0x428   : > { %v5275_v48 = vadd.f32 %v5097_v47, %v5096_v14  ;;  %v4530_v18 = vsub.f32 %v9391_v36, %v4452_v16  ;;  %v4531_v61 = vsub.f32 %v9379_v11, %v4452_v16  ;;  %v4457_v1 = vmax.f32 %v4455_v56, %v4456_v52 }
 0x429   : > { %v5272_v58 = vadd.f32 %v5271_v37, %v5270_v63  ;;  %v4846_v31 = vrot.slane %v4845_v35, 1  ;;  %v4851_v25 = vrot.slane %v4850_v24, 2  ;;  %vm4121_vm11 = vcmp.ge.f32.partialorder %v9406_v23, 0.0 }
 0x42a   : > { %v5276_v15 = vrot.slane %v5275_v48, 4  ;;  %v4650_v28 = vmul.f32 1.442695, %v4530_v18  ;;  %v4652_v21 = vmul.f32 1.442695, %v4531_v61  ;;  %v4458_v44 = vrot.slane %v4457_v1, 1 }
 0x42b   : > { %v5273_v33 = vrot.slane %v5272_v58, 1  ;;  %v4847_v53 = vadd.f32 %v4846_v31, %v4845_v35  ;;  %v4852_v45 = vadd.f32 %v4851_v25, %v4850_v24  ;;  %v4182_v36 = vmul.f32 0.01, %v9399_v41 }
 0x42c   : > { %v5277_v7 = vadd.f32 %v5276_v15, %v5275_v48  ;;  %6615 = vpow2.f32 %v4650_v28  ;;  %v4185_v11 = vmul.f32 0.01, %v9406_v23  ;;  %v4459_v43 = vmax.f32 %v4457_v1, %v4458_v44 }
 0x42d   : > { %6617 = vrcp.f32 %v4847_v53  ;;  %v4853_v51 = vrot.slane %v4852_v45, 1  ;;  %v4050_v56 = vadd.f32 %v9227_v38, %v9393_v3  ;;  %v9442_v63 = vpop.eup %6609  ;;  %v9447_v42 = vsel %vm4118_vm7, %v9399_v41, %v4182_v36 }
 0x42e   : > { %v5278_v29 = vrot.slane %v5277_v7, 2  ;;  %6619 = vpow2.f32 %v4652_v21  ;;  %v9452_v55 = vsel %vm4121_vm11, %v9406_v23, %v4185_v11  ;;  %v6612_v14 = vpop.eup %6611  ;;  %v4532_v47 = vsub.f32 %v9403_v12, %v4459_v43 }
 0x42f   : > { %v4854_v40 = vadd.f32 %v4853_v51, %v4852_v45  ;;  %v4533_v38 = vsub.f32 %v9401_v10, %v4459_v43  ;;  %v4460_v3 = vmax.f32 %v9447_v42, %v9424_v62  ;;  %v9458_v16 = vpop.eup %6613  ;;  %v4963_v41 = vmul.f32 %v6612_v14, %v9381_v27 }
 0x430   : > { %v5279_v37 = vadd.f32 %v5278_v29, %v5277_v7  ;;  %v4964_v35 = vmul.f32 %v6612_v14, %v9383_v59  ;;  %vm4120_vm12 = vcmp.ge.f32.partialorder %v4050_v56, 0.0  ;;  %v4855_v23 = vadd.f32 %v9458_v16, %v9442_v63 }
 0x431   : > { %6621 = vrcp.f32 %v4854_v40  ;;  %v4654_v24 = vmul.f32 1.442695, %v4532_v47  ;;  %v4656_v52 = vmul.f32 1.442695, %v4533_v38  ;;  %v5098_v12 = vmul.f32 %v8755_v39, %v4963_v41 }
 0x432   : > { %v5099_v10 = vmul.f32 %v8775_v17, %v4964_v35  ;;  %v4461_v48 = vrot.slane %v4460_v3, 4  ;;  %v4184_v18 = vmul.f32 0.01, %v4050_v56  ;;  %v4856_v61 = vrot.slane %v4855_v23, 4 }
 0x433   : > { %6623 = vpow2.f32 %v4654_v24  ;;  %v5274_v31 = vadd.f32 %v5273_v33, %v5272_v58  ;;  %v5280_v25 = vrot.slane %v5279_v37, 1  ;;  %v5394_v39 = vsel %vm5376_vm10, %v9352_v6, %v9328_v5 }
 0x434   : > { %v5282_v27 = vadd.f32 %v5099_v10, %v5098_v12  ;;  %6625 = vpow2.f32 %v4656_v52  ;;  %v4462_v59 = vmax.f32 %v4460_v3, %v4461_v48  ;;  %v9467_v1 = vsel %vm4120_vm12, %v4050_v56, %v4184_v18 }
 0x435   : > { %v4857_v15 = vadd.f32 %v4856_v61, %v4855_v23  ;;  %v4467_v28 = vmax.f32 %v9467_v1, %v9452_v55  ;;  %v5281_v21 = vadd.f32 %v5280_v25, %v5279_v37  ;;  %v5395_v33 = vsel %vm5378_vm14, %v9389_v50, %v5394_v39 }
 0x436   : > { %v9474_v17 = vpop.eup %6615  ;;  %v5283_v53 = vrot.slane %v5282_v27, 4  ;;  %v4463_v58 = vrot.slane %v4462_v59, 2  ;;  %v5396_v36 = vsel %vm5380_vm15, %v5274_v31, %v5395_v33 }
 0x437   : > { %v6618_v45 = vpop.eup %6617  ;;  %v4858_v44 = vrot.slane %v4857_v15, 2  ;;  %v4468_v7 = vrot.slane %v4467_v28, 4  ;;  %v5397_v50 = vsel %vm5382_vm0, %v5281_v21, %v5396_v36 }
 0x438   : > { %v9479_v11 = vpop.eup %6619  ;;  %v5284_v51 = vadd.f32 %v5283_v53, %v5282_v27  ;;  %v4966_v43 = vmul.f32 %v6618_v45, %v9408_v2  ;;  %v4967_v5 = vmul.f32 %v6618_v45, %v9412_v60  ;;  %v4464_v6 = vmax.f32 %v4462_v59, %v4463_v58  ;;  %5411 = vst [vmem:[%s9211_s24 + $0x10] sm:$0xff] %v5397_v50 }
 0x439   : > { %v4859_v56 = vadd.f32 %v4858_v44, %v4857_v15  ;;  %v4862_v29 = vadd.f32 %v9479_v11, %v9474_v17  ;;  %v4469_v14 = vmax.f32 %v4467_v28, %v4468_v7 }
 0x43a   : > { %v5100_v40 = vmul.f32 %v8804_v54, %v4966_v43  ;;  %v5101_v47 = vmul.f32 %v8826_v0, %v4967_v5  ;;  %v4465_v38 = vrot.slane %v4464_v6, 1  ;;  %v5285_v35 = vrot.slane %v5284_v51, 2 }
 0x43b   : > { %v6622_v3 = vpop.eup %6621  ;;  %v4860_v37 = vrot.slane %v4859_v56, 1  ;;  %v4863_v41 = vrot.slane %v4862_v29, 4  ;;  %v4470_v2 = vrot.slane %v4469_v14, 2 }
 0x43c   : > { %v5289_v60 = vadd.f32 %v5101_v47, %v5100_v40  ;;  %v4969_v23 = vmul.f32 %v6622_v3, %v9422_v20  ;;  %v4970_v24 = vmul.f32 %v6622_v3, %v9426_v26  ;;  %v4466_v48 = vmax.f32 %v4464_v6, %v4465_v38 }
 0x43d   : > { %v9491_v52 = vpop.eup %6623  ;;  %v4861_v12 = vadd.f32 %v4860_v37, %v4859_v56  ;;  %v4864_v10 = vadd.f32 %v4863_v41, %v4862_v29  ;;  %v4471_v54 = vmax.f32 %v4469_v14, %v4470_v2  ;;  %v5286_v27 = vadd.f32 %v5285_v35, %v5284_v51 }
 0x43e   : > { %v9493_v18 = vpop.eup %6625  ;;  %v5290_v0 = vrot.slane %v5289_v60, 4  ;;  %v5102_v61 = vmul.f32 %v8845_v49, %v4969_v23  ;;  %v5103_v31 = vmul.f32 %v8856_v32, %v4970_v24  ;;  %v4534_v26 = vsub.f32 %v9447_v42, %v4466_v48 }
 0x43f   : > { %6627 = vrcp.f32 %v4861_v12  ;;  %v4865_v25 = vrot.slane %v4864_v10, 2  ;;  %v4869_v20 = vadd.f32 %v9493_v18, %v9491_v52  ;;  %v4535_v28 = vsub.f32 %v9424_v62, %v4466_v48 }
 0x440   : > { %v5291_v59 = vadd.f32 %v5290_v0, %v5289_v60  ;;  %v5296_v15 = vadd.f32 %v5103_v31, %v5102_v61  ;;  %v4658_v53 = vmul.f32 1.442695, %v4534_v26  ;;  %v4472_v58 = vrot.slane %v4471_v54, 1 }
 0x441   : > { %v4866_v21 = vadd.f32 %v4865_v25, %v4864_v10  ;;  %v4870_v39 = vrot.slane %v4869_v20, 4  ;;  %v4660_v45 = vmul.f32 1.442695, %v4535_v28  ;;  %v5287_v36 = vrot.slane %v5286_v27, 1 }
 0x442   : > { %v5292_v33 = vrot.slane %v5291_v59, 2  ;;  %v5297_v49 = vrot.slane %v5296_v15, 4  ;;  %6629 = vpow2.f32 %v4658_v53  ;;  %v4473_v7 = vmax.f32 %v4471_v54, %v4472_v58 }
 0x443   : > { %v4867_v32 = vrot.slane %v4866_v21, 1  ;;  %v4871_v44 = vadd.f32 %v4870_v39, %v4869_v20  ;;  %6631 = vpow2.f32 %v4660_v45  ;;  %v5288_v47 = vadd.f32 %v5287_v36, %v5286_v27 }
 0x444   : > { %v5293_v43 = vadd.f32 %v5292_v33, %v5291_v59  ;;  %v5298_v5 = vadd.f32 %v5297_v49, %v5296_v15  ;;  %v4536_v6 = vsub.f32 %v9467_v1, %v4473_v7  ;;  %v4537_v62 = vsub.f32 %v9452_v55, %v4473_v7 }
 0x445   : > { %v4868_v42 = vadd.f32 %v4867_v32, %v4866_v21  ;;  %v4872_v51 = vrot.slane %v4871_v44, 2 }
 0x446   : > { %v5294_v56 = vrot.slane %v5293_v43, 1  ;;  %v5299_v29 = vrot.slane %v5298_v5, 2  ;;  %v4662_v50 = vmul.f32 1.442695, %v4536_v6  ;;  %v4664_v40 = vmul.f32 1.442695, %v4537_v62 }
 0x447   : > { %6633 = vrcp.f32 %v4868_v42  ;;  %v4873_v14 = vadd.f32 %v4872_v51, %v4871_v44 }
 0x448   : > { %v5295_v38 = vadd.f32 %v5294_v56, %v5293_v43  ;;  %v5300_v3 = vadd.f32 %v5299_v29, %v5298_v5  ;;  %6635 = vpow2.f32 %v4662_v50 }
 0x449   : > { %v6628_v37 = vpop.eup %6627  ;;  %v4874_v41 = vrot.slane %v4873_v14, 1  ;;  %6637 = vpow2.f32 %v4664_v40 }
 0x44a   : > { %v5398_v2 = vsel %vm5370_vm3, %v5295_v38, %v5288_v47  ;;  %v5301_v35 = vrot.slane %v5300_v3, 1  ;;  %v4972_v60 = vmul.f32 %v6628_v37, %v9442_v63  ;;  %v4973_v1 = vmul.f32 %v6628_v37, %v9458_v16 }
 0x44b   : > { %v4875_v55 = vadd.f32 %v4874_v41, %v4873_v14 }
 0x44c   : > { %v5302_v23 = vadd.f32 %v5301_v35, %v5300_v3  ;;  %v5104_v24 = vmul.f32 %v8868_v22, %v4972_v60  ;;  %v5105_v12 = vmul.f32 %v8883_v4, %v4973_v1  ;;  %v6630_v10 = vpop.eup %6629 }
 0x44d   : > { %6639 = vrcp.f32 %v4875_v55  ;;  %v6632_v48 = vpop.eup %6631 }
 0x44e   : > { %v5303_v54 = vadd.f32 %v5105_v12, %v5104_v24  ;;  %v5399_v0 = vsel %vm5372_vm8, %v5302_v23, %v5398_v2  ;;  %v4876_v61 = vadd.f32 %v6632_v48, %v6630_v10 }
 0x450   : > { %v5304_v31 = vrot.slane %v5303_v54, 4  ;;  %v4877_v20 = vrot.slane %v4876_v61, 4 }
 0x451   : > { %v6634_v25 = vpop.eup %6633 }
 0x452   : > { %v5305_v63 = vadd.f32 %v5304_v31, %v5303_v54  ;;  %v4975_v16 = vmul.f32 %v6634_v25, %v9474_v17  ;;  %v4976_v26 = vmul.f32 %v6634_v25, %v9479_v11  ;;  %v6636_v27 = vpop.eup %6635  ;;  %v4878_v59 = vadd.f32 %v4877_v20, %v4876_v61 }
 0x453   : > { %v6638_v28 = vpop.eup %6637 }
 0x454   : > { %v5306_v22 = vrot.slane %v5305_v63, 2  ;;  %v5106_v4 = vmul.f32 %v8895_v34, %v4975_v16  ;;  %v5107_v15 = vmul.f32 %v8911_v57, %v4976_v26  ;;  %v4879_v21 = vrot.slane %v4878_v59, 2 }
 0x455   : > { %v4883_v58 = vadd.f32 %v6638_v28, %v6636_v27 }
 0x456   : > { %v5307_v39 = vadd.f32 %v5306_v22, %v5305_v63  ;;  %v5310_v53 = vadd.f32 %v5107_v15, %v5106_v4  ;;  %v4880_v49 = vadd.f32 %v4879_v21, %v4878_v59 }
 0x457   : > { %v6640_v33 = vpop.eup %6639  ;;  %v4884_v7 = vrot.slane %v4883_v58, 4 }
 0x458   : > { %v5308_v45 = vrot.slane %v5307_v39, 1  ;;  %v5311_v32 = vrot.slane %v5310_v53, 4  ;;  %v4978_v17 = vmul.f32 %v6640_v33, %v9491_v52  ;;  %v4979_v11 = vmul.f32 %v6640_v33, %v9493_v18 }
 0x459   : > { %v4881_v44 = vrot.slane %v4880_v49, 1  ;;  %v4885_v42 = vadd.f32 %v4884_v7, %v4883_v58 }
 0x45a   : > { %v5309_v36 = vadd.f32 %v5308_v45, %v5307_v39  ;;  %v5312_v43 = vadd.f32 %v5311_v32, %v5310_v53  ;;  %v5108_v34 = vmul.f32 %v8924_v9, %v4978_v17  ;;  %v5109_v57 = vmul.f32 %v8929_v13, %v4979_v11 }
 0x45b   : > { %v4882_v5 = vadd.f32 %v4881_v44, %v4880_v49  ;;  %v4886_v56 = vrot.slane %v4885_v42, 2 }
 0x45c   : > { %v5313_v51 = vrot.slane %v5312_v43, 2  ;;  %v5317_v6 = vadd.f32 %v5109_v57, %v5108_v34  ;;  %v5400_v62 = vsel %vm5374_vm9, %v5309_v36, %v5399_v0 }
 0x45d   : > { %6641 = vrcp.f32 %v4882_v5  ;;  %v4887_v14 = vadd.f32 %v4886_v56, %v4885_v42 }
 0x45e   : > { %v5314_v29 = vadd.f32 %v5313_v51, %v5312_v43  ;;  %v5318_v52 = vrot.slane %v5317_v6, 4 }
 0x45f   : > { %v4888_v40 = vrot.slane %v4887_v14, 1 }
 0x460   : > { %v5315_v18 = vrot.slane %v5314_v29, 1  ;;  %v5319_v50 = vadd.f32 %v5318_v52, %v5317_v6 }
 0x461   : > { %v4889_v3 = vadd.f32 %v4888_v40, %v4887_v14 }
 0x462   : > { %v5316_v47 = vadd.f32 %v5315_v18, %v5314_v29  ;;  %v5320_v38 = vrot.slane %v5319_v50, 2 }
 0x463   : > { %6643 = vrcp.f32 %v4889_v3 }
 0x464   : > { %v5321_v9 = vadd.f32 %v5320_v38, %v5319_v50  ;;  %v5401_v13 = vsel %vm5376_vm10, %v5316_v47, %v5400_v62 }
 0x466   : > { %v5322_v37 = vrot.slane %v5321_v9, 1 }
 0x467   : > { %v6642_v41 = vpop.eup %6641 }
 0x468   : > { %v5323_v2 = vadd.f32 %v5322_v37, %v5321_v9  ;;  %v4981_v35 = vmul.f32 %v6642_v41, %v6630_v10  ;;  %v4982_v60 = vmul.f32 %v6642_v41, %v6632_v48 }
 0x46a   : > { %v5110_v1 = vmul.f32 %v8944_v8, %v4981_v35  ;;  %v5111_v55 = vmul.f32 %v8961_v46, %v4982_v60  ;;  %v5402_v23 = vsel %vm5378_vm14, %v5323_v2, %v5401_v13 }
 0x46c   : > { %v5324_v24 = vadd.f32 %v5111_v55, %v5110_v1 }
 0x46d   : > { %v6644_v54 = vpop.eup %6643 }
 0x46e   : > { %v5325_v12 = vrot.slane %v5324_v24, 4  ;;  %v4984_v61 = vmul.f32 %v6644_v54, %v6636_v27  ;;  %v4985_v31 = vmul.f32 %v6644_v54, %v6638_v28 }
 0x470   : > { %v5326_v0 = vadd.f32 %v5325_v12, %v5324_v24  ;;  %v5112_v20 = vmul.f32 %v8966_v19, %v4984_v61  ;;  %v5113_v10 = vmul.f32 %v8984_v30, %v4985_v31 }
 0x472   : > { %v5327_v25 = vrot.slane %v5326_v0, 2  ;;  %v5331_v8 = vadd.f32 %v5113_v10, %v5112_v20 }
 0x474   : > { %v5328_v48 = vadd.f32 %v5327_v25, %v5326_v0  ;;  %v5332_v63 = vrot.slane %v5331_v8, 4 }
 0x476   : > { %v5329_v46 = vrot.slane %v5328_v48, 1  ;;  %v5333_v16 = vadd.f32 %v5332_v63, %v5331_v8 }
 0x478   : > { %v5330_v26 = vadd.f32 %v5329_v46, %v5328_v48  ;;  %v5334_v59 = vrot.slane %v5333_v16, 2 }
 0x47a   : > { %v5403_v22 = vsel %vm5380_vm15, %v5330_v26, %v5402_v23  ;;  %v5335_v4 = vadd.f32 %v5334_v59, %v5333_v16 }
 0x47c   : > { %v5336_v27 = vrot.slane %v5335_v4, 1 }
 0x47e   : > { %v5337_v15 = vadd.f32 %v5336_v27, %v5335_v4 }
 0x480   : > { %v5404_v19 = vsel %vm5382_vm0, %v5337_v15, %v5403_v22 }
 0x481   : > { %5412 = vst [vmem:[%s9211_s24 + $0x18] sm:$0xff] %v5404_v19 }
 0x482   : > { %6665 = shalt.err (!%p6662_p4)
}
 0x483   : > { %s6666_s2 = scalar_lea.hbm %s9530_s26, 512  ;;  %s6670_s30 = scalar_lea.hbm %s9594_s15, 1024 }
 0x484   : > { %p6667_p7 = scmp.ne.s32.totalorder %s9530_s26, %s6666_s2  ;;  %p6671_p10 = scmp.lt.u32.totalorder %s9530_s26, %s9594_s15 }
 0x485   : > { %p6672_p11 = scmp.lt.u32.totalorder %s6670_s30, %s6666_s2  ;;  %p6674_p13 = scmp.lt.u32.totalorder %s6666_s2, %s9530_s26 }
 0x486   : > { %p6668_p8 = pnand %p6667_p7, %p6839_p5 }
 0x487   : > { %p6673_p12 = por %p6672_p11, %p6671_p10 }
 0x488   : > { %p6669_p9 = pneg %p6668_p8 }
 0x489   : > { %p6675_p0 = por %p6674_p13, %p6673_p12 }
 0x48b   : > { %p6676_p1 = pnand %p6675_p0, %p6669_p9 }
 0x48d   : > { %6679 = shalt.err (!%p6676_p1)
}
 0x48e   : > { %s6719_s22 = smov 128   ;;  %s6720_s17 = smov 8  }
 0x48f   : > { %6410 = dma.vmem_to_hbm [thread:$0]  (%p6839_p5), %s9532_s16, 512, %s9530_s26, %s9538_s20, %s6719_s22, %s6719_s22, %s6720_s17  }
 0x490 PF: > { %p6416_p2 = scmp.ge.s32.totalorder %s6714_s21, 2  ;;  %s5442_s7 = sand.u32 1, %s6702_s18  }
 0x491   : > { %s5443_s2 = scalar_lea.sflag [#allocation3], %s5442_s7 }
 0x492   : > { %p6413_p3 = pnand %p6416_p2, %p6843_p6 }
 0x494   : > { %6697 = dma.done.wait (!%p6413_p3), %s5443_s2, 512  }
 0x495   : > { %6699 = vsyncadd (!%p6413_p3), %s5443_s2, 4294966784  ;;  %s9795_s21 = sld [smem:[#allocation6_spill]]  ;;  %s9796_s24 = sld [smem:[#allocation5_spill]] }
 0x496   : > { %s9797_s20 = sld [smem:[#allocation7_spill]]  ;;  %s9798_s18 = smov %s6706_s19 }
 0x49b   : > { %p25_p4 = scmp.ge.s32.totalorder %s9795_s21, 4   ;;  %s9799_s19 = smov %s9796_s24 }
 0x49d   :  { %27 = sbr.rel (!%p25_p4) target bundleno = 6 (0x6), region = 121 }
 0x4a4   :  { %5448 = vsyncpa [#allocation3], 1 }
 0x4a5   :  { %5450 = vsyncpa [#allocation3 + $0x1], 1 }

</bundles_post_ra>
